<compile_context>
chip_gen: v7x
topology: tpu7x:2x2x1
jax: 0.10.0
libtpu: 0.0.40
codegen_flags: <defaults>
</compile_context>

<pallas_src>
import functools
import math

import jax
import jax.numpy as jnp
from jax.experimental import pallas as pl
from jax.experimental.pallas import tpu as pltpu


def timestep_embedding_kernel(
    t_ref, freq_ref, w1_ref, b1_ref, w2_ref, b2_ref, o_ref, *, half_dim
):
    """Fused sinusoidal embedding + dense + LeakyReLU(0.2) + dense for one batch tile.

    t_ref:    (TB, 1)        float32 timesteps (padded rows are 0, sliced off outside)
    freq_ref: (1, half_dim)  float32 frequencies
    w1_ref:   (E, H) with E in {2*half, 2*half+1},  b1_ref: (1, H)
    w2_ref:   (H, O),                               b2_ref: (1, O)
    o_ref:    (TB, O)
    """
    t = t_ref[...]                    # (TB, 1)
    freqs = freq_ref[...]             # (1, half)
    arg = t * freqs                   # (TB, half)   broadcast on lanes

    # concat([sin, cos], -1) @ W1  ==  sin(arg) @ W1[:half] + cos(arg) @ W1[half:2*half]
    # (static ref slices are free; the odd-E zero-pad lane never touches W1's last row).
    h = (
        jnp.dot(jnp.sin(arg), w1_ref[:half_dim, :], preferred_element_type=jnp.float32)
        + jnp.dot(
            jnp.cos(arg),
            w1_ref[half_dim : 2 * half_dim, :],
            preferred_element_type=jnp.float32,
        )
        + b1_ref[...]
    )
    # LeakyReLU(negative_slope=0.2): slope < 1  =>  max(h, 0.2*h)
    h = jnp.maximum(h, 0.2 * h)
    out = jnp.dot(h, w2_ref[...], preferred_element_type=jnp.float32) + b2_ref[...]
    o_ref[...] = out.astype(o_ref.dtype)


def timestep_embedding(temp, freqs, w1, b1, w2, b2, *, block_b=256):
    """temp: (B,) float timesteps -> (B, output_dim) embedding."""
    B = temp.shape[0]
    E, H = w1.shape
    H2, O = w2.shape
    half = freqs.shape[1]
    assert E in (2 * half, 2 * half + 1) and H2 == H

    # Batch tile: at least 8 rows (f32 sublane); large tiles amortize per-grid-step
    # overhead (~0.35 us/step) while the tiny weights stay VMEM-resident.
    tb = block_b if B >= block_b else max(8, ((B + 7) // 8) * 8)
    Bp = ((B + tb - 1) // tb) * tb

    t2d = temp.astype(jnp.float32).reshape(B, 1)
    if Bp != B:
        t2d = jnp.pad(t2d, ((0, Bp - B), (0, 0)))  # padded rows -> arg = 0, harmless

    # Weights / biases / freqs: constant block index => DMA'd once, VMEM-resident.
    resident = lambda shape: pl.BlockSpec(shape, lambda i: tuple(0 for _ in shape))

    flops = 2 * Bp * (2 * half * H + H * O)
    transcendentals = Bp * 2 * half  # sin + cos, half_dim lanes each
    bytes_accessed = 4 * (Bp * (1 + O) + E * H + H + H * O + O + half)

    out = pl.pallas_call(
        functools.partial(timestep_embedding_kernel, half_dim=half),
        out_shape=jax.ShapeDtypeStruct((Bp, O), jnp.float32),
        grid=(Bp // tb,),
        in_specs=[
            pl.BlockSpec((tb, 1), lambda i: (i, 0)),
            resident(freqs.shape),
            resident(w1.shape),
            resident(b1.shape),
            resident(w2.shape),
            resident(b2.shape),
        ],
        out_specs=pl.BlockSpec((tb, O), lambda i: (i, 0)),
        compiler_params=pltpu.CompilerParams(
            # Batch tiles are independent -> shard across v7x's 2 TCs; no-op on v5e/v6e.
            dimension_semantics=("parallel",),
        ),
        cost_estimate=pl.CostEstimate(
            flops=flops,
            transcendentals=transcendentals,
            bytes_accessed=bytes_accessed,
        ),
    )(t2d, freqs, w1, b1, w2, b2)

    return out[:B] if Bp != B else out


def make_params(key, embedding_dim, hidden_dim, output_dim):
    k1, k2, k3, k4 = jax.random.split(key, 4)
    # Deterministic synthetic init (shapes match the nn.Linear layers in `dense`,
    # stored as [in, out] so the kernel computes x @ W + b).
    w1 = jax.random.normal(k1, (embedding_dim, hidden_dim), jnp.float32) * (
        1.0 / math.sqrt(embedding_dim)
    )
    b1 = jax.random.normal(k2, (1, hidden_dim), jnp.float32) * 0.01
    w2 = jax.random.normal(k3, (hidden_dim, output_dim), jnp.float32) * (
        1.0 / math.sqrt(hidden_dim)
    )
    b2 = jax.random.normal(k4, (1, output_dim), jnp.float32) * 0.01
    return w1, b1, w2, b2


def make_freqs(embedding_dim, max_positions=10000):
    # Standard score-SDE / DDPM get_timestep_embedding frequencies.
    half_dim = embedding_dim // 2
    scale = math.log(max_positions) / (half_dim - 1) if half_dim > 1 else 1.0
    freqs = jnp.exp(jnp.arange(half_dim, dtype=jnp.float32) * -scale)
    return freqs.reshape(1, half_dim)


def reference(temp, freqs, w1, b1, w2, b2):
    t2d = temp.astype(jnp.float32)[:, None]
    arg = t2d * freqs
    emb = jnp.concatenate([jnp.sin(arg), jnp.cos(arg)], axis=-1)
    if emb.shape[-1] < w1.shape[0]:  # odd embedding_dim -> zero-pad last lane
        emb = jnp.pad(emb, ((0, 0), (0, w1.shape[0] - emb.shape[-1])))
    h = emb @ w1 + b1
    h = jnp.where(h > 0, h, 0.2 * h)
    return h @ w2 + b2


if __name__ == "__main__":
    key = jax.random.PRNGKey(0)
    k_t, k_p = jax.random.split(key)

    # Small demo config.  hidden/output chosen lane-dense (multiples of 128); batch is
    # deliberately not a multiple of 8/128 to exercise the padding path.
    batch = 200
    embedding_dim = 32
    hidden_dim = 128
    output_dim = 128

    # Timesteps in [0, 1000) like diffusion timesteps.
    temp = jax.random.uniform(k_t, (batch,), jnp.float32, 0.0, 1000.0)

    freqs = make_freqs(embedding_dim)
    w1, b1, w2, b2 = make_params(k_p, embedding_dim, hidden_dim, output_dim)

    out = timestep_embedding(temp, freqs, w1, b1, w2, b2)
    out = jax.block_until_ready(out)

    ref = reference(temp, freqs, w1, b1, w2, b2)
    assert out.shape == (batch, output_dim)
    assert jnp.allclose(out, ref, atol=1e-4, rtol=1e-4)

    print("KERNEL_OK")
</pallas_src>

<mosaic_0001>
module attributes {stable_mosaic.version = 11 : i64} {
  func.func @timestep_embedding_kernel(%arg0: i32, %arg1: memref<200x1xf32, #tpu.memory_space<vmem>>, %arg2: memref<1x16xf32, #tpu.memory_space<vmem>>, %arg3: memref<32x128xf32, #tpu.memory_space<vmem>>, %arg4: memref<1x128xf32, #tpu.memory_space<vmem>>, %arg5: memref<128x128xf32, #tpu.memory_space<vmem>>, %arg6: memref<1x128xf32, #tpu.memory_space<vmem>>, %arg7: memref<200x128xf32, #tpu.memory_space<vmem>>) attributes {dimension_semantics = [#tpu.dimension_semantics<parallel>], iteration_bounds = array<i64: 1>, scalar_prefetch = 0 : i64, scratch_operands = 0 : i64, tpu.core_type = #tpu.core_type<tc>, window_params = [{transform_indices = @transform_0, window_bounds = array<i64: 200, 1>}, {pipeline_mode = #tpu.pipeline_mode<synchronous>, transform_indices = @transform_1, window_bounds = array<i64: 1, 16>}, {pipeline_mode = #tpu.pipeline_mode<synchronous>, transform_indices = @transform_2, window_bounds = array<i64: 32, 128>}, {pipeline_mode = #tpu.pipeline_mode<synchronous>, transform_indices = @transform_3, window_bounds = array<i64: 1, 128>}, {pipeline_mode = #tpu.pipeline_mode<synchronous>, transform_indices = @transform_4, window_bounds = array<i64: 128, 128>}, {pipeline_mode = #tpu.pipeline_mode<synchronous>, transform_indices = @transform_5, window_bounds = array<i64: 1, 128>}, {transform_indices = @transform_6, window_bounds = array<i64: 200, 128>}]} {
    %c0 = arith.constant 0 : index
    %c0_0 = arith.constant 0 : index
    %0 = vector.load %arg1[%c0, %c0_0] : memref<200x1xf32, #tpu.memory_space<vmem>>, vector<200x1xf32>
    %c0_1 = arith.constant 0 : index
    %c0_2 = arith.constant 0 : index
    %1 = vector.load %arg2[%c0_1, %c0_2] : memref<1x16xf32, #tpu.memory_space<vmem>>, vector<1x16xf32>
    %2 = vector.broadcast %0 : vector<200x1xf32> to vector<200x16xf32>
    %3 = vector.broadcast %1 : vector<1x16xf32> to vector<200x16xf32>
    %4 = arith.mulf %2, %3 : vector<200x16xf32>
    %5 = math.sin %4 : vector<200x16xf32>
    %c0_3 = arith.constant 0 : index
    %c0_4 = arith.constant 0 : index
    %6 = vector.load %arg3[%c0_3, %c0_4] : memref<32x128xf32, #tpu.memory_space<vmem>>, vector<16x128xf32>
    %cst = arith.constant dense<0.000000e+00> : vector<200x128xf32>
    %7 = tpu.matmul %5, %6, %cst {dimension_numbers = #tpu.dot_dimension_numbers<[1], [0], [0], [1], [0, 0, 1, 1], [], []>} : vector<200x16xf32>, vector<16x128xf32>, vector<200x128xf32> -> vector<200x128xf32>
    %8 = math.cos %4 : vector<200x16xf32>
    %c16 = arith.constant 16 : index
    %c0_5 = arith.constant 0 : index
    %9 = vector.load %arg3[%c16, %c0_5] : memref<32x128xf32, #tpu.memory_space<vmem>>, vector<16x128xf32>
    %cst_6 = arith.constant dense<0.000000e+00> : vector<200x128xf32>
    %10 = tpu.matmul %8, %9, %cst_6 {dimension_numbers = #tpu.dot_dimension_numbers<[1], [0], [0], [1], [0, 0, 1, 1], [], []>} : vector<200x16xf32>, vector<16x128xf32>, vector<200x128xf32> -> vector<200x128xf32>
    %11 = arith.addf %7, %10 : vector<200x128xf32>
    %c0_7 = arith.constant 0 : index
    %c0_8 = arith.constant 0 : index
    %12 = vector.load %arg4[%c0_7, %c0_8] : memref<1x128xf32, #tpu.memory_space<vmem>>, vector<1x128xf32>
    %13 = vector.broadcast %12 : vector<1x128xf32> to vector<200x128xf32>
    %14 = arith.addf %11, %13 : vector<200x128xf32>
    %cst_9 = arith.constant 2.000000e-01 : f32
    %15 = vector.broadcast %cst_9 : f32 to vector<200x128xf32>
    %16 = arith.mulf %15, %14 : vector<200x128xf32>
    %17 = arith.maximumf %14, %16 : vector<200x128xf32>
    %c0_10 = arith.constant 0 : index
    %c0_11 = arith.constant 0 : index
    %18 = vector.load %arg5[%c0_10, %c0_11] : memref<128x128xf32, #tpu.memory_space<vmem>>, vector<128x128xf32>
    %cst_12 = arith.constant dense<0.000000e+00> : vector<200x128xf32>
    %19 = tpu.matmul %17, %18, %cst_12 {dimension_numbers = #tpu.dot_dimension_numbers<[1], [0], [0], [1], [0, 0, 1, 1], [], []>} : vector<200x128xf32>, vector<128x128xf32>, vector<200x128xf32> -> vector<200x128xf32>
    %c0_13 = arith.constant 0 : index
    %c0_14 = arith.constant 0 : index
    %20 = vector.load %arg6[%c0_13, %c0_14] : memref<1x128xf32, #tpu.memory_space<vmem>>, vector<1x128xf32>
    %21 = vector.broadcast %20 : vector<1x128xf32> to vector<200x128xf32>
    %22 = arith.addf %19, %21 : vector<200x128xf32>
    %c0_15 = arith.constant 0 : index
    %c0_16 = arith.constant 0 : index
    %23 = vector.load %arg7[%c0_15, %c0_16] : memref<200x128xf32, #tpu.memory_space<vmem>>, vector<200x128xf32>
    tpu.vector_store %arg7[%c0_15, %c0_16], %22 {strides = array<i32>} : memref<200x128xf32, #tpu.memory_space<vmem>>, vector<200x128xf32>,
    return
  }
  func.func @transform_0(%arg0: i32) -> (i32, i32) {
    %c0_i32 = arith.constant 0 : i32
    %c0_i32_0 = arith.constant 0 : i32
    return %arg0, %c0_i32 : i32, i32
  }
  func.func @transform_1(%arg0: i32) -> (i32, i32) {
    %c0_i32 = arith.constant 0 : i32
    %c0_i32_0 = arith.constant 0 : i32
    %c0_i32_1 = arith.constant 0 : i32
    return %c0_i32, %c0_i32_0 : i32, i32
  }
  func.func @transform_2(%arg0: i32) -> (i32, i32) {
    %c0_i32 = arith.constant 0 : i32
    %c0_i32_0 = arith.constant 0 : i32
    %c0_i32_1 = arith.constant 0 : i32
    return %c0_i32, %c0_i32_0 : i32, i32
  }
  func.func @transform_3(%arg0: i32) -> (i32, i32) {
    %c0_i32 = arith.constant 0 : i32
    %c0_i32_0 = arith.constant 0 : i32
    %c0_i32_1 = arith.constant 0 : i32
    return %c0_i32, %c0_i32_0 : i32, i32
  }
  func.func @transform_4(%arg0: i32) -> (i32, i32) {
    %c0_i32 = arith.constant 0 : i32
    %c0_i32_0 = arith.constant 0 : i32
    %c0_i32_1 = arith.constant 0 : i32
    return %c0_i32, %c0_i32_0 : i32, i32
  }
  func.func @transform_5(%arg0: i32) -> (i32, i32) {
    %c0_i32 = arith.constant 0 : i32
    %c0_i32_0 = arith.constant 0 : i32
    %c0_i32_1 = arith.constant 0 : i32
    return %c0_i32, %c0_i32_0 : i32, i32
  }
  func.func @transform_6(%arg0: i32) -> (i32, i32) {
    %c0_i32 = arith.constant 0 : i32
    %c0_i32_0 = arith.constant 0 : i32
    return %arg0, %c0_i32 : i32, i32
  }
}

</mosaic_0001>

<bundles_post_ra>
// kernel: tpu_custom_call.1
= control target key start
LH: loop header
LB: loop body
LE: loop exit
PB: predicated region body
PF: predicated region fallthrough
CT: control target
= control target key end

     0   :  { %v7139_v2 = vmov 0   ;;  %s10261_s0 = inlined_call_operand.vmem [shape: f32[200,1], index: 0, kind: input, shape index: {}]   ;;  %s10262_s1 = inlined_call_operand.vmem [shape: f32[1,16], index: 1, kind: input, shape index: {}]   ;;  %s10263_s2 = inlined_call_operand.vmem [shape: f32[32,128], index: 2, kind: input, shape index: {}]   ;;  %s10264_s3 = inlined_call_operand.vmem [shape: f32[1,128], index: 3, kind: input, shape index: {}]   ;;  %s10265_s4 = inlined_call_operand.vmem [shape: f32[128,128], index: 4, kind: input, shape index: {}]   ;;  %s10266_s5 = inlined_call_operand.vmem [shape: f32[1,128], index: 5, kind: input, shape index: {}]   ;;  %s10267_s6 = inlined_call_operand.hbm [shape: f32[200,128], index: 6, kind: output, shape index: {}]  }
   0x1   :  { %v39_v0 = vld [vmem:[%s10261_s0 + $0x78] sm:$0xff]  ;;  %v37_v1 = vld [vmem:[%s10261_s0 + $0x68] sm:$0xff]  ;;  %7011 = vset.pattern.permute.xlu1 %v7139_v2  ;;  %7010 = vset.pattern.permute.xlu0 %v7139_v2  ;;  %v40_v3 = vld [vmem:[%s10261_s0 + $0x80] sm:$0xff] }
   0x2   :  { %127 = vperm.xlu1 %7011, %v39_v0   ;;  %117 = vperm.xlu0 %7010, %v37_v1   ;;  %v38_v4 = vld [vmem:[%s10261_s0 + $0x70] sm:$0xff]  ;;  %v41_v6 = vld [vmem:[%s10261_s0 + $0x88] sm:$0xff] }
   0x3   :  { %v42_v5 = vld [vmem:[%s10261_s0 + $0x90] sm:$0xff] }
   0x6   :  { %132 = vperm.xlu1 %7011, %v40_v3   ;;  %122 = vperm.xlu0 %7010, %v38_v4  }
   0x7   :  { %11 = vsyncpa [#allocation3], 0  ;;  %v44_v7 = vld [vmem:[%s10261_s0 + $0xa0] sm:$0xff]  ;;  %v43_v8 = vld [vmem:[%s10261_s0 + $0x98] sm:$0xff]  ;;  %v10280_v0 = vmov 683565275  }
   0x8   :  { %v46_v9 = vld [vmem:[%s10261_s0 + $0xb0] sm:$0xff]  ;;  %v45_v10 = vld [vmem:[%s10261_s0 + $0xa8] sm:$0xff]  ;;  %v48_v11 = vld [vmem:[%s10261_s0 + $0xc0] sm:$0xff]  ;;  %v10276_v2 = vmov 2475754826  }
   0x9   :  { %v47_v12 = vld [vmem:[%s10261_s0 + $0xb8] sm:$0xff]  ;;  %v25_v13 = vld [vmem:[%s10261_s0 + $0x8] sm:$0xff]  ;;  %v24_v14 = vld [vmem:[%s10261_s0] sm:$0xff]  ;;  %v10273_v4 = vmov 2131351028  }
   0xa   :  { %142 = vperm.xlu1 %7011, %v42_v5   ;;  %137 = vperm.xlu0 %7010, %v41_v6   ;;  %v27_v15 = vld [vmem:[%s10261_s0 + $0x18] sm:$0xff]  ;;  %v26_v16 = vld [vmem:[%s10261_s0 + $0x10] sm:$0xff]  ;;  %v29_v17 = vld [vmem:[%s10261_s0 + $0x28] sm:$0xff]  ;;  %v10271_v6 = vmov 2102212464  }
   0xb   :  { %v28_v18 = vld [vmem:[%s10261_s0 + $0x20] sm:$0xff]  ;;  %v31_v19 = vld [vmem:[%s10261_s0 + $0x38] sm:$0xff]  ;;  %v30_v20 = vld [vmem:[%s10261_s0 + $0x30] sm:$0xff] }
   0xc   :  { %v33_v21 = vld [vmem:[%s10261_s0 + $0x48] sm:$0xff]  ;;  %v32_v22 = vld [vmem:[%s10261_s0 + $0x40] sm:$0xff]  ;;  %v35_v23 = vld [vmem:[%s10261_s0 + $0x58] sm:$0xff] }
   0xd   :  { %v34_v24 = vld [vmem:[%s10261_s0 + $0x50] sm:$0xff]  ;;  %v36_v25 = vld [vmem:[%s10261_s0 + $0x60] sm:$0xff] }
   0xe   :  { %152 = vperm.xlu1 %7011, %v44_v7   ;;  %147 = vperm.xlu0 %7010, %v43_v8   ;;  %v7265_v26 = vld [vmem:[%s10262_s1] ss:$0 sm:$0xff]  ;;  %v10305_v8 = vmov 920167782  }
  0x12   :  { %162 = vperm.xlu1 %7011, %v46_v9   ;;  %157 = vperm.xlu0 %7010, %v45_v10  }
  0x16   :  { %172 = vperm.xlu1 %7011, %v48_v11   ;;  %167 = vperm.xlu0 %7010, %v47_v12  }
  0x1a   :  { %57 = vperm.xlu1 %7011, %v25_v13   ;;  %52 = vperm.xlu0 %7010, %v24_v14  }
  0x1e   :  { %67 = vperm.xlu1 %7011, %v27_v15   ;;  %62 = vperm.xlu0 %7010, %v26_v16   ;;  %v10278_v16 = vmov 1326507024  }
  0x22   :  { %77 = vperm.xlu1 %7011, %v29_v17   ;;  %72 = vperm.xlu0 %7010, %v28_v18  }
  0x26   :  { %87 = vperm.xlu1 %7011, %v31_v19   ;;  %82 = vperm.xlu0 %7010, %v30_v20  }
  0x2a   :  { %97 = vperm.xlu1 %7011, %v33_v21   ;;  %92 = vperm.xlu0 %7010, %v32_v22  }
  0x2e   :  { %107 = vperm.xlu1 %7011, %v35_v23   ;;  %102 = vperm.xlu0 %7010, %v34_v24  }
  0x32   :  { %112 = vperm.xlu0 %7010, %v36_v25  }
  0x81   :  { %v128_v27 = vpop.permute.xlu1 %127  ;;  %v118_v28 = vpop.permute.xlu0 %117 }
  0x82   :  { %v7268_v29 = vmul.f32 %v7265_v26, %v128_v27  ;;  %v7271_v30 = vmul.f32 %v7265_v26, %v118_v28 }
  0x84   :  { %10536 = vst [vmem:[#allocation5_spill] sm:$0xff] %v7268_v29  ;;  %10537 = vst [vmem:[#allocation6_spill] sm:$0xff] %v7271_v30  ;;  %v1766_v31 = vand.u32 2147483647, %v7268_v29  ;;  %v1769_v32 = vand.u32 2139095040, %v7268_v29  ;;  %v1561_v34 = vand.u32 2139095040, %v7271_v30 }
  0x85   :  { %v1558_v33 = vand.u32 2147483647, %v7271_v30  ;;  %v133_v35 = vpop.permute.xlu1 %132  ;;  %v123_v43 = vpop.permute.xlu0 %122 }
  0x86   :  { %v1770_v36 = vshrl.u32 %v1769_v32, 23  ;;  %v1773_v37 = vand.u32 8388607, %v1766_v31  ;;  %v7280_v38 = vmul.f32 %v7265_v26, %v133_v35  ;;  %v1562_v39 = vshrl.u32 %v1561_v34, 23 }
  0x87   :  { %v1565_v40 = vand.u32 8388607, %v1558_v33  ;;  %v7291_v52 = vmul.f32 %v7265_v26, %v123_v43 }
  0x88   :  { %10538 = vst [vmem:[#allocation7_spill] sm:$0xff] %v7280_v38  ;;  %v6313_v41 = vadd.s32 4294967169, %v1770_v36  ;;  %v1870_v42 = vand.u32 2147483647, %v7280_v38  ;;  %v1774_v44 = vor.u32 8388608, %v1773_v37  ;;  %v6305_v45 = vadd.s32 4294967169, %v1562_v39 }
  0x89   :  { %v1873_v46 = vand.u32 2139095040, %v7280_v38  ;;  %v1566_v48 = vor.u32 8388608, %v1565_v40  ;;  %10539 = vst [vmem:[#allocation8_spill] sm:$0xff] %v7291_v52  ;;  %v1665_v62 = vand.u32 2139095040, %v7291_v52 }
  0x8a   :  { %v1776_v47 = vadd.s32 1, %v6313_v41  ;;  %v1568_v49 = vadd.s32 1, %v6305_v45  ;;  %v7288_v51 = vand.u32 8388607, %v1870_v42  ;;  %v7293_v54 = vshll.u32 %v1774_v44, 8 }
  0x8b   :  { %v1874_v50 = vshrl.u32 %v1873_v46, 23  ;;  %v7295_v58 = vshll.u32 %v1566_v48, 8 }
  0x8c   :  { %vm1777_vm0 = vcmp.gt.s32.totalorder %v1776_v47, 0  ;;  %vm1569_vm1 = vcmp.gt.s32.totalorder %v1568_v49, 0  ;;  %v1878_v61 = vor.u32 8388608, %v7288_v51 }
  0x8d   :  { %v1778_v53 = vsel %vm1777_vm0, %v1776_v47, 0  ;;  %v1570_v57 = vsel %vm1569_vm1, %v1568_v49, 0  ;;  %v6317_v60 = vadd.s32 4294967169, %v1874_v50 }
  0x8e   :  { %v1779_v55 = vshrl.u32 %v1778_v53, 5  ;;  %v1780_v56 = vand.u32 31, %v1778_v53  ;;  %v7297_v59 = vand.u32 31, %v1570_v57  ;;  %v7306_v10 = vshrl.u32 %v1570_v57, 5 }
  0x8f   :  { %v1880_v24 = vadd.s32 1, %v6317_v60 }
  0x90   :  { %v1781_v63 = vsub.s32 32, %v1780_v56  ;;  %v1783_v1 = vshll.u32 %v10280_v0, %v1780_v56  ;;  %v1786_v3 = vshll.u32 %v10276_v2, %v1780_v56  ;;  %v1789_v5 = vshll.u32 %v10273_v4, %v1780_v56 }
  0x91   :  { %v1792_v7 = vshll.u32 %v10271_v6, %v1780_v56  ;;  %v1795_v9 = vshll.u32 %v10305_v8, %v1780_v56  ;;  %vm1798_vm2 = vcmp.lt.s32.totalorder %v1779_v55, 1  ;;  %vm1800_vm3 = vcmp.lt.s32.totalorder %v1779_v55, 3 }
  0x92   :  { %v1782_v11 = vshrl.u32 %v10280_v0, %v1781_v63  ;;  %v1784_v12 = vshrl.u32 %v10276_v2, %v1781_v63  ;;  %v1787_v13 = vshrl.u32 %v10273_v4, %v1781_v63  ;;  %v1790_v14 = vshrl.u32 %v10271_v6, %v1781_v63 }
  0x93   :  { %v1793_v15 = vshrl.u32 %v10305_v8, %v1781_v63  ;;  %v1796_v17 = vshrl.u32 %v10278_v16, %v1781_v63  ;;  %vm1801_vm4 = vcmp.lt.s32.totalorder %v1779_v55, 4  ;;  %v1573_v21 = vsub.s32 32, %v7297_v59 }
  0x94   :  { %v1785_v18 = vor.u32 %v1784_v12, %v1783_v1  ;;  %v1788_v19 = vor.u32 %v1787_v13, %v1786_v3  ;;  %v1791_v20 = vor.u32 %v1790_v14, %v1789_v5  ;;  %vm1799_vm5 = vcmp.lt.s32.totalorder %v1779_v55, 2 }
  0x95   :  { %v1794_v22 = vor.u32 %v1793_v15, %v1792_v7  ;;  %v1797_v23 = vor.u32 %v1796_v17, %v1795_v9  ;;  %v1575_v37 = vshll.u32 %v10280_v0, %v7297_v59  ;;  %v1576_v41 = vshrl.u32 %v10276_v2, %v1573_v21 }
  0x96   :  { %v1802_v25 = vsel %vm1798_vm2, %v1782_v11, %v1785_v18  ;;  %v1803_v27 = vsel %vm1801_vm4, %v1791_v20, 2102212464  ;;  %v1806_v28 = vsel %vm1798_vm2, %v1785_v18, %v1788_v19  ;;  %v1810_v32 = vsel %vm1798_vm2, %v1788_v19, %v1791_v20 }
  0x97   :  { %v1804_v34 = vsel %vm1800_vm3, %v1788_v19, %v1803_v27  ;;  %v1807_v35 = vsel %vm1801_vm4, %v1794_v22, 920167782  ;;  %v1811_v36 = vsel %vm1801_vm4, %v1797_v23, 1326507024  ;;  %v1578_v43 = vshll.u32 %v10276_v2, %v7297_v59 }
  0x98   :  { %v1808_v39 = vsel %vm1800_vm3, %v1791_v20, %v1807_v35  ;;  %v1812_v40 = vsel %vm1800_vm3, %v1794_v22, %v1811_v36  ;;  %v1805_v44 = vsel %vm1799_vm5, %v1802_v25, %v1804_v34  ;;  %v1579_v47 = vshrl.u32 %v10273_v4, %v1573_v21 }
  0x99   :  { %v1809_v45 = vsel %vm1799_vm5, %v1806_v28, %v1808_v39  ;;  %v1813_v46 = vsel %vm1799_vm5, %v1810_v32, %v1812_v40  ;;  %v1577_v56 = vor.u32 %v1576_v41, %v1575_v37  ;;  %v1581_v60 = vshll.u32 %v10273_v4, %v7297_v59 }
  0x9a   :  { %v7331_v48 = vmul.u32.u64.low %v7293_v54, %v1813_v46  ;;  %v7332_v49 = vmul.u32.u64.high %v7293_v54, %v1813_v46, %v7331_v48  ;;  %v7335_v50 = vmul.u32.u64.low %v7293_v54, %v1809_v45  ;;  %v7336_v53 = vmul.u32.u64.high %v7293_v54, %v1809_v45, %v7335_v50 }
  0x9b   :  { %v1580_v57 = vor.u32 %v1579_v47, %v1578_v43  ;;  %v1582_v63 = vshrl.u32 %v10271_v6, %v1573_v21  ;;  %v1574_v55 = vshrl.u32 %v10280_v0, %v1573_v21  ;;  %v1584_v1 = vshll.u32 %v10271_v6, %v7297_v59 }
  0x9c   :  { %v1585_v3 = vshrl.u32 %v10305_v8, %v1573_v21  ;;  %v1588_v5 = vshrl.u32 %v10278_v16, %v1573_v21  ;;  %v1821_v7 = vmul.u32 %v7293_v54, %v1805_v44  ;;  %v1587_v11 = vshll.u32 %v10305_v8, %v7297_v59 }
  0x9d   :  { %v1583_v9 = vor.u32 %v1582_v63, %v1581_v60  ;;  %vm1590_vm6 = vcmp.lt.s32.totalorder %v7306_v10, 1  ;;  %vm1823_vm7 = vc.u32 %v7332_v49, %v7335_v50  ;;  %v1824_v12 = vadd.s32 1, %v7336_v53 }
  0x9e   :  { %v1586_v13 = vor.u32 %v1585_v3, %v1584_v1  ;;  %vm1591_vm8 = vcmp.lt.s32.totalorder %v7306_v10, 2  ;;  %v1589_v14 = vor.u32 %v1588_v5, %v1587_v11  ;;  %vm1592_vm9 = vcmp.lt.s32.totalorder %v7306_v10, 3 }
  0x9f   :  { %vm1593_vm10 = vcmp.lt.s32.totalorder %v7306_v10, 4  ;;  %v1598_v54 = vsel %vm1590_vm6, %v1577_v56, %v1580_v57  ;;  %v1825_v15 = vsel %vm1823_vm7, %v1824_v12, %v7336_v53  ;;  %v1602_v18 = vsel %vm1590_vm6, %v1580_v57, %v1583_v9 }
  0xa0   :  { %v1595_v17 = vsel %vm1593_vm10, %v1583_v9, 2102212464  ;;  %v1599_v59 = vsel %vm1593_vm10, %v1586_v13, 920167782  ;;  %v1826_v19 = vadd.s32 %v1825_v15, %v1821_v7  ;;  %v1594_v20 = vsel %vm1590_vm6, %v1574_v55, %v1577_v56 }
  0xa1   :  { %v1600_v21 = vsel %vm1592_vm9, %v1583_v9, %v1599_v59  ;;  %v1603_v22 = vsel %vm1593_vm10, %v1589_v14, 1326507024  ;;  %v1596_v23 = vsel %vm1592_vm9, %v1580_v57, %v1595_v17  ;;  %vm1881_vm11 = vcmp.gt.s32.totalorder %v1880_v24, 0 }
  0xa2   :  { %v1601_v25 = vsel %vm1591_vm8, %v1598_v54, %v1600_v21  ;;  %v1604_v27 = vsel %vm1592_vm9, %v1586_v13, %v1603_v22  ;;  %v1827_v28 = vadd.s32 536870912, %v1826_v19  ;;  %v1882_v39 = vsel %vm1881_vm11, %v1880_v24, 0 }
  0xa3   :  { %v1605_v32 = vsel %vm1591_vm8, %v1602_v18, %v1604_v27  ;;  %v7363_v34 = vmul.u32.u64.low %v7295_v58, %v1601_v25  ;;  %v7364_v35 = vmul.u32.u64.high %v7295_v58, %v1601_v25, %v7363_v34  ;;  %v1597_v41 = vsel %vm1591_vm8, %v1594_v20, %v1596_v23 }
  0xa4   :  { %v7368_v36 = vmul.u32.u64.low %v7295_v58, %v1605_v32  ;;  %v7369_v37 = vmul.u32.u64.high %v7295_v58, %v1605_v32, %v7368_v36  ;;  %v7371_v40 = vshrl.u32 %v1827_v28, 30  ;;  %v1884_v43 = vand.u32 31, %v1882_v39 }
  0xa5   :  { %v7377_v44 = vshll.u32 %v1878_v61, 8  ;;  %v1662_v45 = vand.u32 2147483647, %v7291_v52  ;;  %v1666_v46 = vshrl.u32 %v1665_v62, 23  ;;  %v1616_v48 = vadd.s32 1, %v7364_v35 }
  0xa6   :  { %v1829_v47 = vshll.u32 %v7371_v40, 30  ;;  %v1885_v24 = vsub.s32 32, %v1884_v43  ;;  %v1887_v53 = vshll.u32 %v10280_v0, %v1884_v43  ;;  %v1613_v10 = vmul.u32 %v7295_v58, %v1597_v41 }
  0xa7   :  { %vm1615_vm12 = vc.u32 %v7369_v37, %v7363_v34  ;;  %v1890_v51 = vshll.u32 %v10276_v2, %v1884_v43  ;;  %v1893_v61 = vshll.u32 %v10273_v4, %v1884_v43  ;;  %v1883_v57 = vshrl.u32 %v1882_v39, 5 }
  0xa8   :  { %v7390_v56 = vsub.s32 %v1826_v19, %v1829_v47  ;;  %v1617_v62 = vsel %vm1615_vm12, %v1616_v48, %v7364_v35  ;;  %v1888_v60 = vshrl.u32 %v10276_v2, %v1885_v24  ;;  %v1891_v55 = vshrl.u32 %v10273_v4, %v1885_v24 }
  0xa9   :  { %v1618_v63 = vadd.s32 %v1617_v62, %v1613_v10  ;;  %v1894_v1 = vshrl.u32 %v10271_v6, %v1885_v24  ;;  %v1896_v58 = vshll.u32 %v10271_v6, %v1884_v43  ;;  %v1897_v7 = vshrl.u32 %v10305_v8, %v1885_v24 }
  0xaa   :  { %v1832_v3 = vsub.s32 0, %v7390_v56  ;;  %v1889_v5 = vor.u32 %v1888_v60, %v1887_v53  ;;  %v1899_v9 = vshll.u32 %v10305_v8, %v1884_v43  ;;  %v1892_v12 = vor.u32 %v1891_v55, %v1890_v51 }
  0xab   :  { %v1619_v11 = vadd.s32 536870912, %v1618_v63  ;;  %v1895_v13 = vor.u32 %v1894_v1, %v1893_v61  ;;  %v1900_v14 = vshrl.u32 %v10278_v16, %v1885_v24  ;;  %v1886_v15 = vshrl.u32 %v10280_v0, %v1885_v24 }
  0xac   :  { %v6314_v54 = vmin.u32 %v1832_v3, %v7390_v56  ;;  %v1898_v17 = vor.u32 %v1897_v7, %v1896_v58  ;;  %v6309_v59 = vadd.s32 4294967169, %v1666_v46  ;;  %vm1902_vm13 = vcmp.lt.s32.totalorder %v1883_v57, 1 }
  0xad   :  { %v7403_v18 = vshrl.u32 %v1619_v11, 30  ;;  %v1901_v19 = vor.u32 %v1900_v14, %v1899_v9  ;;  %vm1905_vm14 = vcmp.lt.s32.totalorder %v1883_v57, 4  ;;  %vm1903_vm15 = vcmp.lt.s32.totalorder %v1883_v57, 2 }
  0xae   :  { %v1834_v20 = vclz %v6314_v54  ;;  %v1907_v21 = vsel %vm1905_vm14, %v1895_v13, 2102212464  ;;  %v1910_v22 = vsel %vm1902_vm13, %v1889_v5, %v1892_v12  ;;  %vm1904_vm0 = vcmp.lt.s32.totalorder %v1883_v57, 3 }
  0xaf   :  { %v1621_v23 = vshll.u32 %v7403_v18, 30  ;;  %v1911_v25 = vsel %vm1905_vm14, %v1898_v17, 920167782  ;;  %v1914_v27 = vsel %vm1902_vm13, %v1892_v12, %v1895_v13  ;;  %v1906_v32 = vsel %vm1902_vm13, %v1886_v15, %v1889_v5 }
  0xb0   :  { %v6315_v28 = vadd.s32 4294967294, %v1834_v20  ;;  %v1912_v35 = vsel %vm1904_vm0, %v1895_v13, %v1911_v25  ;;  %v1915_v36 = vsel %vm1905_vm14, %v1901_v19, 1326507024  ;;  %v1908_v41 = vsel %vm1904_vm0, %v1892_v12, %v1907_v21 }
  0xb1   :  { %v7406_v39 = vsub.s32 %v1618_v63, %v1621_v23  ;;  %v1913_v43 = vsel %vm1903_vm15, %v1910_v22, %v1912_v35  ;;  %v1916_v46 = vsel %vm1904_vm0, %v1898_v17, %v1915_v36  ;;  %v1909_v60 = vsel %vm1903_vm15, %v1906_v32, %v1908_v41 }
  0xb2   :  { %vm6316_vm1 = vcmp.lt.s32.totalorder %v6315_v28, 0  ;;  %v1917_v47 = vsel %vm1903_vm15, %v1914_v27, %v1916_v46  ;;  %v7411_v48 = vmul.u32.u64.low %v7377_v44, %v1913_v43  ;;  %v7412_v24 = vmul.u32.u64.high %v7377_v44, %v1913_v43, %v7411_v48 }
  0xb3   :  { %v1837_v53 = vsel %vm6316_vm1, 0, %v6315_v28  ;;  %v1624_v10 = vsub.s32 0, %v7406_v39  ;;  %v7417_v51 = vmul.u32.u64.low %v7377_v44, %v1917_v47  ;;  %v7418_v61 = vmul.u32.u64.high %v7377_v44, %v1917_v47, %v7417_v51 }
  0xb4   :  { %v1842_v62 = vsub.s32 4294967266, %v1837_v53  ;;  %v1672_v63 = vadd.s32 1, %v6309_v59  ;;  %v1838_v1 = vsub.s32 32, %v1837_v53  ;;  %v1928_v58 = vadd.s32 1, %v7412_v24  ;;  %v143_v59 = vpop.permute.xlu1 %142 }
  0xb5   :  { %v6306_v55 = vmin.u32 %v1624_v10, %v7406_v39  ;;  %v1669_v3 = vand.u32 8388607, %v1662_v45  ;;  %v1925_v7 = vmul.u32 %v7377_v44, %v1909_v60  ;;  %vm1927_vm3 = vc.u32 %v7418_v61, %v7411_v48 }
  0xb6   :  { %vm1673_vm2 = vcmp.gt.s32.totalorder %v1672_v63, 0  ;;  %v1822_v57 = vadd.s32 %v7335_v50, %v7332_v49  ;;  %v1843_v11 = vadd.s32 127, %v1842_v62  ;;  %v1929_v12 = vsel %vm1927_vm3, %v1928_v58, %v7412_v24 }
  0xb7   :  { %v1626_v5 = vclz %v6306_v55  ;;  %v1674_v9 = vsel %vm1673_vm2, %v1672_v63, 0  ;;  %v1930_v14 = vadd.s32 %v1929_v12, %v1925_v7  ;;  %v1670_v17 = vor.u32 8388608, %v1669_v3 }
  0xb8   :  { %v1676_v54 = vand.u32 31, %v1674_v9  ;;  %v1840_v15 = vshrl.u32 %v1822_v57, %v1838_v1  ;;  %v1839_v44 = vshll.u32 %v7390_v56, %v1837_v53  ;;  %v1844_v21 = vshll.u32 %v1843_v11, 23 }
  0xb9   :  { %v6307_v13 = vadd.s32 4294967294, %v1626_v5  ;;  %v1931_v19 = vadd.s32 536870912, %v1930_v14  ;;  %v1614_v22 = vadd.s32 %v7363_v34, %v7369_v37  ;;  %v7439_v50 = vmul.f32 %v7265_v26, %v143_v59 }
  0xba   :  { %v1677_v20 = vsub.s32 32, %v1676_v54  ;;  %v1841_v25 = vor.u32 %v1840_v15, %v1839_v44  ;;  %v7443_v32 = vshll.u32 %v1670_v17, 8  ;;  %v1679_v35 = vshll.u32 %v10280_v0, %v1676_v54 }
  0xbb   :  { %vm6308_vm4 = vcmp.lt.s32.totalorder %v6307_v13, 0  ;;  %v7436_v49 = vshrl.u32 %v1931_v19, 30  ;;  %10540 = vst [vmem:[#allocation9_spill] sm:$0xff] %v7439_v50  ;;  %v1682_v34 = vshll.u32 %v10276_v2, %v1676_v54  ;;  %v1845_v36 = vor.u32 4788187, %v1844_v21 }
  0xbc   :  { %v7434_v23 = vsel %vm6308_vm4, 0, %v6307_v13  ;;  %v1680_v27 = vshrl.u32 %v10276_v2, %v1677_v20  ;;  %v1683_v28 = vshrl.u32 %v10273_v4, %v1677_v20  ;;  %v1686_v37 = vshrl.u32 %v10271_v6, %v1677_v20 }
  0xbd   :  { %v1933_v56 = vshll.u32 %v7436_v49, 30  ;;  %v1634_v41 = vsub.s32 4294967266, %v7434_v23  ;;  %v1675_v43 = vshrl.u32 %v1674_v9, 5  ;;  %v1685_v46 = vshll.u32 %v10273_v4, %v1676_v54 }
  0xbe   :  { %v1681_v24 = vor.u32 %v1680_v27, %v1679_v35  ;;  %v1684_v53 = vor.u32 %v1683_v28, %v1682_v34  ;;  %v1688_v10 = vshll.u32 %v10271_v6, %v1676_v54  ;;  %v1689_v62 = vshrl.u32 %v10305_v8, %v1677_v20 }
  0xbf   :  { %v7451_v47 = vsub.s32 %v1930_v14, %v1933_v56  ;;  %v1687_v51 = vor.u32 %v1686_v37, %v1685_v46  ;;  %v1691_v60 = vshll.u32 %v10305_v8, %v1676_v54  ;;  %v1692_v63 = vshrl.u32 %v10278_v16, %v1677_v20 }
  0xc0   :  { %v1848_v55 = vcvt.s32.f32 %v1841_v25  ;;  %v1630_v1 = vsub.s32 32, %v7434_v23  ;;  %v2078_v3 = vand.u32 2147483647, %v7439_v50  ;;  %v1635_v5 = vadd.s32 127, %v1634_v41 }
  0xc1   :  { %v1936_v58 = vsub.s32 0, %v7451_v47  ;;  %v1690_v7 = vor.u32 %v1689_v62, %v1688_v10  ;;  %v1693_v9 = vor.u32 %v1692_v63, %v1691_v60  ;;  %vm1694_vm5 = vcmp.lt.s32.totalorder %v1675_v43, 1 }
  0xc2   :  { %v1846_v57 = vand.u32 2147483647, %v1845_v36  ;;  %vm1695_vm6 = vcmp.lt.s32.totalorder %v1675_v43, 2  ;;  %vm1697_vm7 = vcmp.lt.s32.totalorder %v1675_v43, 4  ;;  %vm1696_vm8 = vcmp.lt.s32.totalorder %v1675_v43, 3 }
  0xc3   :  { %v6318_v11 = vmin.u32 %v1936_v58, %v7451_v47  ;;  %v1699_v12 = vsel %vm1697_vm7, %v1687_v51, 2102212464  ;;  %v1702_v13 = vsel %vm1694_vm5, %v1681_v24, %v1684_v53  ;;  %v1703_v14 = vsel %vm1697_vm7, %v1690_v7, 920167782 }
  0xc4   :  { %v1632_v54 = vshrl.u32 %v1614_v22, %v1630_v1  ;;  %v1678_v17 = vshrl.u32 %v10280_v0, %v1677_v20  ;;  %v1704_v59 = vsel %vm1696_vm8, %v1687_v51, %v1703_v14  ;;  %v1636_v19 = vshll.u32 %v1635_v5, 23 }
  0xc5   :  { %v1938_v15 = vclz %v6318_v11  ;;  %v1705_v44 = vsel %vm1695_vm6, %v1702_v13, %v1704_v59  ;;  %v1706_v21 = vsel %vm1694_vm5, %v1684_v53, %v1687_v51  ;;  %v1707_v25 = vsel %vm1697_vm7, %v1693_v9, 1326507024 }
  0xc6   :  { %v1698_v28 = vsel %vm1694_vm5, %v1678_v17, %v1681_v24  ;;  %v1700_v56 = vsel %vm1696_vm8, %v1684_v53, %v1699_v12  ;;  %v1708_v35 = vsel %vm1696_vm8, %v1690_v7, %v1707_v25  ;;  %v2081_v20 = vand.u32 2139095040, %v7439_v50  ;;  %v138_v24 = vpop.permute.xlu0 %137 }
  0xc7   :  { %v6319_v27 = vadd.s32 4294967294, %v1938_v15  ;;  %v1709_v34 = vsel %vm1695_vm6, %v1706_v21, %v1708_v35  ;;  %v7468_v37 = vmul.u32.u64.low %v7443_v32, %v1705_v44  ;;  %v7469_v22 = vmul.u32.u64.high %v7443_v32, %v1705_v44, %v7468_v37  ;;  %v153_v15 = vpop.permute.xlu1 %152 }
  0xc8   :  { %v1631_v36 = vshll.u32 %v7406_v39, %v7434_v23  ;;  %v7476_v41 = vmul.u32.u64.low %v7443_v32, %v1709_v34  ;;  %v7477_v46 = vmul.u32.u64.high %v7443_v32, %v1709_v34, %v7476_v41  ;;  %v1849_v53 = vmul.f32 %v1848_v55, %v1846_v57 }
  0xc9   :  { %vm6320_vm9 = vcmp.lt.s32.totalorder %v6319_v27, 0  ;;  %v1701_v51 = vsel %vm1695_vm6, %v1698_v28, %v1700_v56  ;;  %v2082_v62 = vshrl.u32 %v2081_v20, 23  ;;  %v1637_v60 = vor.u32 4788187, %v1636_v19 }
  0xca   :  { %v1941_v10 = vsel %vm6320_vm9, 0, %v6319_v27  ;;  %v1926_v63 = vadd.s32 %v7411_v48, %v7418_v61  ;;  %v1633_v5 = vor.u32 %v1632_v54, %v1631_v36  ;;  %v1720_v39 = vadd.s32 1, %v7469_v22 }
  0xcb   :  { %v1942_v1 = vsub.s32 32, %v1941_v10  ;;  %v1946_v58 = vsub.s32 4294967266, %v1941_v10  ;;  %v6325_v23 = vadd.s32 4294967169, %v2082_v62  ;;  %v7484_v7 = vmul.f32 %v7265_v26, %v138_v24 }
  0xcc   :  { %v1717_v55 = vmul.u32 %v7443_v32, %v1701_v51  ;;  %vm1719_vm10 = vc.u32 %v7477_v46, %v7468_v37  ;;  %v1850_v43 = vxor.u32 2147483648, %v1849_v53  ;;  %v1943_v57 = vshll.u32 %v7451_v47, %v1941_v10 }
  0xcd   :  { %10541 = vst [vmem:[#allocation10_spill] sm:$0xff] %v7484_v7  ;;  %v1944_v9 = vshrl.u32 %v1926_v63, %v1942_v1  ;;  %v1947_v11 = vadd.s32 127, %v1946_v58  ;;  %v1721_v48 = vsel %vm1719_vm10, %v1720_v39, %v7469_v22  ;;  %v2088_v61 = vadd.s32 1, %v6325_v23 }
  0xce   :  { %v1638_v12 = vand.u32 2147483647, %v1637_v60  ;;  %v1722_v14 = vadd.s32 %v1721_v48, %v1717_v55  ;;  %v2085_v54 = vand.u32 8388607, %v2078_v3  ;;  %vm10329_vm11 = vcmp.lt.s32.totalorder %v7268_v29, 0 }
  0xcf   :  { %v1948_v13 = vshll.u32 %v1947_v11, 23  ;;  %v1945_v17 = vor.u32 %v1944_v9, %v1943_v57  ;;  %vm2089_vm12 = vcmp.gt.s32.totalorder %v2088_v61, 0  ;;  %v1640_v32 = vcvt.s32.f32 %v1633_v5 }
  0xd0   :  { %v1723_v19 = vadd.s32 536870912, %v1722_v14  ;;  %v2090_v44 = vsel %vm2089_vm12, %v2088_v61, 0  ;;  %v1851_v47 = vsel %vm10329_vm11, %v1850_v43, %v1849_v53  ;;  %v7497_v25 = vmul.f32 %v7265_v26, %v153_v15 }
  0xd1   :  { %v1949_v59 = vor.u32 4788187, %v1948_v13  ;;  %v2092_v21 = vand.u32 31, %v2090_v44  ;;  %v7499_v27 = vmul.f32 %v1640_v32, %v1638_v12  ;;  %v2086_v56 = vor.u32 8388608, %v2085_v54 }
  0xd2   :  { %10542 = vst [vmem:[#allocation11_spill] sm:$0xff] %v7497_v25  ;;  %v7501_v28 = vshrl.u32 %v1723_v19, 30  ;;  %v10269_v35 = vand.u32 2147483647, %v7484_v7  ;;  %v1952_v34 = vcvt.s32.f32 %v1945_v17  ;;  %v2091_v22 = vshrl.u32 %v2090_v44, 5 }
  0xd3   :  { %v2093_v20 = vsub.s32 32, %v2092_v21  ;;  %v1977_v36 = vand.u32 2139095040, %v7484_v7  ;;  %v1950_v41 = vand.u32 2147483647, %v1949_v59  ;;  %v2095_v53 = vshll.u32 %v10280_v0, %v2092_v21 }
  0xd4   :  { %v1725_v24 = vshll.u32 %v7501_v28, 30  ;;  %v2098_v10 = vshll.u32 %v10276_v2, %v2092_v21  ;;  %v2101_v60 = vshll.u32 %v10273_v4, %v2092_v21  ;;  %vm7514_vm13 = vcmp.le.f32.partialorder %v1766_v31, 0.7853982 }
  0xd5   :  { %v2096_v51 = vshrl.u32 %v10276_v2, %v2093_v20  ;;  %v2099_v62 = vshrl.u32 %v10273_v4, %v2093_v20  ;;  %v2102_v63 = vshrl.u32 %v10271_v6, %v2093_v20  ;;  %v2104_v5 = vshll.u32 %v10271_v6, %v2092_v21 }
  0xd6   :  { %v7518_v58 = vsub.s32 %v1722_v14, %v1725_v24  ;;  %v2105_v39 = vshrl.u32 %v10305_v8, %v2093_v20  ;;  %v2108_v23 = vshrl.u32 %v10278_v16, %v2093_v20  ;;  %v2107_v43 = vshll.u32 %v10305_v8, %v2092_v21 }
  0xd7   :  { %v2097_v9 = vor.u32 %v2096_v51, %v2095_v53  ;;  %v2100_v11 = vor.u32 %v2099_v62, %v2098_v10  ;;  %v2103_v55 = vor.u32 %v2102_v63, %v2101_v60  ;;  %v2126_v31 = vshll.u32 %v2086_v56, 8 }
  0xd8   :  { %v1728_v57 = vsub.s32 0, %v7518_v58  ;;  %v2106_v48 = vor.u32 %v2105_v39, %v2104_v5  ;;  %v1981_v61 = vand.u32 8388607, %v10269_v35  ;;  %v1953_v12 = vmul.f32 %v1952_v34, %v1950_v41 }
  0xd9   :  { %v2109_v13 = vor.u32 %v2108_v23, %v2107_v43  ;;  %vm2113_vm14 = vcmp.lt.s32.totalorder %v2091_v22, 4  ;;  %v1978_v14 = vshrl.u32 %v1977_v36, 23  ;;  %v2094_v15 = vshrl.u32 %v10280_v0, %v2093_v20 }
  0xda   :  { %v6310_v54 = vmin.u32 %v1728_v57, %v7518_v58  ;;  %vm2110_vm15 = vcmp.lt.s32.totalorder %v2091_v22, 1  ;;  %v2115_v17 = vsel %vm2113_vm14, %v2103_v55, 2102212464  ;;  %vm2111_vm0 = vcmp.lt.s32.totalorder %v2091_v22, 2 }
  0xdb   :  { %vm2112_vm1 = vcmp.lt.s32.totalorder %v2091_v22, 3  ;;  %v2118_v32 = vsel %vm2110_vm15, %v2097_v9, %v2100_v11  ;;  %v2119_v59 = vsel %vm2113_vm14, %v2106_v48, 920167782  ;;  %v2114_v44 = vsel %vm2110_vm15, %v2094_v15, %v2097_v9 }
  0xdc   :  { %v1730_v19 = vclz %v6310_v54  ;;  %v2120_v21 = vsel %vm2112_vm1, %v2103_v55, %v2119_v59  ;;  %v2122_v56 = vsel %vm2110_vm15, %v2100_v11, %v2103_v55  ;;  %v2116_v34 = vsel %vm2112_vm1, %v2100_v11, %v2115_v17  ;;  %v148_v54 = vpop.permute.xlu0 %147 }
  0xdd   :  { %v2121_v41 = vsel %vm2111_vm0, %v2118_v32, %v2120_v21  ;;  %v2123_v36 = vsel %vm2113_vm14, %v2109_v13, 1326507024  ;;  %v6321_v24 = vadd.s32 4294967169, %v1978_v14  ;;  %v1854_v62 = vsel %vm7514_vm13, %v7268_v29, %v1851_v47 }
  0xde   :  { %v6311_v53 = vadd.s32 4294967294, %v1730_v19  ;;  %v2124_v20 = vsel %vm2112_vm1, %v2106_v48, %v2123_v36  ;;  %v7533_v10 = vmul.u32.u64.low %v2126_v31, %v2121_v41  ;;  %v7534_v51 = vmul.u32.u64.high %v2126_v31, %v2121_v41, %v7533_v10 }
  0xdf   :  { %vm10347_vm2 = vcmp.lt.s32.totalorder %v7271_v30, 0  ;;  %v2125_v60 = vsel %vm2111_vm0, %v2122_v56, %v2124_v20  ;;  %v1984_v63 = vadd.s32 1, %v6321_v24  ;;  %v1642_v5 = vxor.u32 2147483648, %v7499_v27 }
  0xe0   :  { %vm6312_vm3 = vcmp.lt.s32.totalorder %v6311_v53, 0  ;;  %v7543_v39 = vmul.u32.u64.low %v2126_v31, %v2125_v60  ;;  %v7544_v23 = vmul.u32.u64.high %v2126_v31, %v2125_v60, %v7543_v39  ;;  %v1954_v9 = vxor.u32 2147483648, %v1953_v12 }
  0xe1   :  { %v7546_v11 = vsel %vm6312_vm3, 0, %v6311_v53  ;;  %v2117_v55 = vsel %vm2111_vm0, %v2114_v44, %v2116_v34  ;;  %vm1985_vm4 = vcmp.gt.s32.totalorder %v1984_v63, 0  ;;  %vm10313_vm5 = vcmp.lt.s32.totalorder %v7280_v38, 0 }
  0xe2   :  { %v2136_v47 = vadd.s32 1, %v7534_v51  ;;  %v1982_v43 = vor.u32 8388608, %v1981_v61  ;;  %v10268_v57 = vand.u32 2147483647, %v7497_v25  ;;  %7012 = vcosq.f32 %v1854_v62 }
  0xe3   :  { %v1738_v48 = vsub.s32 4294967266, %v7546_v11  ;;  %v1986_v13 = vsel %vm1985_vm4, %v1984_v63, 0  ;;  %v2289_v14 = vand.u32 2139095040, %v7497_v25  ;;  %7014 = vsinq.f32 %v1854_v62 }
  0xe4   :  { %v7557_v22 = vsel %vm10347_vm2, %v1642_v5, %v7499_v27  ;;  %v2133_v15 = vmul.u32 %v2126_v31, %v2117_v55  ;;  %vm2135_vm6 = vc.u32 %v7544_v23, %v7533_v10  ;;  %v7563_v61 = vsel %vm10313_vm5, %v1954_v9, %v1953_v12 }
  0xe5   :  { %v1718_v17 = vadd.s32 %v7468_v37, %v7477_v46  ;;  %v2137_v32 = vsel %vm2135_vm6, %v2136_v47, %v7534_v51  ;;  %v1988_v59 = vand.u32 31, %v1986_v13  ;;  %v7568_v44 = vshll.u32 %v1982_v43, 8 }
  0xe6   :  { %v2138_v19 = vadd.s32 %v2137_v32, %v2133_v15  ;;  %v7572_v27 = vand.u32 8388607, %v10268_v57  ;;  %v7575_v31 = vmul.f32 %v7265_v26, %v148_v54  ;;  %v1734_v21 = vsub.s32 32, %v7546_v11 }
  0xe7   :  { %v1739_v12 = vadd.s32 127, %v1738_v48  ;;  %v1989_v56 = vsub.s32 32, %v1988_v59  ;;  %v2290_v34 = vshrl.u32 %v2289_v14, 23  ;;  %v1987_v37 = vshrl.u32 %v1986_v13, 5 }
  0xe8   :  { %10545 = vst [vmem:[#allocation12_spill] sm:$0xff] %v7575_v31  ;;  %v2139_v41 = vadd.s32 536870912, %v2138_v19  ;;  %v1991_v46 = vshll.u32 %v10280_v0, %v1988_v59  ;;  %v1994_v36 = vshll.u32 %v10276_v2, %v1988_v59  ;;  %v1997_v20 = vshll.u32 %v10273_v4, %v1988_v59 }
  0xe9   :  { %v1992_v24 = vshrl.u32 %v10276_v2, %v1989_v56  ;;  %v1995_v53 = vshrl.u32 %v10273_v4, %v1989_v56  ;;  %v1998_v26 = vshrl.u32 %v10271_v6, %v1989_v56  ;;  %v2000_v62 = vshll.u32 %v10271_v6, %v1988_v59 }
  0xea   :  { %v7584_v51 = vshrl.u32 %v2139_v41, 30  ;;  %v2001_v60 = vshrl.u32 %v10305_v8, %v1989_v56  ;;  %v2003_v63 = vshll.u32 %v10305_v8, %v1988_v59  ;;  %v2004_v55 = vshrl.u32 %v10278_v16, %v1989_v56 }
  0xeb   :  { %v1993_v5 = vor.u32 %v1992_v24, %v1991_v46  ;;  %v1996_v39 = vor.u32 %v1995_v53, %v1994_v36  ;;  %v1999_v9 = vor.u32 %v1998_v26, %v1997_v20  ;;  %vm7592_vm7 = vcmp.le.f32.partialorder %v1558_v33, 0.7853982 }
  0xec   :  { %10546 = vst [vmem:[#allocation13_spill] sm:$0xff] %v7584_v51  ;;  %v1735_v43 = vshll.u32 %v7518_v58, %v7546_v11  ;;  %v2141_v48 = vshll.u32 %v7584_v51, 30  ;;  %v2002_v13 = vor.u32 %v2001_v60, %v2000_v62  ;;  %v2294_v14 = vor.u32 8388608, %v7572_v27  ;;  %v7600_v54 = vpop.eup %7012 }
  0xed   :  { %10549 = vst [vmem:[#allocation14_spill] sm:$0xff] %v7600_v54  ;;  %vm7604_vm8 = vcmp.le.f32.partialorder %v1870_v42, 0.7853982  ;;  %v10550_v15 = vmov 0  ;;  %v1736_v33 = vshrl.u32 %v1718_v17, %v1734_v21  ;;  %v1740_v32 = vshll.u32 %v1739_v12, 23  ;;  %v7608_v46 = vpop.eup %7014 }
  0xee   :  { %v10551_v15 = vsel %vm7604_vm8, 4294967295, %v10550_v15  ;;  %v2005_v59 = vor.u32 %v2004_v55, %v2003_v63  ;;  %v6333_v41 = vadd.s32 4294967169, %v2290_v34  ;;  %10553 = vst [vmem:[#allocation16_spill] sm:$0xff] %v7608_v46  ;;  %v7610_v58 = vsub.s32 %v2138_v19, %v2141_v48 }
  0xef   :  { %10552 = vst [vmem:[#allocation15_spill] sm:$0xff] %v10551_v15  ;;  %v1990_v11 = vshrl.u32 %v10280_v0, %v1989_v56  ;;  %vm2006_vm9 = vcmp.lt.s32.totalorder %v1987_v37, 1  ;;  %vm2009_vm10 = vcmp.lt.s32.totalorder %v1987_v37, 4  ;;  %vm2008_vm12 = vcmp.lt.s32.totalorder %v1987_v37, 3 }
  0xf0   :  { %v2011_v27 = vsel %vm2009_vm10, %v1999_v9, 2102212464  ;;  %v2014_v36 = vsel %vm2006_vm9, %v1993_v5, %v1996_v39  ;;  %v2015_v24 = vsel %vm2009_vm10, %v2002_v13, 920167782  ;;  %v2144_v42 = vsub.s32 0, %v7610_v58 }
  0xf1   :  { %vm2007_vm14 = vcmp.lt.s32.totalorder %v1987_v37, 2  ;;  %v2016_v53 = vsel %vm2008_vm12, %v1999_v9, %v2015_v24  ;;  %v2018_v17 = vsel %vm2006_vm9, %v1996_v39, %v1999_v9  ;;  %v1741_v21 = vor.u32 4788187, %v1740_v32 }
  0xf2   :  { %v2010_v12 = vsel %vm2006_vm9, %v1990_v11, %v1993_v5  ;;  %v2017_v34 = vsel %vm2007_vm14, %v2014_v36, %v2016_v53  ;;  %v2019_v20 = vsel %vm2009_vm10, %v2005_v59, 1326507024  ;;  %v6326_v19 = vmin.u32 %v2144_v42, %v7610_v58 }
  0xf3   :  { %v2012_v26 = vsel %vm2008_vm12, %v1996_v39, %v2011_v27  ;;  %v2020_v56 = vsel %vm2008_vm12, %v2002_v13, %v2019_v20  ;;  %v2296_v62 = vadd.s32 1, %v6333_v41  ;;  %v1737_v60 = vor.u32 %v1736_v33, %v1735_v43 }
  0xf4   :  { %v2021_v63 = vsel %vm2007_vm14, %v2018_v17, %v2020_v56  ;;  %v7618_v55 = vmul.u32.u64.low %v7568_v44, %v2017_v34  ;;  %v7619_v48 = vmul.u32.u64.high %v7568_v44, %v2017_v34, %v7618_v55  ;;  %v2146_v24 = vclz %v6326_v19 }
  0xf5   :  { %v7623_v9 = vmul.u32.u64.low %v7568_v44, %v2021_v63  ;;  %v7624_v5 = vmul.u32.u64.high %v7568_v44, %v2021_v63, %v7623_v9  ;;  %vm2297_vm15 = vcmp.gt.s32.totalorder %v2296_v62, 0  ;;  %v7630_v39 = vsel %vm7592_vm7, %v7271_v30, %v7557_v22 }
  0xf6   :  { %v1742_v43 = vand.u32 2147483647, %v1741_v21  ;;  %v2013_v13 = vsel %vm2007_vm14, %v2010_v12, %v2012_v26  ;;  %v2298_v33 = vsel %vm2297_vm15, %v2296_v62, 0  ;;  %v7637_v32 = vsel %vm7604_vm8, %v7280_v38, %v7563_v61 }
  0xf7   :  { %v6327_v59 = vadd.s32 4294967294, %v2146_v24  ;;  %v2300_v41 = vand.u32 31, %v2298_v33  ;;  %v10270_v11 = vand.u32 2147483647, %v7575_v31  ;;  %v1744_v27 = vcvt.s32.f32 %v1737_v60 }
  0xf8   :  { %v2134_v36 = vadd.s32 %v7533_v10, %v7544_v23  ;;  %v2032_v22 = vadd.s32 1, %v7619_v48  ;;  %v7643_v42 = vshll.u32 %v2294_v14, 8  ;;  %v2029_v37 = vmul.u32 %v7568_v44, %v2013_v13 }
  0xf9   :  { %vm6328_vm0 = vcmp.lt.s32.totalorder %v6327_v59, 0  ;;  %vm2031_vm1 = vc.u32 %v7624_v5, %v7618_v55  ;;  %v2301_v61 = vsub.s32 32, %v2300_v41  ;;  %v7648_v53 = vmul.f32 %v1744_v27, %v1742_v43 }
  0xfa   :  { %v2149_v17 = vsel %vm6328_vm0, 0, %v6327_v59  ;;  %v2033_v21 = vsel %vm2031_vm1, %v2032_v22, %v7619_v48  ;;  %v2185_v12 = vand.u32 2139095040, %v7575_v31  ;;  %v2299_v20 = vshrl.u32 %v2298_v33, 5 }
  0xfb   :  { %v2150_v34 = vsub.s32 32, %v2149_v17  ;;  %v2154_v10 = vsub.s32 4294967266, %v2149_v17  ;;  %v2034_v23 = vadd.s32 %v2033_v21, %v2029_v37  ;;  %v2303_v14 = vshll.u32 %v10280_v0, %v2300_v41 }
  0xfc   :  { %v2304_v19 = vshrl.u32 %v10276_v2, %v2301_v61  ;;  %v2306_v44 = vshll.u32 %v10276_v2, %v2300_v41  ;;  %v2307_v26 = vshrl.u32 %v10273_v4, %v2301_v61  ;;  %v2151_v56 = vshll.u32 %v7610_v58, %v2149_v17 }
  0xfd   :  { %v2155_v62 = vadd.s32 127, %v2154_v10  ;;  %v2035_v60 = vadd.s32 536870912, %v2034_v23  ;;  %v2310_v63 = vshrl.u32 %v10271_v6, %v2301_v61  ;;  %v2152_v48 = vshrl.u32 %v2134_v36, %v2150_v34 }
  0xfe   :  { %v2309_v24 = vshll.u32 %v10273_v4, %v2300_v41  ;;  %v2312_v9 = vshll.u32 %v10271_v6, %v2300_v41  ;;  %v2313_v43 = vshrl.u32 %v10305_v8, %v2301_v61  ;;  %v2305_v59 = vor.u32 %v2304_v19, %v2303_v14 }
  0xff   :  { %v2156_v13 = vshll.u32 %v2155_v62, 23  ;;  %v7661_v33 = vshrl.u32 %v2035_v60, 30  ;;  %v2308_v27 = vor.u32 %v2307_v26, %v2306_v44  ;;  %v2315_v58 = vshll.u32 %v10305_v8, %v2300_v41 }
 0x100   :  { %v2311_v22 = vor.u32 %v2310_v63, %v2309_v24  ;;  %v2314_v37 = vor.u32 %v2313_v43, %v2312_v9  ;;  %v2316_v17 = vshrl.u32 %v10278_v16, %v2301_v61  ;;  %v1746_v21 = vxor.u32 2147483648, %v7648_v53 }
 0x101   :  { %10554 = vst [vmem:[#allocation17_spill] sm:$0xff] %v7661_v33  ;;  %v2157_v36 = vor.u32 4788187, %v2156_v13  ;;  %v2037_v34 = vshll.u32 %v7661_v33, 30  ;;  %v2186_v10 = vshrl.u32 %v2185_v12, 23  ;;  %v2153_v57 = vor.u32 %v2152_v48, %v2151_v56 }
 0x102   :  { %v2302_v35 = vshrl.u32 %v10280_v0, %v2301_v61  ;;  %v2317_v62 = vor.u32 %v2316_v17, %v2315_v58  ;;  %vm2318_vm3 = vcmp.lt.s32.totalorder %v2299_v20, 1  ;;  %vm2320_vm4 = vcmp.lt.s32.totalorder %v2299_v20, 3 }
 0x103   :  { %v7668_v60 = vsub.s32 %v2034_v23, %v2037_v34  ;;  %vm2321_vm6 = vcmp.lt.s32.totalorder %v2299_v20, 4  ;;  %v2326_v14 = vsel %vm2318_vm3, %v2305_v59, %v2308_v27  ;;  %v2330_v44 = vsel %vm2318_vm3, %v2308_v27, %v2311_v22  ;;  %v163_v34 = vpop.permute.xlu1 %162 }
 0x104   :  { %v2323_v41 = vsel %vm2321_vm6, %v2311_v22, 2102212464  ;;  %v2327_v19 = vsel %vm2321_vm6, %v2314_v37, 920167782  ;;  %v2331_v26 = vsel %vm2321_vm6, %v2317_v62, 1326507024  ;;  %v2160_v61 = vcvt.s32.f32 %v2153_v57 }
 0x105   :  { %v2158_v63 = vand.u32 2147483647, %v2157_v36  ;;  %v2040_v24 = vsub.s32 0, %v7668_v60  ;;  %vm2319_vm9 = vcmp.lt.s32.totalorder %v2299_v20, 2  ;;  %v2328_v12 = vsel %vm2320_vm4, %v2311_v22, %v2327_v19 }
 0x106   :  { %v2329_v56 = vsel %vm2319_vm9, %v2326_v14, %v2328_v12  ;;  %v2332_v23 = vsel %vm2320_vm4, %v2314_v37, %v2331_v26  ;;  %v6329_v48 = vadd.s32 4294967169, %v2186_v10  ;;  %v2322_v43 = vsel %vm2318_vm3, %v2302_v35, %v2305_v59  ;;  %v7701_v14 = vld [vmem:[%s10262_s1] ss:$0 sm:$0xff] }
 0x107   :  { %v6322_v9 = vmin.u32 %v2040_v24, %v7668_v60  ;;  %v2324_v13 = vsel %vm2320_vm4, %v2308_v27, %v2323_v41  ;;  %v2333_v58 = vsel %vm2319_vm9, %v2330_v44, %v2332_v23  ;;  %7016 = vcosq.f32 %v7630_v39 }
 0x108   :  { %v7681_v17 = vmul.u32.u64.low %v7643_v42, %v2333_v58  ;;  %v7682_v36 = vmul.u32.u64.high %v7643_v42, %v2333_v58, %v7681_v17  ;;  %v7685_v22 = vmul.u32.u64.low %v7643_v42, %v2329_v56  ;;  %v7686_v57 = vmul.u32.u64.high %v7643_v42, %v2329_v56, %v7685_v22 }
 0x109   :  { %v7690_v37 = vmul.f32 %v2160_v61, %v2158_v63  ;;  %v2042_v10 = vclz %v6322_v9  ;;  %v2192_v35 = vadd.s32 1, %v6329_v48  ;;  %7018 = vsinq.f32 %v7630_v39 }
 0x10a   :  { %vm10338_vm10 = vcmp.lt.s32.totalorder %v7291_v52, 0  ;;  %v2325_v59 = vsel %vm2319_vm9, %v2322_v43, %v2324_v13  ;;  %v2189_v27 = vand.u32 8388607, %v10270_v11  ;;  %7020 = vcosq.f32 %v7637_v32 }
 0x10b   :  { %v6323_v62 = vadd.s32 4294967294, %v2042_v10  ;;  %vm2193_vm12 = vcmp.gt.s32.totalorder %v2192_v35, 0  ;;  %v7704_v41 = vmul.f32 %v7701_v14, %v163_v34  ;;  %v7709_v39 = vsel %vm10338_vm10, %v1746_v21, %v7648_v53 }
 0x10c   :  { %v2030_v20 = vadd.s32 %v7618_v55, %v7624_v5  ;;  %vm2343_vm14 = vc.u32 %v7682_v36, %v7685_v22  ;;  %v2344_v19 = vadd.s32 1, %v7686_v57  ;;  %v2162_v44 = vxor.u32 2147483648, %v7690_v37 }
 0x10d   :  { %10555 = vst [vmem:[#allocation18_spill] sm:$0xff] %v7704_v41  ;;  %vm6324_vm15 = vcmp.lt.s32.totalorder %v6323_v62, 0  ;;  %v2341_v26 = vmul.u32 %v7643_v42, %v2325_v59  ;;  %v2194_v63 = vsel %vm2193_vm12, %v2192_v35, 0  ;;  %v2190_v61 = vor.u32 8388608, %v2189_v27 }
 0x10e   :  { %v2045_v24 = vsel %vm6324_vm15, 0, %v6323_v62  ;;  %v2345_v12 = vsel %vm2343_vm14, %v2344_v19, %v7686_v57  ;;  %v2196_v53 = vand.u32 31, %v2194_v63  ;;  %v2497_v55 = vand.u32 2139095040, %v7704_v41 }
 0x10f   :  { %v2046_v21 = vsub.s32 32, %v2045_v24  ;;  %v2050_v56 = vsub.s32 4294967266, %v2045_v24  ;;  %v2346_v23 = vadd.s32 %v2345_v12, %v2341_v26  ;;  %v2047_v5 = vshll.u32 %v7668_v60, %v2045_v24 }
 0x110   :  { %v7721_v48 = vshrl.u32 %v2194_v63, 5  ;;  %v2197_v9 = vsub.s32 32, %v2196_v53  ;;  %v2199_v43 = vshll.u32 %v10280_v0, %v2196_v53  ;;  %v2202_v17 = vshll.u32 %v10276_v2, %v2196_v53 }
 0x111   :  { %v2048_v13 = vshrl.u32 %v2030_v20, %v2046_v21  ;;  %v2051_v42 = vadd.s32 127, %v2050_v56  ;;  %v2347_v58 = vadd.s32 536870912, %v2346_v23  ;;  %v2205_v10 = vshll.u32 %v10273_v4, %v2196_v53  ;;  %v7729_v59 = vpop.eup %7016 }
 0x112   :  { %v2200_v57 = vshrl.u32 %v10276_v2, %v2197_v9  ;;  %v2203_v34 = vshrl.u32 %v10273_v4, %v2197_v9  ;;  %v2206_v35 = vshrl.u32 %v10271_v6, %v2197_v9  ;;  %10556 = vst [vmem:[#allocation19_spill] sm:$0xff] %v7729_v59  ;;  %v2208_v62 = vshll.u32 %v10271_v6, %v2196_v53 }
 0x113   :  { %v2052_v60 = vshll.u32 %v2051_v42, 23  ;;  %v7731_v27 = vshrl.u32 %v2347_v58, 30  ;;  %v2209_v20 = vshrl.u32 %v10305_v8, %v2197_v9  ;;  %v7735_v19 = vpop.eup %7018  ;;  %vm10303_vm0 = vcmp.lt.s32.totalorder %v7439_v50, 0 }
 0x114   :  { %10558 = vst [vmem:[#allocation21_spill] sm:$0xff] %v7735_v19  ;;  %v2201_v26 = vor.u32 %v2200_v57, %v2199_v43  ;;  %v2204_v63 = vor.u32 %v2203_v34, %v2202_v17  ;;  %v2207_v24 = vor.u32 %v2206_v35, %v2205_v10  ;;  %v7738_v12 = vshll.u32 %v2190_v61, 8  ;;  %v7740_v21 = vpop.eup %7020 }
 0x115   :  { %10557 = vst [vmem:[#allocation20_spill] sm:$0xff] %v7731_v27  ;;  %10559 = vst [vmem:[#allocation22_spill] sm:$0xff] %v7740_v21  ;;  %v2049_v56 = vor.u32 %v2048_v13, %v2047_v5  ;;  %v2349_v42 = vshll.u32 %v7731_v27, 30  ;;  %v2210_v58 = vor.u32 %v2209_v20, %v2208_v62  ;;  %v2498_v11 = vshrl.u32 %v2497_v55, 23 }
 0x116   :  { %vm7745_vm1 = vcmp.le.f32.partialorder %v1662_v45, 0.7853982  ;;  %v2053_v4 = vor.u32 4788187, %v2052_v60  ;;  %v2198_v43 = vshrl.u32 %v10280_v0, %v2197_v9  ;;  %v2211_v17 = vshll.u32 %v10305_v8, %v2196_v53 }
 0x117   :  { %v2212_v61 = vshrl.u32 %v10278_v16, %v2197_v9  ;;  %vm7754_vm3 = vcmp.le.f32.partialorder %v2078_v3, 0.7853982  ;;  %v10562_v5 = vmov 0  ;;  %v7758_v55 = vsub.s32 %v2346_v23, %v2349_v42 }
 0x118   :  { %v10563_v5 = vsel %vm7754_vm3, 4294967295, %v10562_v5  ;;  %vm2214_vm4 = vcmp.lt.s32.totalorder %v7721_v48, 1  ;;  %vm2216_vm6 = vcmp.lt.s32.totalorder %v7721_v48, 3  ;;  %vm2217_vm9 = vcmp.lt.s32.totalorder %v7721_v48, 4 }
 0x119   :  { %10564 = vst [vmem:[#allocation23_spill] sm:$0xff] %v10563_v5  ;;  %v2213_v45 = vor.u32 %v2212_v61, %v2211_v17  ;;  %v2219_v13 = vsel %vm2217_vm9, %v2207_v24, 2102212464  ;;  %v2222_v53 = vsel %vm2214_vm4, %v2201_v26, %v2204_v63  ;;  %v2223_v9 = vsel %vm2217_vm9, %v2210_v58, 920167782 }
 0x11a   :  { %v2056_v57 = vcvt.s32.f32 %v2049_v56  ;;  %v2352_v3 = vsub.s32 0, %v7758_v55  ;;  %vm2215_vm12 = vcmp.lt.s32.totalorder %v7721_v48, 2  ;;  %v2224_v23 = vsel %vm2216_vm6, %v2207_v24, %v2223_v9 }
 0x11b   :  { %v2054_v34 = vand.u32 2147483647, %v2053_v4  ;;  %v2225_v10 = vsel %vm2215_vm12, %v2222_v53, %v2224_v23  ;;  %v2226_v35 = vsel %vm2214_vm4, %v2204_v63, %v2207_v24  ;;  %v2227_v60 = vsel %vm2217_vm9, %v2213_v45, 1326507024  ;;  %v158_v45 = vpop.permute.xlu0 %157 }
 0x11c   :  { %v6334_v62 = vmin.u32 %v2352_v3, %v7758_v55  ;;  %v2218_v20 = vsel %vm2214_vm4, %v2198_v43, %v2201_v26  ;;  %v2220_v56 = vsel %vm2216_vm6, %v2204_v63, %v2219_v13  ;;  %v2228_v42 = vsel %vm2216_vm6, %v2210_v58, %v2227_v60 }
 0x11d   :  { %v2229_v4 = vsel %vm2215_vm12, %v2226_v35, %v2228_v42  ;;  %v7783_v17 = vmul.u32.u64.low %v7738_v12, %v2225_v10  ;;  %v7784_v61 = vmul.u32.u64.high %v7738_v12, %v2225_v10, %v7783_v17  ;;  %v6341_v24 = vadd.s32 4294967169, %v2498_v11 }
 0x11e   :  { %v2163_v26 = vsel %vm10303_vm0, %v2162_v44, %v7690_v37  ;;  %v2354_v63 = vclz %v6334_v62  ;;  %v7793_v43 = vmul.u32.u64.low %v7738_v12, %v2229_v4  ;;  %v7794_v58 = vmul.u32.u64.high %v7738_v12, %v2229_v4, %v7793_v43 }
 0x11f   :  { %7022 = vsinq.f32 %v7637_v32  ;;  %v7797_v13 = vmul.f32 %v2056_v57, %v2054_v34  ;;  %v2221_v53 = vsel %vm2215_vm12, %v2218_v20, %v2220_v56  ;;  %v2504_v11 = vadd.s32 1, %v6341_v24 }
 0x120   :  { %v7805_v9 = vsel %vm7745_vm1, %v7291_v52, %v7709_v39  ;;  %v6335_v37 = vadd.s32 4294967294, %v2354_v63  ;;  %v10275_v44 = vand.u32 2147483647, %v7704_v41  ;;  %v7809_v3 = vmul.f32 %v7701_v14, %v158_v45 }
 0x121   :  { %v7814_v32 = vsel %vm7754_vm3, %v7439_v50, %v2163_v26  ;;  %v2342_v48 = vadd.s32 %v7685_v22, %v7682_v36  ;;  %v2240_v57 = vadd.s32 1, %v7784_v61  ;;  %vm2505_vm14 = vcmp.gt.s32.totalorder %v2504_v11, 0 }
 0x122   :  { %10565 = vst [vmem:[#allocation24_spill] sm:$0xff] %v7809_v3  ;;  %vm6336_vm15 = vcmp.lt.s32.totalorder %v6335_v37, 0  ;;  %v2237_v39 = vmul.u32 %v7738_v12, %v2221_v53  ;;  %vm2239_vm4 = vc.u32 %v7794_v58, %v7783_v17  ;;  %v2506_v23 = vsel %vm2505_vm14, %v2504_v11, 0 }
 0x123   :  { %v2357_v10 = vsel %vm6336_vm15, 0, %v6335_v37  ;;  %v2241_v35 = vsel %vm2239_vm4, %v2240_v57, %v7784_v61  ;;  %v2508_v60 = vand.u32 31, %v2506_v23  ;;  %v2501_v36 = vand.u32 8388607, %v10275_v44 }
 0x124   :  { %v2358_v62 = vsub.s32 32, %v2357_v10  ;;  %v2362_v20 = vsub.s32 4294967266, %v2357_v10  ;;  %v2242_v56 = vadd.s32 %v2241_v35, %v2237_v39  ;;  %v2359_v22 = vshll.u32 %v7758_v55, %v2357_v10 }
 0x125   :  { %v7827_v42 = vshrl.u32 %v2506_v23, 5  ;;  %v2509_v12 = vsub.s32 32, %v2508_v60  ;;  %v2511_v4 = vshll.u32 %v10280_v0, %v2508_v60  ;;  %v2514_v63 = vshll.u32 %v10276_v2, %v2508_v60 }
 0x126   :  { %v2360_v24 = vshrl.u32 %v2342_v48, %v2358_v62  ;;  %v2363_v45 = vadd.s32 127, %v2362_v20  ;;  %v2243_v26 = vadd.s32 536870912, %v2242_v56  ;;  %v10566_v43 = vmov 2131351028  }
 0x127   :  { %v2512_v61 = vshrl.u32 %v10276_v2, %v2509_v12  ;;  %v2515_v53 = vshrl.u32 %v10566_v43, %v2509_v12  ;;  %v2517_v11 = vshll.u32 %v10566_v43, %v2508_v60  ;;  %v10567_v37 = vmov 2102212464  }
 0x128   :  { %v2518_v57 = vshrl.u32 %v10567_v37, %v2509_v12  ;;  %v2364_v39 = vshll.u32 %v2363_v45, 23  ;;  %v7835_v55 = vshrl.u32 %v2243_v26, 30  ;;  %v2520_v23 = vshll.u32 %v10567_v37, %v2508_v60 }
 0x129   :  { %v2521_v10 = vshrl.u32 %v10305_v8, %v2509_v12  ;;  %v7839_v48 = vpop.eup %7022  ;;  %v2361_v35 = vor.u32 %v2360_v24, %v2359_v22  ;;  %v2513_v62 = vor.u32 %v2512_v61, %v2511_v4  ;;  %v2516_v20 = vor.u32 %v2515_v53, %v2514_v63 }
 0x12a   :  { %10568 = vst [vmem:[#allocation25_spill] sm:$0xff] %v7835_v55  ;;  %10569 = vst [vmem:[#allocation26_spill] sm:$0xff] %v7839_v48  ;;  %v2393_v44 = vand.u32 2139095040, %v7809_v3  ;;  %v2365_v2 = vor.u32 4788187, %v2364_v39  ;;  %v2245_v34 = vshll.u32 %v7835_v55, 30  ;;  %v2519_v16 = vor.u32 %v2518_v57, %v2517_v11 }
 0x12b   :  { %v2522_v0 = vor.u32 %v2521_v10, %v2520_v23  ;;  %v2502_v27 = vor.u32 8388608, %v2501_v36  ;;  %v10570_v45 = vmov 683565275   ;;  %v2523_v5 = vshll.u32 %v10305_v8, %v2508_v60  ;;  %v173_v23 = vpop.permute.xlu1 %172 }
 0x12c   :  { %v2510_v26 = vshrl.u32 %v10570_v45, %v2509_v12  ;;  %v10571_v50 = vmov 1326507024   ;;  %vm10304_vm6 = vcmp.lt.s32.totalorder %v7484_v7, 0  ;;  %v7847_v33 = vsub.s32 %v2242_v56, %v2245_v34 }
 0x12d   :  { %v2524_v51 = vshrl.u32 %v10571_v50, %v2509_v12  ;;  %vm2526_vm9 = vcmp.lt.s32.totalorder %v7827_v42, 1  ;;  %vm2528_vm12 = vcmp.lt.s32.totalorder %v7827_v42, 3  ;;  %vm2529_vm14 = vcmp.lt.s32.totalorder %v7827_v42, 4 }
 0x12e   :  { %v2366_v22 = vand.u32 2147483647, %v2365_v2  ;;  %v2534_v24 = vsel %vm2526_vm9, %v2513_v62, %v2516_v20  ;;  %v2535_v36 = vsel %vm2529_vm14, %v2522_v0, 920167782  ;;  %v2368_v63 = vcvt.s32.f32 %v2361_v35 }
 0x12f   :  { %v2525_v4 = vor.u32 %v2524_v51, %v2523_v5  ;;  %v2248_v61 = vsub.s32 0, %v7847_v33  ;;  %v2531_v60 = vsel %vm2529_vm14, %v2519_v16, 2102212464  ;;  %v2536_v12 = vsel %vm2528_vm12, %v2519_v16, %v2535_v36 }
 0x130   :  { %vm2527_vm15 = vcmp.lt.s32.totalorder %v7827_v42, 2  ;;  %v2530_v34 = vsel %vm2526_vm9, %v2510_v26, %v2513_v62  ;;  %v2538_v56 = vsel %vm2526_vm9, %v2516_v20, %v2519_v16  ;;  %v10572_v11 = vand.u32 2147483647, %v7484_v7 }
 0x131   :  { %v2539_v53 = vsel %vm2529_vm14, %v2525_v4, 1326507024  ;;  %v10573_v57 = vmov 0  ;;  %v6330_v2 = vmin.u32 %v2248_v61, %v7847_v33  ;;  %v2537_v51 = vsel %vm2527_vm15, %v2534_v24, %v2536_v12 }
 0x132   :  { %vm7858_vm4 = vcmp.le.f32.partialorder %v10572_v11, 0.7853982  ;;  %v2540_v5 = vsel %vm2528_vm12, %v2522_v0, %v2539_v53  ;;  %v2542_v39 = vshll.u32 %v2502_v27, 8  ;;  %v2369_v10 = vmul.f32 %v2368_v63, %v2366_v22 }
 0x133   :  { %v10574_v57 = vsel %vm7858_vm4, 4294967295, %v10573_v57  ;;  %v2532_v16 = vsel %vm2528_vm12, %v2516_v20, %v2531_v60  ;;  %v2541_v35 = vsel %vm2527_vm15, %v2538_v56, %v2540_v5  ;;  %v2394_v62 = vshrl.u32 %v2393_v44, 23 }
 0x134   :  { %10575 = vst [vmem:[#allocation27_spill] sm:$0xff] %v10574_v57  ;;  %vm10302_vm9 = vcmp.lt.s32.totalorder %v7497_v25, 0  ;;  %v2250_v26 = vclz %v6330_v2  ;;  %v7872_v4 = vmul.u32.u64.low %v2542_v39, %v2541_v35  ;;  %v7873_v36 = vmul.u32.u64.high %v2542_v39, %v2541_v35, %v7872_v4 }
 0x135   :  { %v10292_v24 = vand.u32 2147483647, %v7809_v3  ;;  %7024 = vcosq.f32 %v7805_v9  ;;  %v7877_v0 = vmul.u32.u64.low %v2542_v39, %v2537_v51  ;;  %v7878_v27 = vmul.u32.u64.high %v2542_v39, %v2537_v51, %v7877_v0 }
 0x136   :  { %v7882_v20 = vmul.f32 %v7701_v14, %v173_v23  ;;  %7026 = vsinq.f32 %v7805_v9  ;;  %v6331_v44 = vadd.s32 4294967294, %v2250_v26  ;;  %v2533_v22 = vsel %vm2527_vm15, %v2530_v34, %v2532_v16 }
 0x137   :  { %v6337_v63 = vadd.s32 4294967169, %v2394_v62  ;;  %7028 = vcosq.f32 %v7814_v32  ;;  %v10577_v61 = vxor.u32 2147483648, %v7797_v13  ;;  %v2370_v12 = vxor.u32 2147483648, %v2369_v10 }
 0x138   :  { %10576 = vst [vmem:[#allocation28_spill] sm:$0xff] %v7882_v20  ;;  %v2238_v56 = vadd.s32 %v7783_v17, %v7794_v58  ;;  %vm6332_vm12 = vcmp.lt.s32.totalorder %v6331_v44, 0  ;;  %vm2551_vm14 = vc.u32 %v7873_v36, %v7877_v0  ;;  %v7899_v9 = vand.u32 8388607, %v10292_v24 }
 0x139   :  { %v2059_v60 = vsel %vm10304_vm6, %v10577_v61, %v7797_v13  ;;  %v2400_v42 = vadd.s32 1, %v6337_v63  ;;  %v2253_v34 = vsel %vm6332_vm12, 0, %v6331_v44  ;;  %v2549_v53 = vmul.u32 %v2542_v39, %v2533_v22 }
 0x13a   :  { %v2552_v11 = vadd.s32 1, %v7878_v27  ;;  %v2705_v2 = vand.u32 2139095040, %v7882_v20  ;;  %v2254_v13 = vsub.s32 32, %v2253_v34  ;;  %v2258_v51 = vsub.s32 4294967266, %v2253_v34 }
 0x13b   :  { %vm2401_vm15 = vcmp.gt.s32.totalorder %v2400_v42, 0  ;;  %v10291_v17 = vand.u32 2147483647, %v7882_v20  ;;  %7030 = vsinq.f32 %v7814_v32  ;;  %v7908_v58 = vsel %vm7858_vm4, %v7484_v7, %v2059_v60 }
 0x13c   :  { %v2553_v5 = vsel %vm2551_vm14, %v2552_v11, %v7878_v27  ;;  %v2402_v23 = vsel %vm2401_vm15, %v2400_v42, 0  ;;  %v2255_v39 = vshll.u32 %v7847_v33, %v2253_v34  ;;  %v2256_v16 = vshrl.u32 %v2238_v56, %v2254_v13 }
 0x13d   :  { %v2259_v35 = vadd.s32 127, %v2258_v51  ;;  %v2554_v62 = vadd.s32 %v2553_v5, %v2549_v53  ;;  %v7914_v26 = vsel %vm10302_vm9, %v2370_v12, %v2369_v10  ;;  %v2398_v4 = vor.u32 8388608, %v7899_v9 }
 0x13e   :  { %v2404_v32 = vand.u32 31, %v2402_v23  ;;  %v2706_v44 = vshrl.u32 %v2705_v2, 23  ;;  %v2257_v22 = vor.u32 %v2256_v16, %v2255_v39  ;;  %v7919_v27 = vand.u32 8388607, %v10291_v17 }
 0x13f   :  { %v2260_v63 = vshll.u32 %v2259_v35, 23  ;;  %v2555_v61 = vadd.s32 536870912, %v2554_v62  ;;  %v7921_v60 = vpop.eup %7024  ;;  %v2403_v33 = vshrl.u32 %v2402_v23, 5  ;;  %v10579_v34 = vmov 2475754826  }
 0x140   :  { %10578 = vst [vmem:[#allocation29_spill] sm:$0xff] %v7921_v60  ;;  %v2405_v56 = vsub.s32 32, %v2404_v32  ;;  %v2407_v42 = vshll.u32 %v10570_v45, %v2404_v32  ;;  %v2410_v10 = vshll.u32 %v10579_v34, %v2404_v32  ;;  %v7925_v12 = vpop.eup %7026  ;;  %v2264_v53 = vcvt.s32.f32 %v2257_v22 }
 0x141   :  { %10580 = vst [vmem:[#allocation30_spill] sm:$0xff] %v7925_v12  ;;  %v2261_v9 = vor.u32 4788187, %v2260_v63  ;;  %v7927_v11 = vshrl.u32 %v2555_v61, 30  ;;  %v2413_v2 = vshll.u32 %v10566_v43, %v2404_v32  ;;  %v7930_v13 = vpop.eup %7028  ;;  %v2416_v39 = vshll.u32 %v10567_v37, %v2404_v32 }
 0x142   :  { %10582 = vst [vmem:[#allocation32_spill] sm:$0xff] %v7930_v13  ;;  %v2408_v51 = vshrl.u32 %v10579_v34, %v2405_v56  ;;  %v2411_v5 = vshrl.u32 %v10566_v43, %v2405_v56  ;;  %v2414_v23 = vshrl.u32 %v10567_v37, %v2405_v56  ;;  %v2417_v63 = vshrl.u32 %v10305_v8, %v2405_v56 }
 0x143   :  { %10581 = vst [vmem:[#allocation31_spill] sm:$0xff] %v7927_v11  ;;  %v2262_v16 = vand.u32 2147483647, %v2261_v9  ;;  %v2557_v35 = vshll.u32 %v7927_v11, 30  ;;  %v2419_v22 = vshll.u32 %v10305_v8, %v2404_v32  ;;  %v2420_v55 = vshrl.u32 %v10571_v50, %v2405_v56 }
 0x144   :  { %v2409_v61 = vor.u32 %v2408_v51, %v2407_v42  ;;  %v2412_v17 = vor.u32 %v2411_v5, %v2410_v10  ;;  %v2415_v24 = vor.u32 %v2414_v23, %v2413_v2  ;;  %v10583_v13 = vand.u32 2147483647, %v7497_v25 }
 0x145   :  { %v10584_v57 = vmov 0  ;;  %v7946_v7 = vsub.s32 %v2554_v62, %v2557_v35  ;;  %v2418_v9 = vor.u32 %v2417_v63, %v2416_v39  ;;  %vm2422_vm14 = vcmp.lt.s32.totalorder %v2403_v33, 1  ;;  %v7948_v21 = vpop.eup %7030 }
 0x146   :  { %vm7942_vm12 = vcmp.le.f32.partialorder %v10583_v13, 0.7853982  ;;  %v6349_v11 = vadd.s32 4294967169, %v2706_v44  ;;  %10587 = vst [vmem:[#allocation34_spill] sm:$0xff] %v7948_v21  ;;  %vm10312_vm15 = vcmp.lt.s32.totalorder %v7575_v31, 0  ;;  %v2265_v32 = vmul.f32 %v2264_v53, %v2262_v16 }
 0x147   :  { %v10585_v57 = vsel %vm7942_vm12, 4294967295, %v10584_v57  ;;  %v2406_v42 = vshrl.u32 %v10570_v45, %v2405_v56  ;;  %v2421_v10 = vor.u32 %v2420_v55, %v2419_v22  ;;  %vm2425_vm9 = vcmp.lt.s32.totalorder %v2403_v33, 4  ;;  %v168_v56 = vpop.permute.xlu0 %167 }
 0x148   :  { %10586 = vst [vmem:[#allocation33_spill] sm:$0xff] %v10585_v57  ;;  %v2560_v2 = vsub.s32 0, %v7946_v7  ;;  %vm2423_vm0 = vcmp.lt.s32.totalorder %v2403_v33, 2  ;;  %v2427_v13 = vsel %vm2425_vm9, %v2415_v24, 2102212464  ;;  %v2430_v51 = vsel %vm2422_vm14, %v2409_v61, %v2412_v17 }
 0x149   :  { %vm2424_vm6 = vcmp.lt.s32.totalorder %v2403_v33, 3  ;;  %v2431_v62 = vsel %vm2425_vm9, %v2418_v9, 920167782  ;;  %v2434_v5 = vsel %vm2422_vm14, %v2412_v17, %v2415_v24  ;;  %v2435_v44 = vsel %vm2425_vm9, %v2421_v10, 1326507024 }
 0x14a   :  { %v6342_v23 = vmin.u32 %v2560_v2, %v7946_v7  ;;  %v2426_v39 = vsel %vm2422_vm14, %v2406_v42, %v2409_v61  ;;  %v2428_v53 = vsel %vm2424_vm6, %v2412_v17, %v2427_v13  ;;  %v2432_v16 = vsel %vm2424_vm6, %v2415_v24, %v2431_v62 }
 0x14b   :  { %v2433_v55 = vsel %vm2423_vm0, %v2430_v51, %v2432_v16  ;;  %v2436_v35 = vsel %vm2424_vm6, %v2418_v9, %v2435_v44  ;;  %v2438_v63 = vshll.u32 %v2398_v4, 8  ;;  %v2710_v22 = vor.u32 8388608, %v7919_v27 }
 0x14c   :  { %v2266_v8 = vxor.u32 2147483648, %v2265_v32  ;;  %v2562_v21 = vclz %v6342_v23  ;;  %v2437_v15 = vsel %vm2423_vm0, %v2434_v5, %v2436_v35  ;;  %v2712_v48 = vadd.s32 1, %v6349_v11 }
 0x14d   :  { %v2429_v10 = vsel %vm2423_vm0, %v2426_v39, %v2428_v53  ;;  %v7961_v38 = vmul.u32.u64.low %v2438_v63, %v2437_v15  ;;  %v7962_v2 = vmul.u32.u64.high %v2438_v63, %v2437_v15, %v7961_v38  ;;  %v7965_v17 = vmul.f32 %v7701_v14, %v168_v56 }
 0x14e   :  { %v6343_v24 = vadd.s32 4294967294, %v2562_v21  ;;  %v7967_v61 = vmul.u32.u64.low %v2438_v63, %v2433_v55  ;;  %v7968_v42 = vmul.u32.u64.high %v2438_v63, %v2433_v55, %v7967_v61  ;;  %vm2713_vm6 = vcmp.gt.s32.totalorder %v2712_v48, 0 }
 0x14f   :  { %10588 = vst [vmem:[#allocation35_spill] sm:$0xff] %v7965_v17  ;;  %7032 = vcosq.f32 %v7908_v58  ;;  %v7976_v4 = vsel %vm7942_vm12, %v7497_v25, %v7914_v26  ;;  %v2550_v38 = vadd.s32 %v7877_v0, %v7873_v36  ;;  %v2714_v15 = vsel %vm2713_vm6, %v2712_v48, 0 }
 0x150   :  { %v7982_v21 = vsel %vm10312_vm15, %v2266_v8, %v2265_v32  ;;  %vm6344_vm0 = vcmp.lt.s32.totalorder %v6343_v24, 0  ;;  %v2445_v27 = vmul.u32 %v2438_v63, %v2429_v10  ;;  %v2716_v33 = vand.u32 31, %v2714_v15 }
 0x151   :  { %v2565_v11 = vsel %vm6344_vm0, 0, %v6343_v24  ;;  %vm2447_vm9 = vc.u32 %v7962_v2, %v7967_v61  ;;  %v7986_v9 = vshll.u32 %v2710_v22, 8  ;;  %v2601_v26 = vand.u32 2139095040, %v7965_v17 }
 0x152   :  { %v2566_v13 = vsub.s32 32, %v2565_v11  ;;  %v2570_v51 = vsub.s32 4294967266, %v2565_v11  ;;  %v2448_v36 = vadd.s32 1, %v7968_v42  ;;  %v2715_v48 = vshrl.u32 %v2714_v15, 5 }
 0x153   :  { %v2567_v0 = vshll.u32 %v7946_v7, %v2565_v11  ;;  %v2717_v8 = vsub.s32 32, %v2716_v33  ;;  %v2719_v32 = vshll.u32 %v10570_v45, %v2716_v33  ;;  %v2722_v62 = vshll.u32 %v10579_v34, %v2716_v33 }
 0x154   :  { %v2568_v5 = vshrl.u32 %v2550_v38, %v2566_v13  ;;  %v2571_v44 = vadd.s32 127, %v2570_v51  ;;  %v2449_v23 = vsel %vm2447_vm9, %v2448_v36, %v7968_v42  ;;  %v2725_v39 = vshll.u32 %v10566_v43, %v2716_v33 }
 0x155   :  { %v2450_v53 = vadd.s32 %v2449_v23, %v2445_v27  ;;  %v2720_v16 = vshrl.u32 %v10579_v34, %v2717_v8  ;;  %v2723_v56 = vshrl.u32 %v10566_v43, %v2717_v8  ;;  %v2728_v55 = vshll.u32 %v10567_v37, %v2716_v33 }
 0x156   :  { %v2569_v35 = vor.u32 %v2568_v5, %v2567_v0  ;;  %v2572_v7 = vshll.u32 %v2571_v44, 23  ;;  %v2726_v63 = vshrl.u32 %v10567_v37, %v2717_v8  ;;  %v10589_v22 = vmov 920167782  }
 0x157   :  { %v2729_v10 = vshrl.u32 %v10589_v22, %v2717_v8  ;;  %v2451_v24 = vadd.s32 536870912, %v2450_v53  ;;  %v2718_v38 = vshrl.u32 %v10570_v45, %v2717_v8  ;;  %v2721_v15 = vor.u32 %v2720_v16, %v2719_v32 }
 0x158   :  { %v2724_v42 = vor.u32 %v2723_v56, %v2722_v62  ;;  %vm10327_vm14 = vcmp.lt.s32.totalorder %v7704_v41, 0  ;;  %v2573_v27 = vor.u32 4788187, %v2572_v7  ;;  %v2727_v11 = vor.u32 %v2726_v63, %v2725_v39 }
 0x159   :  { %v2730_v13 = vor.u32 %v2729_v10, %v2728_v55  ;;  %v2731_v51 = vshll.u32 %v10589_v22, %v2716_v33  ;;  %v8003_v36 = vpop.eup %7032  ;;  %v10591_v0 = vand.u32 2147483647, %v7575_v31  ;;  %v10592_v5 = vmov 0 }
 0x15a   :  { %10590 = vst [vmem:[#allocation36_spill] sm:$0xff] %v8003_v36  ;;  %v2576_v44 = vcvt.s32.f32 %v2569_v35  ;;  %v8011_v23 = vshrl.u32 %v2451_v24, 30  ;;  %v2732_v32 = vshrl.u32 %v10571_v50, %v2717_v8  ;;  %vm2734_vm0 = vcmp.lt.s32.totalorder %v2715_v48, 1 }
 0x15b   :  { %vm8007_vm6 = vcmp.le.f32.partialorder %v10591_v0, 0.7853982  ;;  %v2574_v62 = vand.u32 2147483647, %v2573_v27  ;;  %vm2735_vm9 = vcmp.lt.s32.totalorder %v2715_v48, 2  ;;  %vm2736_vm15 = vcmp.lt.s32.totalorder %v2715_v48, 3 }
 0x15c   :  { %v10593_v5 = vsel %vm8007_vm6, 4294967295, %v10592_v5  ;;  %10595 = vst [vmem:[#allocation38_spill] sm:$0xff] %v8011_v23  ;;  %vm2737_vm5 = vcmp.lt.s32.totalorder %v2715_v48, 4  ;;  %v2453_v33 = vshll.u32 %v8011_v23, 30  ;;  %v2733_v39 = vor.u32 %v2732_v32, %v2731_v51  ;;  %v58_v32 = vpop.permute.xlu1 %57 }
 0x15d   :  { %10594 = vst [vmem:[#allocation37_spill] sm:$0xff] %v10593_v5  ;;  %v2739_v16 = vsel %vm2737_vm5, %v2727_v11, 2102212464  ;;  %v2742_v56 = vsel %vm2734_vm0, %v2721_v15, %v2724_v42  ;;  %v2577_v55 = vmul.f32 %v2576_v44, %v2574_v62  ;;  %v2738_v7 = vsel %vm2734_vm0, %v2718_v38, %v2721_v15 }
 0x15e   :  { %v2743_v63 = vsel %vm2737_vm5, %v2730_v13, 920167782  ;;  %v2746_v10 = vsel %vm2734_vm0, %v2724_v42, %v2727_v11  ;;  %v8015_v0 = vsub.s32 %v2450_v53, %v2453_v33  ;;  %v2740_v35 = vsel %vm2736_vm15, %v2724_v42, %v2739_v16 }
 0x15f   :  { %v2744_v8 = vsel %vm2736_vm15, %v2727_v11, %v2743_v63  ;;  %v2747_v24 = vsel %vm2737_vm5, %v2733_v39, 1326507024  ;;  %v2578_v27 = vxor.u32 2147483648, %v2577_v55  ;;  %v10317_v51 = vand.u32 2147483647, %v7965_v17 }
 0x160   :  { %v2745_v57 = vsel %vm2735_vm9, %v2742_v56, %v2744_v8  ;;  %v2748_v25 = vsel %vm2736_vm15, %v2730_v13, %v2747_v24  ;;  %v2456_v44 = vsub.s32 0, %v8015_v0  ;;  %v2741_v42 = vsel %vm2735_vm9, %v2738_v7, %v2740_v35 }
 0x161   :  { %v2749_v38 = vsel %vm2735_vm9, %v2746_v10, %v2748_v25  ;;  %v8025_v53 = vmul.u32.u64.low %v7986_v9, %v2745_v57  ;;  %v8026_v15 = vmul.u32.u64.high %v7986_v9, %v2745_v57, %v8025_v53  ;;  %v2602_v33 = vshrl.u32 %v2601_v26, 23 }
 0x162   :  { %v8031_v11 = vmul.u32.u64.low %v7986_v9, %v2749_v38  ;;  %v8032_v62 = vmul.u32.u64.high %v7986_v9, %v2749_v38, %v8031_v11  ;;  %7034 = vsinq.f32 %v7908_v58  ;;  %v2579_v13 = vsel %vm10327_vm14, %v2578_v27, %v2577_v55 }
 0x163   :  { %v6338_v39 = vmin.u32 %v2456_v44, %v8015_v0  ;;  %v8039_v25 = vmul.f32 %v7701_v14, %v58_v32  ;;  %7036 = vcosq.f32 %v7976_v4  ;;  %v2270_v57 = vsel %vm8007_vm6, %v7575_v31, %v7982_v21 }
 0x164   :  { %v10597_v48 = vand.u32 2147483647, %v7704_v41  ;;  %v10598_v26 = vmov 0  ;;  %v6345_v58 = vadd.s32 4294967169, %v2602_v33  ;;  %7038 = vsinq.f32 %v7976_v4 }
 0x165   :  { %10596 = vst [vmem:[#allocation39_spill] sm:$0xff] %v8039_v25  ;;  %v2458_v16 = vclz %v6338_v39  ;;  %v2757_v56 = vmul.u32 %v7986_v9, %v2741_v42  ;;  %v2760_v55 = vadd.s32 1, %v8026_v15  ;;  %vm2759_vm15 = vc.u32 %v8032_v62, %v8025_v53 }
 0x166   :  { %vm8048_vm5 = vcmp.le.f32.partialorder %v10597_v48, 0.7853982  ;;  %v2605_v21 = vand.u32 8388607, %v10317_v51  ;;  %v2608_v63 = vadd.s32 1, %v6345_v58  ;;  %7040 = vcosq.f32 %v2270_v57 }
 0x167   :  { %v10599_v26 = vsel %vm8048_vm5, 4294967295, %v10598_v26  ;;  %v8058_v7 = vsel %vm8048_vm5, %v7704_v41, %v2579_v13  ;;  %v6339_v10 = vadd.s32 4294967294, %v2458_v16  ;;  %v2761_v4 = vsel %vm2759_vm15, %v2760_v55, %v8026_v15 }
 0x168   :  { %10600 = vst [vmem:[#allocation40_spill] sm:$0xff] %v10599_v26  ;;  %v313_v9 = vand.u32 2139095040, %v8039_v25  ;;  %7042 = vsinq.f32 %v2270_v57  ;;  %v2446_v35 = vadd.s32 %v7967_v61, %v7962_v2  ;;  %v2762_v8 = vadd.s32 %v2761_v4, %v2757_v56 }
 0x169   :  { %vm2609_vm0 = vcmp.gt.s32.totalorder %v2608_v63, 0  ;;  %7044 = vcosq.f32 %v8058_v7  ;;  %vm6340_vm9 = vcmp.lt.s32.totalorder %v6339_v10, 0  ;;  %v2606_v38 = vor.u32 8388608, %v2605_v21 }
 0x16a   :  { %v2610_v24 = vsel %vm2609_vm0, %v2608_v63, 0  ;;  %v2461_v32 = vsel %vm6340_vm9, 0, %v6339_v10  ;;  %v2763_v44 = vadd.s32 536870912, %v2762_v8  ;;  %v314_v13 = vshrl.u32 %v313_v9, 23 }
 0x16b   :  { %v2612_v42 = vand.u32 31, %v2610_v24  ;;  %v2462_v11 = vsub.s32 32, %v2461_v32  ;;  %v2466_v15 = vsub.s32 4294967266, %v2461_v32  ;;  %v8070_v33 = vshrl.u32 %v2610_v24, 5 }
 0x16c   :  { %v2463_v39 = vshll.u32 %v8015_v0, %v2461_v32  ;;  %v8073_v2 = vshrl.u32 %v2763_v44, 30  ;;  %v8076_v48 = vpop.eup %7034  ;;  %v8092_v27 = vshll.u32 %v2606_v38, 8  ;;  %7046 = vsinq.f32 %v8058_v7 }
 0x16d   :  { %v2613_v61 = vsub.s32 32, %v2612_v42  ;;  %v2615_v57 = vshll.u32 %v10570_v45, %v2612_v42  ;;  %10602 = vst [vmem:[#allocation42_spill] sm:$0xff] %v8076_v48  ;;  %v2464_v58 = vshrl.u32 %v2446_v35, %v2462_v11  ;;  %v2467_v16 = vadd.s32 127, %v2466_v15  ;;  %v8080_v21 = vpop.eup %7036 }
 0x16e   :  { %10601 = vst [vmem:[#allocation41_spill] sm:$0xff] %v8073_v2  ;;  %v2618_v56 = vshll.u32 %v10579_v34, %v2612_v42  ;;  %v2621_v55 = vshll.u32 %v10566_v43, %v2612_v42  ;;  %10603 = vst [vmem:[#allocation43_spill] sm:$0xff] %v8080_v21  ;;  %v2765_v63 = vshll.u32 %v8073_v2, 30  ;;  %v2624_v4 = vshll.u32 %v10567_v37, %v2612_v42  ;;  %v8086_v9 = vpop.eup %7038 }
 0x16f   :  { %v2616_v10 = vshrl.u32 %v10579_v34, %v2613_v61  ;;  %v2619_v0 = vshrl.u32 %v10566_v43, %v2613_v61  ;;  %10604 = vst [vmem:[#allocation44_spill] sm:$0xff] %v8086_v9  ;;  %v2465_v24 = vor.u32 %v2464_v58, %v2463_v39  ;;  %v2468_v32 = vshll.u32 %v2467_v16, 23 }
 0x170   :  { %v2622_v35 = vshrl.u32 %v10567_v37, %v2613_v61  ;;  %v2625_v44 = vshrl.u32 %v10589_v22, %v2613_v61  ;;  %v8090_v11 = vsub.s32 %v2762_v8, %v2765_v63  ;;  %v8094_v2 = vpop.eup %7040  ;;  %v6257_v21 = vadd.s32 4294967169, %v314_v13 }
 0x171   :  { %v2617_v15 = vor.u32 %v2616_v10, %v2615_v57  ;;  %v2620_v51 = vor.u32 %v2619_v0, %v2618_v56  ;;  %10605 = vst [vmem:[#allocation45_spill] sm:$0xff] %v8094_v2  ;;  %v2469_v26 = vor.u32 4788187, %v2468_v32  ;;  %v2614_v58 = vshrl.u32 %v10570_v45, %v2613_v61 }
 0x172   :  { %v2623_v41 = vor.u32 %v2622_v35, %v2621_v55  ;;  %v2626_v23 = vor.u32 %v2625_v44, %v2624_v4  ;;  %v8096_v5 = vpop.eup %7042  ;;  %v2768_v39 = vsub.s32 0, %v8090_v11  ;;  %v2627_v16 = vshll.u32 %v10589_v22, %v2612_v42 }
 0x173   :  { %10606 = vst [vmem:[#allocation46_spill] sm:$0xff] %v8096_v5  ;;  %v2628_v8 = vshrl.u32 %v10571_v50, %v2613_v61  ;;  %v8102_v57 = vpop.eup %7044  ;;  %v2470_v38 = vand.u32 2147483647, %v2469_v26  ;;  %v2472_v56 = vcvt.s32.f32 %v2465_v24  ;;  %vm2630_vm15 = vcmp.lt.s32.totalorder %v8070_v33, 1 }
 0x174   :  { %10607 = vst [vmem:[#allocation47_spill] sm:$0xff] %v8102_v57  ;;  %vm2633_vm0 = vcmp.lt.s32.totalorder %v8070_v33, 4  ;;  %v6350_v13 = vmin.u32 %v2768_v39, %v8090_v11  ;;  %v2638_v10 = vsel %vm2630_vm15, %v2617_v15, %v2620_v51  ;;  %vm2632_vm9 = vcmp.lt.s32.totalorder %v8070_v33, 3 }
 0x175   :  { %v2629_v55 = vor.u32 %v2628_v8, %v2627_v16  ;;  %v2635_v63 = vsel %vm2633_vm0, %v2623_v41, 2102212464  ;;  %v2473_v0 = vmul.f32 %v2472_v56, %v2470_v38  ;;  %v2639_v4 = vsel %vm2633_vm0, %v2626_v23, 920167782 }
 0x176   :  { %v2642_v42 = vsel %vm2630_vm15, %v2620_v51, %v2623_v41  ;;  %v2770_v32 = vclz %v6350_v13  ;;  %vm2631_vm14 = vcmp.lt.s32.totalorder %v8070_v33, 2  ;;  %v2640_v61 = vsel %vm2632_vm9, %v2623_v41, %v2639_v4 }
 0x177   :  { %v2643_v26 = vsel %vm2633_vm0, %v2629_v55, 1326507024  ;;  %v2634_v24 = vsel %vm2630_vm15, %v2614_v58, %v2617_v15  ;;  %v2636_v35 = vsel %vm2632_vm9, %v2620_v51, %v2635_v63  ;;  %v2641_v44 = vsel %vm2631_vm14, %v2638_v10, %v2640_v61  ;;  %v53_v51 = vpop.permute.xlu0 %52 }
 0x178   :  { %v2644_v57 = vsel %vm2632_vm9, %v2626_v23, %v2643_v26  ;;  %v6351_v39 = vadd.s32 4294967294, %v2770_v32  ;;  %v8114_v8 = vmul.u32.u64.low %v8092_v27, %v2641_v44  ;;  %v8115_v38 = vmul.u32.u64.high %v8092_v27, %v2641_v44, %v8114_v8  ;;  %v68_v32 = vpop.permute.xlu1 %67 }
 0x179   :  { %v2645_v16 = vsel %vm2631_vm14, %v2642_v42, %v2644_v57  ;;  %v2474_v56 = vxor.u32 2147483648, %v2473_v0  ;;  %v320_v15 = vadd.s32 1, %v6257_v21  ;;  %v10608_v23 = vand.u32 2147483647, %v7809_v3 }
 0x17a   :  { %v8119_v13 = vmul.u32.u64.low %v8092_v27, %v2645_v16  ;;  %v8120_v41 = vmul.u32.u64.high %v8092_v27, %v2645_v16, %v8119_v13  ;;  %v10609_v58 = vmov 0  ;;  %vm10337_vm0 = vcmp.lt.s32.totalorder %v7809_v3, 0 }
 0x17b   :  { %vm8125_vm15 = vcmp.le.f32.partialorder %v10608_v23, 0.7853982  ;;  %vm6352_vm9 = vcmp.lt.s32.totalorder %v6351_v39, 0  ;;  %v2637_v55 = vsel %vm2631_vm14, %v2634_v24, %v2636_v35  ;;  %v10612_v63 = vand.u32 2147483647, %v8039_v25 }
 0x17c   :  { %v10610_v58 = vsel %vm8125_vm15, 4294967295, %v10609_v58  ;;  %v2773_v57 = vsel %vm6352_vm9, 0, %v6351_v39  ;;  %vm321_vm11 = vcmp.gt.s32.totalorder %v320_v15, 0  ;;  %v2758_v7 = vadd.s32 %v8025_v53, %v8032_v62 }
 0x17d   :  { %10611 = vst [vmem:[#allocation48_spill] sm:$0xff] %v10610_v58  ;;  %v317_v10 = vand.u32 8388607, %v10612_v63  ;;  %v2774_v21 = vsub.s32 32, %v2773_v57  ;;  %v2778_v4 = vsub.s32 4294967266, %v2773_v57  ;;  %v8137_v42 = vmul.f32 %v7701_v14, %v53_v51 }
 0x17e   :  { %v2475_v61 = vsel %vm10337_vm0, %v2474_v56, %v2473_v0  ;;  %vm2655_vm9 = vc.u32 %v8120_v41, %v8114_v8  ;;  %v2656_v33 = vadd.s32 1, %v8115_v38  ;;  %v322_v26 = vsel %vm321_vm11, %v320_v15, 0 }
 0x17f   :  { %10613 = vst [vmem:[#allocation49_spill] sm:$0xff] %v8137_v42  ;;  %v2776_v24 = vshrl.u32 %v2758_v7, %v2774_v21  ;;  %v2779_v35 = vadd.s32 127, %v2778_v4  ;;  %v2653_v44 = vmul.u32 %v8092_v27, %v2637_v55  ;;  %v324_v53 = vand.u32 31, %v322_v26 }
 0x180   :  { %v2775_v62 = vshll.u32 %v8090_v11, %v2773_v57  ;;  %v2657_v39 = vsel %vm2655_vm9, %v2656_v33, %v8115_v38  ;;  %v318_v16 = vor.u32 8388608, %v317_v10  ;;  %v8148_v13 = vmul.f32 %v7701_v14, %v68_v32  ;;  %v8161_v32 = vpop.eup %7046 }
 0x181   :  { %v2478_v0 = vsel %vm8125_vm15, %v7809_v3, %v2475_v61  ;;  %v2780_v56 = vshll.u32 %v2779_v35, 23  ;;  %v2658_v51 = vadd.s32 %v2657_v39, %v2653_v44  ;;  %v325_v15 = vsub.s32 32, %v324_v53  ;;  %10615 = vst [vmem:[#allocation51_spill] sm:$0xff] %v8161_v32 }
 0x182   :  { %10614 = vst [vmem:[#allocation50_spill] sm:$0xff] %v8148_v13  ;;  %v2777_v23 = vor.u32 %v2776_v24, %v2775_v62  ;;  %v323_v63 = vshrl.u32 %v322_v26, 5  ;;  %v327_v27 = vshll.u32 %v10570_v45, %v324_v53  ;;  %v330_v55 = vshll.u32 %v10579_v34, %v324_v53 }
 0x183   :  { %v2781_v11 = vor.u32 4788187, %v2780_v56  ;;  %v2659_v57 = vadd.s32 536870912, %v2658_v51  ;;  %v333_v38 = vshll.u32 %v10566_v43, %v324_v53  ;;  %v336_v14 = vshll.u32 %v10567_v37, %v324_v53 }
 0x184   :  { %v328_v10 = vshrl.u32 %v10579_v34, %v325_v15  ;;  %v331_v7 = vshrl.u32 %v10566_v43, %v325_v15  ;;  %v334_v21 = vshrl.u32 %v10567_v37, %v325_v15  ;;  %v337_v4 = vshrl.u32 %v10589_v22, %v325_v15 }
 0x185   :  { %v2782_v61 = vand.u32 2147483647, %v2781_v11  ;;  %v8163_v33 = vshrl.u32 %v2659_v57, 30  ;;  %v339_v26 = vshll.u32 %v10589_v22, %v324_v53  ;;  %v340_v24 = vshrl.u32 %v10571_v50, %v325_v15 }
 0x186   :  { %v329_v35 = vor.u32 %v328_v10, %v327_v27  ;;  %v332_v44 = vor.u32 %v331_v7, %v330_v55  ;;  %v335_v62 = vor.u32 %v334_v21, %v333_v38  ;;  %v338_v39 = vor.u32 %v337_v4, %v336_v14 }
 0x187   :  { %10616 = vst [vmem:[#allocation52_spill] sm:$0xff] %v8163_v33  ;;  %v2784_v56 = vcvt.s32.f32 %v2777_v23  ;;  %v2661_v58 = vshll.u32 %v8163_v33, 30  ;;  %v341_v3 = vor.u32 %v340_v24, %v339_v26  ;;  %v358_v9 = vshll.u32 %v318_v16, 8 }
 0x188   :  { %v326_v31 = vshrl.u32 %v10570_v45, %v325_v15  ;;  %vm342_vm11 = vcmp.lt.s32.totalorder %v323_v63, 1  ;;  %v10340_v11 = vand.u32 2147483647, %v8137_v42  ;;  %v209_v57 = vand.u32 2139095040, %v8137_v42 }
 0x189   :  { %v2785_v32 = vmul.f32 %v2784_v56, %v2782_v61  ;;  %v8171_v53 = vsub.s32 %v2658_v51, %v2661_v58  ;;  %vm345_vm14 = vcmp.lt.s32.totalorder %v323_v63, 4  ;;  %v350_v27 = vsel %vm342_vm11, %v329_v35, %v332_v44 }
 0x18a   :  { %vm344_vm9 = vcmp.lt.s32.totalorder %v323_v63, 3  ;;  %v351_v55 = vsel %vm345_vm14, %v338_v39, 920167782  ;;  %v354_v23 = vsel %vm342_vm11, %v332_v44, %v335_v62  ;;  %v355_v38 = vsel %vm345_vm14, %v341_v3, 1326507024 }
 0x18b   :  { %v2664_v16 = vsub.s32 0, %v8171_v53  ;;  %vm343_vm0 = vcmp.lt.s32.totalorder %v323_v63, 2  ;;  %v347_v15 = vsel %vm345_vm14, %v335_v62, 2102212464  ;;  %v352_v14 = vsel %vm344_vm9, %v335_v62, %v351_v55 }
 0x18c   :  { %7048 = vcosq.f32 %v2478_v0  ;;  %v353_v10 = vsel %vm343_vm0, %v350_v27, %v352_v14  ;;  %v356_v58 = vsel %vm344_vm9, %v338_v39, %v355_v38  ;;  %v213_v51 = vand.u32 8388607, %v10340_v11 }
 0x18d   :  { %v6346_v7 = vmin.u32 %v2664_v16, %v8171_v53  ;;  %v346_v21 = vsel %vm342_vm11, %v326_v31, %v329_v35  ;;  %v357_v3 = vsel %vm343_vm0, %v354_v23, %v356_v58  ;;  %v210_v4 = vshrl.u32 %v209_v57, 23 }
 0x18e   :  { %v2786_v61 = vxor.u32 2147483648, %v2785_v32  ;;  %v348_v26 = vsel %vm344_vm9, %v332_v44, %v347_v15  ;;  %v8185_v24 = vmul.u32.u64.low %v358_v9, %v357_v3  ;;  %v8186_v62 = vmul.u32.u64.high %v358_v9, %v357_v3, %v8185_v24 }
 0x18f   :  { %v2666_v56 = vclz %v6346_v7  ;;  %v8188_v27 = vmul.u32.u64.low %v358_v9, %v353_v10  ;;  %v8189_v55 = vmul.u32.u64.high %v358_v9, %v353_v10, %v8188_v27  ;;  %v6253_v39 = vadd.s32 4294967169, %v210_v4 }
 0x190   :  { %7050 = vsinq.f32 %v2478_v0  ;;  %vm10346_vm14 = vcmp.lt.s32.totalorder %v7882_v20, 0  ;;  %v521_v31 = vand.u32 2139095040, %v8148_v13  ;;  %v349_v57 = vsel %vm343_vm0, %v346_v21, %v348_v26 }
 0x191   :  { %v6347_v35 = vadd.s32 4294967294, %v2666_v56  ;;  %v214_v23 = vor.u32 8388608, %v213_v51  ;;  %v216_v38 = vadd.s32 1, %v6253_v39  ;;  %v2654_v44 = vadd.s32 %v8114_v8, %v8120_v41 }
 0x192   :  { %vm367_vm11 = vc.u32 %v8186_v62, %v8188_v27  ;;  %v10339_v16 = vand.u32 2147483647, %v8148_v13  ;;  %v522_v15 = vshrl.u32 %v521_v31, 23  ;;  %v8202_v0 = vsel %vm10346_vm14, %v2786_v61, %v2785_v32 }
 0x193   :  { %vm6348_vm9 = vcmp.lt.s32.totalorder %v6347_v35, 0  ;;  %v368_v14 = vadd.s32 1, %v8189_v55  ;;  %vm217_vm10 = vcmp.gt.s32.totalorder %v216_v38, 0  ;;  %v365_v10 = vmul.u32 %v358_v9, %v349_v57 }
 0x194   :  { %v2669_v63 = vsel %vm6348_vm9, 0, %v6347_v35  ;;  %v218_v58 = vsel %vm217_vm10, %v216_v38, 0  ;;  %v6265_v51 = vadd.s32 4294967169, %v522_v15  ;;  %v8206_v21 = vshll.u32 %v214_v23, 8 }
 0x195   :  { %v2670_v7 = vsub.s32 32, %v2669_v63  ;;  %v2674_v8 = vsub.s32 4294967266, %v2669_v63  ;;  %v369_v41 = vsel %vm367_vm11, %v368_v14, %v8189_v55  ;;  %v2671_v4 = vshll.u32 %v8171_v53, %v2669_v63 }
 0x196   :  { %v8208_v3 = vpop.eup %7048  ;;  %v370_v32 = vadd.s32 %v369_v41, %v365_v10  ;;  %v220_v61 = vand.u32 31, %v218_v58  ;;  %v8213_v26 = vand.u32 8388607, %v10339_v16  ;;  %v219_v56 = vshrl.u32 %v218_v58, 5 }
 0x197   :  { %10617 = vst [vmem:[#allocation53_spill] sm:$0xff] %v8208_v3  ;;  %v2672_v24 = vshrl.u32 %v2654_v44, %v2670_v7  ;;  %v2675_v9 = vadd.s32 127, %v2674_v8  ;;  %v8215_v39 = vadd.s32 1, %v6265_v51  ;;  %v10618_v23 = vand.u32 2147483647, %v7882_v20 }
 0x198   :  { %v371_v31 = vadd.s32 536870912, %v370_v32  ;;  %v221_v35 = vsub.s32 32, %v220_v61  ;;  %v223_v55 = vshll.u32 %v10570_v45, %v220_v61  ;;  %v226_v57 = vshll.u32 %v10579_v34, %v220_v61 }
 0x199   :  { %vm8221_vm10 = vcmp.le.f32.partialorder %v10618_v23, 0.7853982  ;;  %v10619_v53 = vmov 0  ;;  %v2673_v38 = vor.u32 %v2672_v24, %v2671_v4  ;;  %v2676_v15 = vshll.u32 %v2675_v9, 23 }
 0x19a   :  { %v10620_v53 = vsel %vm8221_vm10, 4294967295, %v10619_v53  ;;  %v229_v44 = vshll.u32 %v10566_v43, %v220_v61  ;;  %v232_v14 = vshll.u32 %v10567_v37, %v220_v61  ;;  %v8227_v63 = vpop.eup %7050  ;;  %v8229_v10 = vshrl.u32 %v371_v31, 30 }
 0x19b   :  { %10621 = vst [vmem:[#allocation54_spill] sm:$0xff] %v10620_v53  ;;  %10622 = vst [vmem:[#allocation55_spill] sm:$0xff] %v8227_v63  ;;  %v222_v58 = vshrl.u32 %v10570_v45, %v221_v35  ;;  %v224_v51 = vshrl.u32 %v10579_v34, %v221_v35  ;;  %v227_v7 = vshrl.u32 %v10566_v43, %v221_v35  ;;  %v2677_v8 = vor.u32 4788187, %v2676_v15 }
 0x19c   :  { %10623 = vst [vmem:[#allocation56_spill] sm:$0xff] %v8229_v10  ;;  %v2680_v41 = vcvt.s32.f32 %v2673_v38  ;;  %v230_v23 = vshrl.u32 %v10567_v37, %v221_v35  ;;  %v233_v4 = vshrl.u32 %v10589_v22, %v221_v35  ;;  %vm10355_vm0 = vcmp.lt.s32.totalorder %v7965_v17, 0 }
 0x19d   :  { %v373_v24 = vshll.u32 %v8229_v10, 30  ;;  %v225_v9 = vor.u32 %v224_v51, %v223_v55  ;;  %v228_v16 = vor.u32 %v227_v7, %v226_v57  ;;  %v235_v31 = vshll.u32 %v10589_v22, %v220_v61  ;;  %v63_v61 = vpop.permute.xlu0 %62 }
 0x19e   :  { %v2678_v11 = vand.u32 2147483647, %v2677_v8  ;;  %v231_v33 = vor.u32 %v230_v23, %v229_v44  ;;  %v234_v3 = vor.u32 %v233_v4, %v232_v14  ;;  %v236_v63 = vshrl.u32 %v10571_v50, %v221_v35 }
 0x19f   :  { %v8240_v2 = vsub.s32 %v370_v32, %v373_v24  ;;  %vm238_vm11 = vcmp.lt.s32.totalorder %v219_v56, 1  ;;  %vm239_vm9 = vcmp.lt.s32.totalorder %v219_v56, 2  ;;  %vm240_vm14 = vcmp.lt.s32.totalorder %v219_v56, 3  ;;  %v78_v24 = vpop.permute.xlu1 %77 }
 0x1a0   :  { %v2681_v38 = vmul.f32 %v2680_v41, %v2678_v11  ;;  %v237_v15 = vor.u32 %v236_v63, %v235_v31  ;;  %vm241_vm2 = vcmp.lt.s32.totalorder %v219_v56, 4  ;;  %v242_v5 = vsel %vm238_vm11, %v222_v58, %v225_v9 }
 0x1a1   :  { %v376_v10 = vsub.s32 0, %v8240_v2  ;;  %v243_v55 = vsel %vm241_vm2, %v231_v33, 2102212464  ;;  %v246_v57 = vsel %vm238_vm11, %v225_v9, %v228_v16  ;;  %v247_v51 = vsel %vm241_vm2, %v234_v3, 920167782 }
 0x1a2   :  { %v2682_v7 = vxor.u32 2147483648, %v2681_v38  ;;  %v244_v44 = vsel %vm240_vm14, %v228_v16, %v243_v55  ;;  %v248_v35 = vsel %vm240_vm14, %v231_v33, %v247_v51  ;;  %v250_v32 = vsel %vm238_vm11, %v228_v16, %v231_v33  ;;  %v8262_v33 = vld [vmem:[%s10262_s1] ss:$0 sm:$0xff] }
 0x1a3   :  { %v8249_v11 = vsel %vm8221_vm10, %v7882_v20, %v8202_v0  ;;  %v6258_v14 = vmin.u32 %v376_v10, %v8240_v2  ;;  %v249_v63 = vsel %vm239_vm9, %v246_v57, %v248_v35  ;;  %v251_v58 = vsel %vm241_vm2, %v237_v15, 1326507024 }
 0x1a4   :  { %v252_v8 = vsel %vm240_vm14, %v234_v3, %v251_v58  ;;  %v8255_v41 = vmul.u32.u64.low %v8206_v21, %v249_v63  ;;  %v8256_v23 = vmul.u32.u64.high %v8206_v21, %v249_v63, %v8255_v41  ;;  %v8265_v16 = vmul.f32 %v8262_v33, %v63_v61 }
 0x1a5   :  { %v378_v0 = vclz %v6258_v14  ;;  %v245_v10 = vsel %vm239_vm9, %v242_v5, %v244_v44  ;;  %v253_v4 = vsel %vm239_vm9, %v250_v32, %v252_v8  ;;  %v526_v3 = vor.u32 8388608, %v8213_v26 }
 0x1a6   :  { %10624 = vst [vmem:[#allocation57_spill] sm:$0xff] %v8265_v16  ;;  %v2683_v9 = vsel %vm10355_vm0, %v2682_v7, %v2681_v38  ;;  %v8273_v31 = vmul.u32.u64.low %v8206_v21, %v253_v4  ;;  %v8274_v15 = vmul.u32.u64.high %v8206_v21, %v253_v4, %v8273_v31  ;;  %vm529_vm2 = vcmp.gt.s32.totalorder %v8215_v39, 0 }
 0x1a7   :  { %7052 = vcosq.f32 %v8249_v11  ;;  %v10625_v55 = vand.u32 2147483647, %v7965_v17  ;;  %v10626_v5 = vmov 0  ;;  %v6259_v56 = vadd.s32 4294967294, %v378_v0 }
 0x1a8   :  { %v530_v26 = vsel %vm529_vm2, %v8215_v39, 0  ;;  %v366_v38 = vadd.s32 %v8188_v27, %v8186_v62  ;;  %v264_v57 = vadd.s32 1, %v8256_v23  ;;  %v8289_v61 = vmul.f32 %v8262_v33, %v78_v24 }
 0x1a9   :  { %vm8280_vm14 = vcmp.le.f32.partialorder %v10625_v55, 0.7853982  ;;  %v532_v51 = vand.u32 31, %v530_v26  ;;  %vm6260_vm11 = vcmp.lt.s32.totalorder %v6259_v56, 0  ;;  %v261_v44 = vmul.u32 %v8206_v21, %v245_v10 }
 0x1aa   :  { %v10627_v5 = vsel %vm8280_vm14, 4294967295, %v10626_v5  ;;  %10629 = vst [vmem:[#allocation59_spill] sm:$0xff] %v8289_v61  ;;  %v8294_v7 = vsel %vm8280_vm14, %v7965_v17, %v2683_v9  ;;  %v381_v39 = vsel %vm6260_vm11, 0, %v6259_v56  ;;  %vm263_vm9 = vc.u32 %v8274_v15, %v8255_v41 }
 0x1ab   :  { %10628 = vst [vmem:[#allocation58_spill] sm:$0xff] %v10627_v5  ;;  %v533_v62 = vsub.s32 32, %v532_v51  ;;  %v8300_v27 = vshll.u32 %v526_v3, 8  ;;  %v382_v32 = vsub.s32 32, %v381_v39  ;;  %v386_v14 = vsub.s32 4294967266, %v381_v39 }
 0x1ac   :  { %v265_v63 = vsel %vm263_vm9, %v264_v57, %v8256_v23  ;;  %v531_v58 = vshrl.u32 %v530_v26, 5  ;;  %v383_v8 = vshll.u32 %v8240_v2, %v381_v39  ;;  %v535_v4 = vshll.u32 %v10570_v45, %v532_v51 }
 0x1ad   :  { %v266_v0 = vadd.s32 %v265_v63, %v261_v44  ;;  %v536_v21 = vshrl.u32 %v10579_v34, %v533_v62  ;;  %v384_v10 = vshrl.u32 %v366_v38, %v382_v32  ;;  %v387_v24 = vadd.s32 127, %v386_v14 }
 0x1ae   :  { %v538_v9 = vshll.u32 %v10579_v34, %v532_v51  ;;  %v539_v31 = vshrl.u32 %v10566_v43, %v533_v62  ;;  %v541_v55 = vshll.u32 %v10566_v43, %v532_v51  ;;  %v542_v56 = vshrl.u32 %v10567_v37, %v533_v62 }
 0x1af   :  { %v267_v3 = vadd.s32 536870912, %v266_v0  ;;  %v417_v23 = vand.u32 2139095040, %v8265_v16  ;;  %v385_v26 = vor.u32 %v384_v10, %v383_v8  ;;  %v388_v2 = vshll.u32 %v387_v24, 23 }
 0x1b0   :  { %v537_v57 = vor.u32 %v536_v21, %v535_v4  ;;  %v540_v44 = vor.u32 %v539_v31, %v538_v9  ;;  %v543_v63 = vor.u32 %v542_v56, %v541_v55  ;;  %v544_v38 = vshll.u32 %v10567_v37, %v532_v51 }
 0x1b1   :  { %v8311_v39 = vshrl.u32 %v267_v3, 30  ;;  %v545_v32 = vshrl.u32 %v10589_v22, %v533_v62  ;;  %v8315_v14 = vpop.eup %7052  ;;  %v389_v35 = vor.u32 4788187, %v388_v2  ;;  %v534_v53 = vshrl.u32 %v10570_v45, %v533_v62 }
 0x1b2   :  { %10631 = vst [vmem:[#allocation61_spill] sm:$0xff] %v8315_v14  ;;  %v547_v20 = vshll.u32 %v10589_v22, %v532_v51  ;;  %v548_v5 = vshrl.u32 %v10571_v50, %v533_v62  ;;  %v392_v8 = vcvt.s32.f32 %v385_v26  ;;  %vm550_vm2 = vcmp.lt.s32.totalorder %v531_v58, 1 }
 0x1b3   :  { %10630 = vst [vmem:[#allocation60_spill] sm:$0xff] %v8311_v39  ;;  %v269_v4 = vshll.u32 %v8311_v39, 30  ;;  %v546_v21 = vor.u32 %v545_v32, %v544_v38  ;;  %v390_v10 = vand.u32 2147483647, %v389_v35  ;;  %vm552_vm11 = vcmp.lt.s32.totalorder %v531_v58, 3  ;;  %v88_v39 = vpop.permute.xlu1 %87 }
 0x1b4   :  { %v549_v24 = vor.u32 %v548_v5, %v547_v20  ;;  %vm553_vm9 = vcmp.lt.s32.totalorder %v531_v58, 4  ;;  %v558_v3 = vsel %vm550_vm2, %v537_v57, %v540_v44  ;;  %vm551_vm0 = vcmp.lt.s32.totalorder %v531_v58, 2 }
 0x1b5   :  { %v8321_v9 = vsub.s32 %v266_v0, %v269_v4  ;;  %v555_v31 = vsel %vm553_vm9, %v543_v63, 2102212464  ;;  %v559_v55 = vsel %vm553_vm9, %v546_v21, 920167782  ;;  %v393_v56 = vmul.f32 %v392_v8, %v390_v10 }
 0x1b6   :  { %v560_v2 = vsel %vm552_vm11, %v543_v63, %v559_v55  ;;  %v562_v51 = vsel %vm550_vm2, %v540_v44, %v543_v63  ;;  %v554_v26 = vsel %vm550_vm2, %v534_v53, %v537_v57  ;;  %v563_v38 = vsel %vm553_vm9, %v549_v24, 1326507024 }
 0x1b7   :  { %v272_v62 = vsub.s32 0, %v8321_v9  ;;  %v561_v14 = vsel %vm551_vm0, %v558_v3, %v560_v2  ;;  %v556_v32 = vsel %vm552_vm11, %v540_v44, %v555_v31  ;;  %v564_v35 = vsel %vm552_vm11, %v546_v21, %v563_v38 }
 0x1b8   :  { %v8326_v20 = vmul.u32.u64.low %v8300_v27, %v561_v14  ;;  %v8327_v5 = vmul.u32.u64.high %v8300_v27, %v561_v14, %v8326_v20  ;;  %v565_v8 = vsel %vm551_vm0, %v562_v51, %v564_v35  ;;  %v418_v4 = vshrl.u32 %v417_v23, 23 }
 0x1b9   :  { %v6254_v0 = vmin.u32 %v272_v62, %v8321_v9  ;;  %v10632_v63 = vand.u32 2147483647, %v8265_v16  ;;  %7054 = vsinq.f32 %v8249_v11  ;;  %v394_v53 = vxor.u32 2147483648, %v393_v56 }
 0x1ba   :  { %v8336_v57 = vmul.u32.u64.low %v8300_v27, %v565_v8  ;;  %v8337_v44 = vmul.u32.u64.high %v8300_v27, %v565_v8, %v8336_v57  ;;  %v557_v14 = vsel %vm551_vm0, %v554_v26, %v556_v32  ;;  %v6261_v24 = vadd.s32 4294967169, %v418_v4  ;;  %v73_v32 = vpop.permute.xlu0 %72 }
 0x1bb   :  { %v421_v10 = vand.u32 8388607, %v10632_v63  ;;  %v274_v21 = vclz %v6254_v0  ;;  %v10358_v31 = vand.u32 2147483647, %v8289_v61  ;;  %7056 = vcosq.f32 %v8294_v7 }
 0x1bc   :  { %v10633_v23 = vand.u32 2147483647, %v8039_v25  ;;  %v10634_v3 = vmov 0  ;;  %vm10369_vm11 = vcmp.lt.s32.totalorder %v8039_v25, 0  ;;  %v576_v11 = vadd.s32 1, %v8327_v5 }
 0x1bd   :  { %7058 = vsinq.f32 %v8294_v7  ;;  %v6255_v55 = vadd.s32 4294967294, %v274_v21  ;;  %v422_v58 = vor.u32 8388608, %v421_v10  ;;  %v424_v2 = vadd.s32 1, %v6261_v24 }
 0x1be   :  { %vm8344_vm2 = vcmp.le.f32.partialorder %v10633_v23, 0.7853982  ;;  %v395_v51 = vsel %vm10369_vm11, %v394_v53, %v393_v56  ;;  %v573_v62 = vmul.u32 %v8300_v27, %v557_v14  ;;  %vm575_vm0 = vc.u32 %v8337_v44, %v8326_v20 }
 0x1bf   :  { %v10635_v3 = vsel %vm8344_vm2, 4294967295, %v10634_v3  ;;  %v729_v26 = vand.u32 2139095040, %v8289_v61  ;;  %vm6256_vm9 = vcmp.lt.s32.totalorder %v6255_v55, 0  ;;  %v577_v38 = vsel %vm575_vm0, %v576_v11, %v8327_v5 }
 0x1c0   :  { %10636 = vst [vmem:[#allocation62_spill] sm:$0xff] %v10635_v3  ;;  %vm425_vm10 = vcmp.gt.s32.totalorder %v424_v2, 0  ;;  %v8360_v7 = vand.u32 8388607, %v10358_v31  ;;  %v262_v35 = vadd.s32 %v8255_v41, %v8274_v15  ;;  %v277_v56 = vsel %vm6256_vm9, 0, %v6255_v55 }
 0x1c1   :  { %v578_v0 = vadd.s32 %v577_v38, %v573_v62  ;;  %v426_v27 = vsel %vm425_vm10, %v424_v2, 0  ;;  %v8367_v8 = vsel %vm8344_vm2, %v8039_v25, %v395_v51  ;;  %v278_v4 = vsub.s32 32, %v277_v56 }
 0x1c2   :  { %v282_v63 = vsub.s32 4294967266, %v277_v56  ;;  %v8369_v5 = vshll.u32 %v422_v58, 8  ;;  %v428_v53 = vand.u32 31, %v426_v27  ;;  %v730_v57 = vshrl.u32 %v729_v26, 23 }
 0x1c3   :  { %v579_v10 = vadd.s32 536870912, %v578_v0  ;;  %v8372_v21 = vmul.f32 %v8262_v33, %v73_v32  ;;  %v279_v41 = vshll.u32 %v8321_v9, %v277_v56  ;;  %v280_v15 = vshrl.u32 %v262_v35, %v278_v4  ;;  %v8376_v23 = vpop.eup %7054 }
 0x1c4   :  { %v283_v14 = vadd.s32 127, %v282_v63  ;;  %10638 = vst [vmem:[#allocation64_spill] sm:$0xff] %v8376_v23  ;;  %v427_v55 = vshrl.u32 %v426_v27, 5  ;;  %v429_v2 = vsub.s32 32, %v428_v53  ;;  %v431_v58 = vshll.u32 %v10570_v45, %v428_v53 }
 0x1c5   :  { %10637 = vst [vmem:[#allocation63_spill] sm:$0xff] %v8372_v21  ;;  %v8378_v11 = vshrl.u32 %v579_v10, 30  ;;  %v281_v51 = vor.u32 %v280_v15, %v279_v41  ;;  %v434_v26 = vshll.u32 %v10579_v34, %v428_v53  ;;  %v437_v38 = vshll.u32 %v10566_v43, %v428_v53  ;;  %v8383_v32 = vpop.eup %7056 }
 0x1c6   :  { %v284_v62 = vshll.u32 %v283_v14, 23  ;;  %10640 = vst [vmem:[#allocation66_spill] sm:$0xff] %v8383_v32  ;;  %v432_v35 = vshrl.u32 %v10579_v34, %v429_v2  ;;  %v435_v56 = vshrl.u32 %v10566_v43, %v429_v2  ;;  %v440_v4 = vshll.u32 %v10567_v37, %v428_v53 }
 0x1c7   :  { %10639 = vst [vmem:[#allocation65_spill] sm:$0xff] %v8378_v11  ;;  %v581_v9 = vshll.u32 %v8378_v11, 30  ;;  %v8389_v27 = vpop.eup %7058  ;;  %v288_v10 = vcvt.s32.f32 %v281_v51  ;;  %v438_v41 = vshrl.u32 %v10567_v37, %v429_v2  ;;  %v441_v15 = vshrl.u32 %v10589_v22, %v429_v2 }
 0x1c8   :  { %10641 = vst [vmem:[#allocation67_spill] sm:$0xff] %v8389_v27  ;;  %v285_v63 = vor.u32 4788187, %v284_v62  ;;  %v433_v31 = vor.u32 %v432_v35, %v431_v58  ;;  %v436_v24 = vor.u32 %v435_v56, %v434_v26  ;;  %v443_v23 = vshll.u32 %v10589_v22, %v428_v53 }
 0x1c9   :  { %v8393_v14 = vsub.s32 %v578_v0, %v581_v9  ;;  %v439_v17 = vor.u32 %v438_v41, %v437_v38  ;;  %v442_v11 = vor.u32 %v441_v15, %v440_v4  ;;  %v444_v3 = vshrl.u32 %v10571_v50, %v429_v2 }
 0x1ca   :  { %v286_v32 = vand.u32 2147483647, %v285_v63  ;;  %v430_v62 = vshrl.u32 %v10570_v45, %v429_v2  ;;  %vm446_vm10 = vcmp.lt.s32.totalorder %v427_v55, 1  ;;  %vm448_vm0 = vcmp.lt.s32.totalorder %v427_v55, 3 }
 0x1cb   :  { %v584_v25 = vsub.s32 0, %v8393_v14  ;;  %v445_v27 = vor.u32 %v444_v3, %v443_v23  ;;  %vm449_vm9 = vcmp.lt.s32.totalorder %v427_v55, 4  ;;  %v454_v0 = vsel %vm446_vm10, %v433_v31, %v436_v24 }
 0x1cc   :  { %v289_v51 = vmul.f32 %v288_v10, %v286_v32  ;;  %v451_v26 = vsel %vm449_vm9, %v439_v17, 2102212464  ;;  %v455_v9 = vsel %vm449_vm9, %v442_v11, 920167782  ;;  %v458_v53 = vsel %vm446_vm10, %v436_v24, %v439_v17 }
 0x1cd   :  { %v6266_v58 = vmin.u32 %v584_v25, %v8393_v14  ;;  %vm447_vm11 = vcmp.lt.s32.totalorder %v427_v55, 2  ;;  %v456_v38 = vsel %vm448_vm0, %v439_v17, %v455_v9  ;;  %v459_v35 = vsel %vm449_vm9, %v445_v27, 1326507024 }
 0x1ce   :  { %v6273_v56 = vadd.s32 4294967169, %v730_v57  ;;  %v450_v63 = vsel %vm446_vm10, %v430_v62, %v433_v31  ;;  %v457_v2 = vsel %vm447_vm11, %v454_v0, %v456_v38  ;;  %v460_v41 = vsel %vm448_vm0, %v442_v11, %v459_v35 }
 0x1cf   :  { %v586_v4 = vclz %v6266_v58  ;;  %v452_v3 = vsel %vm448_vm0, %v436_v24, %v451_v26  ;;  %v461_v23 = vsel %vm447_vm11, %v458_v53, %v460_v41  ;;  %v290_v10 = vxor.u32 2147483648, %v289_v51 }
 0x1d0   :  { %v8406_v25 = vmul.u32.u64.low %v8369_v5, %v457_v2  ;;  %v8407_v32 = vmul.u32.u64.high %v8369_v5, %v457_v2, %v8406_v25  ;;  %v8411_v17 = vmul.u32.u64.low %v8369_v5, %v461_v23  ;;  %v8412_v57 = vmul.u32.u64.high %v8369_v5, %v461_v23, %v8411_v17 }
 0x1d1   :  { %v6267_v15 = vadd.s32 4294967294, %v586_v4  ;;  %7060 = vcosq.f32 %v8367_v8  ;;  %v10642_v31 = vand.u32 2147483647, %v8137_v42  ;;  %v10643_v11 = vmov 0 }
 0x1d2   :  { %vm10373_vm0 = vcmp.lt.s32.totalorder %v8137_v42, 0  ;;  %v736_v24 = vadd.s32 1, %v6273_v56  ;;  %v574_v27 = vadd.s32 %v8326_v20, %v8337_v44  ;;  %v453_v62 = vsel %vm447_vm11, %v450_v63, %v452_v3 }
 0x1d3   :  { %vm8417_vm10 = vcmp.le.f32.partialorder %v10642_v31, 0.7853982  ;;  %vm6268_vm9 = vcmp.lt.s32.totalorder %v6267_v15, 0  ;;  %v10646_v0 = vor.u32 8388608, %v8360_v7  ;;  %v472_v9 = vadd.s32 1, %v8407_v32 }
 0x1d4   :  { %v10644_v11 = vsel %vm8417_vm10, 4294967295, %v10643_v11  ;;  %v589_v26 = vsel %vm6268_vm9, 0, %v6267_v15  ;;  %vm737_vm14 = vcmp.gt.s32.totalorder %v736_v24, 0  ;;  %v625_v53 = vand.u32 2139095040, %v8372_v21 }
 0x1d5   :  { %10645 = vst [vmem:[#allocation68_spill] sm:$0xff] %v10644_v11  ;;  %v8427_v58 = vshll.u32 %v10646_v0, 8  ;;  %v291_v38 = vsel %vm10373_vm0, %v290_v10, %v289_v51  ;;  %v590_v35 = vsub.s32 32, %v589_v26  ;;  %v594_v56 = vsub.s32 4294967266, %v589_v26 }
 0x1d6   :  { %v10371_v20 = vand.u32 2147483647, %v8372_v21  ;;  %v591_v44 = vshll.u32 %v8393_v14, %v589_v26  ;;  %v469_v55 = vmul.u32 %v8369_v5, %v453_v62  ;;  %vm471_vm11 = vc.u32 %v8412_v57, %v8406_v25 }
 0x1d7   :  { %v738_v7 = vsel %vm737_vm14, %v736_v24, 0  ;;  %v592_v4 = vshrl.u32 %v574_v27, %v590_v35  ;;  %v595_v63 = vadd.s32 127, %v594_v56  ;;  %v473_v2 = vsel %vm471_vm11, %v472_v9, %v8407_v32 }
 0x1d8   :  { %v739_v41 = vshrl.u32 %v738_v7, 5  ;;  %v8442_v51 = vsel %vm8417_vm10, %v8137_v42, %v291_v38  ;;  %v474_v3 = vadd.s32 %v473_v2, %v469_v55  ;;  %v740_v23 = vand.u32 31, %v738_v7 }
 0x1d9   :  { %v626_v10 = vshrl.u32 %v625_v53, 23  ;;  %v593_v14 = vor.u32 %v592_v4, %v591_v44  ;;  %v596_v15 = vshll.u32 %v595_v63, 23  ;;  %v8446_v5 = vand.u32 8388607, %v10371_v20 }
 0x1da   :  { %vm758_vm9 = vcmp.lt.s32.totalorder %v739_v41, 1  ;;  %v475_v17 = vadd.s32 536870912, %v474_v3  ;;  %v741_v31 = vsub.s32 32, %v740_v23  ;;  %v743_v32 = vshll.u32 %v10570_v45, %v740_v23 }
 0x1db   :  { %v746_v24 = vshll.u32 %v10579_v34, %v740_v23  ;;  %vm759_vm14 = vcmp.lt.s32.totalorder %v739_v41, 2  ;;  %v597_v27 = vor.u32 4788187, %v596_v15  ;;  %v600_v62 = vcvt.s32.f32 %v593_v14  ;;  %v8453_v9 = vpop.eup %7060 }
 0x1dc   :  { %v749_v0 = vshll.u32 %v10566_v43, %v740_v23  ;;  %v752_v26 = vshll.u32 %v10567_v37, %v740_v23  ;;  %10647 = vst [vmem:[#allocation69_spill] sm:$0xff] %v8453_v9  ;;  %v8455_v53 = vshrl.u32 %v475_v17, 30  ;;  %v742_v38 = vshrl.u32 %v10570_v45, %v741_v31 }
 0x1dd   :  { %v744_v35 = vshrl.u32 %v10579_v34, %v741_v31  ;;  %v747_v56 = vshrl.u32 %v10566_v43, %v741_v31  ;;  %v598_v44 = vand.u32 2147483647, %v597_v27  ;;  %v750_v55 = vshrl.u32 %v10567_v37, %v741_v31 }
 0x1de   :  { %10648 = vst [vmem:[#allocation70_spill] sm:$0xff] %v8455_v53  ;;  %v753_v7 = vshrl.u32 %v10589_v22, %v741_v31  ;;  %v755_v4 = vshll.u32 %v10589_v22, %v740_v23  ;;  %v477_v63 = vshll.u32 %v8455_v53, 30  ;;  %v756_v15 = vshrl.u32 %v10571_v50, %v741_v31 }
 0x1df   :  { %v745_v2 = vor.u32 %v744_v35, %v743_v32  ;;  %v748_v14 = vor.u32 %v747_v56, %v746_v24  ;;  %v601_v17 = vmul.f32 %v600_v62, %v598_v44  ;;  %v751_v20 = vor.u32 %v750_v55, %v749_v0 }
 0x1e0   :  { %v754_v9 = vor.u32 %v753_v7, %v752_v26  ;;  %vm760_vm0 = vcmp.lt.s32.totalorder %v739_v41, 3  ;;  %v8465_v11 = vsub.s32 %v474_v3, %v477_v63  ;;  %v757_v42 = vor.u32 %v756_v15, %v755_v4 }
 0x1e1   :  { %vm761_vm11 = vcmp.lt.s32.totalorder %v739_v41, 4  ;;  %v762_v27 = vsel %vm758_vm9, %v742_v38, %v745_v2  ;;  %v602_v36 = vxor.u32 2147483648, %v601_v17  ;;  %v766_v23 = vsel %vm758_vm9, %v745_v2, %v748_v14 }
 0x1e2   :  { %v763_v48 = vsel %vm761_vm11, %v751_v20, 2102212464  ;;  %v767_v53 = vsel %vm761_vm11, %v754_v9, 920167782  ;;  %v480_v32 = vsub.s32 0, %v8465_v11  ;;  %v770_v62 = vsel %vm758_vm9, %v748_v14, %v751_v20 }
 0x1e3   :  { %v764_v31 = vsel %vm760_vm0, %v748_v14, %v763_v48  ;;  %v768_v24 = vsel %vm760_vm0, %v751_v20, %v767_v53  ;;  %v771_v0 = vsel %vm761_vm11, %v757_v42, 1326507024  ;;  %v6269_v26 = vadd.s32 4294967169, %v626_v10 }
 0x1e4   :  { %v769_v3 = vsel %vm759_vm14, %v766_v23, %v768_v24  ;;  %v8475_v38 = vmul.f32 %v8262_v33, %v88_v39  ;;  %vm10650_vm5 = vcmp.lt.s32.totalorder %v8148_v13, 0  ;;  %v6262_v56 = vmin.u32 %v480_v32, %v8465_v11 }
 0x1e5   :  { %v603_v35 = vsel %vm10650_vm5, %v602_v36, %v601_v17  ;;  %v772_v44 = vsel %vm760_vm0, %v754_v9, %v771_v0  ;;  %v630_v48 = vor.u32 8388608, %v8446_v5  ;;  %v765_v53 = vsel %vm759_vm14, %v762_v27, %v764_v31 }
 0x1e6   :  { %10649 = vst [vmem:[#allocation71_spill] sm:$0xff] %v8475_v38  ;;  %v773_v20 = vsel %vm759_vm14, %v770_v62, %v772_v44  ;;  %v8485_v55 = vmul.u32.u64.low %v8427_v58, %v769_v3  ;;  %v8486_v42 = vmul.u32.u64.high %v8427_v58, %v769_v3, %v8485_v55  ;;  %7062 = vsinq.f32 %v8367_v8 }
 0x1e7   :  { %v482_v39 = vclz %v6262_v56  ;;  %v8491_v36 = vmul.u32.u64.low %v8427_v58, %v773_v20  ;;  %v8492_v10 = vmul.u32.u64.high %v8427_v58, %v773_v20, %v8491_v36  ;;  %7064 = vcosq.f32 %v8442_v51 }
 0x1e8   :  { %v10651_v5 = vand.u32 2147483647, %v8148_v13  ;;  %v10652_v9 = vmov 0  ;;  %v632_v41 = vadd.s32 1, %v6269_v26  ;;  %v470_v8 = vadd.s32 %v8406_v25, %v8412_v57 }
 0x1e9   :  { %v6263_v4 = vadd.s32 4294967294, %v482_v39  ;;  %v781_v63 = vmul.u32 %v8427_v58, %v765_v53  ;;  %v784_v2 = vadd.s32 1, %v8486_v42  ;;  %v8510_v14 = vshll.u32 %v630_v48, 8 }
 0x1ea   :  { %vm8497_vm5 = vcmp.le.f32.partialorder %v10651_v5, 0.7853982  ;;  %vm633_vm0 = vcmp.gt.s32.totalorder %v632_v41, 0  ;;  %vm783_vm14 = vc.u32 %v8492_v10, %v8485_v55  ;;  %v937_v27 = vand.u32 2139095040, %v8475_v38 }
 0x1eb   :  { %v10653_v9 = vsel %vm8497_vm5, 4294967295, %v10652_v9  ;;  %v8504_v7 = vsel %vm8497_vm5, %v8148_v13, %v603_v35  ;;  %vm6264_vm9 = vcmp.lt.s32.totalorder %v6263_v4, 0  ;;  %v634_v17 = vsel %vm633_vm0, %v632_v41, 0 }
 0x1ec   :  { %10654 = vst [vmem:[#allocation72_spill] sm:$0xff] %v10653_v9  ;;  %v485_v23 = vsel %vm6264_vm9, 0, %v6263_v4  ;;  %v785_v25 = vsel %vm783_vm14, %v784_v2, %v8486_v42  ;;  %v635_v57 = vshrl.u32 %v634_v17, 5  ;;  %v636_v32 = vand.u32 31, %v634_v17 }
 0x1ed   :  { %v486_v58 = vsub.s32 32, %v485_v23  ;;  %v487_v31 = vshll.u32 %v8465_v11, %v485_v23  ;;  %v490_v24 = vsub.s32 4294967266, %v485_v23  ;;  %v786_v62 = vadd.s32 %v785_v25, %v781_v63 }
 0x1ee   :  { %v637_v3 = vsub.s32 32, %v636_v32  ;;  %v639_v0 = vshll.u32 %v10570_v45, %v636_v32  ;;  %v642_v26 = vshll.u32 %v10579_v34, %v636_v32  ;;  %v645_v35 = vshll.u32 %v10566_v43, %v636_v32 }
 0x1ef   :  { %v488_v56 = vshrl.u32 %v470_v8, %v486_v58  ;;  %v491_v44 = vadd.s32 127, %v490_v24  ;;  %v787_v48 = vadd.s32 536870912, %v786_v62  ;;  %v648_v53 = vshll.u32 %v10567_v37, %v636_v32 }
 0x1f0   :  { %v638_v20 = vshrl.u32 %v10570_v45, %v637_v3  ;;  %v640_v42 = vshrl.u32 %v10579_v34, %v637_v3  ;;  %v643_v11 = vshrl.u32 %v10566_v43, %v637_v3  ;;  %v646_v39 = vshrl.u32 %v10567_v37, %v637_v3  ;;  %v8526_v36 = vpop.eup %7062 }
 0x1f1   :  { %v489_v5 = vor.u32 %v488_v56, %v487_v31  ;;  %v492_v41 = vshll.u32 %v491_v44, 23  ;;  %v8528_v4 = vshrl.u32 %v787_v48, 30  ;;  %v649_v8 = vshrl.u32 %v10589_v22, %v637_v3  ;;  %v8531_v63 = vpop.eup %7064 }
 0x1f2   :  { %v641_v2 = vor.u32 %v640_v42, %v639_v0  ;;  %v644_v17 = vor.u32 %v643_v11, %v642_v26  ;;  %v647_v23 = vor.u32 %v646_v39, %v645_v35  ;;  %v651_v25 = vshll.u32 %v10589_v22, %v636_v32  ;;  %v83_v26 = vpop.permute.xlu0 %82 }
 0x1f3   :  { %10655 = vst [vmem:[#allocation73_spill] sm:$0xff] %v8528_v4  ;;  %v493_v58 = vor.u32 4788187, %v492_v41  ;;  %v496_v24 = vcvt.s32.f32 %v489_v5  ;;  %v789_v15 = vshll.u32 %v8528_v4, 30  ;;  %v650_v9 = vor.u32 %v649_v8, %v648_v53 }
 0x1f4   :  { %v652_v13 = vshrl.u32 %v10571_v50, %v637_v3  ;;  %vm654_vm11 = vcmp.lt.s32.totalorder %v635_v57, 1  ;;  %vm655_vm0 = vcmp.lt.s32.totalorder %v635_v57, 2  ;;  %vm656_vm9 = vcmp.lt.s32.totalorder %v635_v57, 3 }
 0x1f5   :  { %v494_v31 = vand.u32 2147483647, %v493_v58  ;;  %v8536_v56 = vsub.s32 %v786_v62, %v789_v15  ;;  %vm657_vm14 = vcmp.lt.s32.totalorder %v635_v57, 4  ;;  %v658_v0 = vsel %vm654_vm11, %v638_v20, %v641_v2 }
 0x1f6   :  { %v653_v35 = vor.u32 %v652_v13, %v651_v25  ;;  %v659_v44 = vsel %vm657_vm14, %v647_v23, 2102212464  ;;  %v662_v32 = vsel %vm654_vm11, %v641_v2, %v644_v17  ;;  %v663_v48 = vsel %vm657_vm14, %v650_v9, 920167782 }
 0x1f7   :  { %v497_v42 = vmul.f32 %v496_v24, %v494_v31  ;;  %v792_v53 = vsub.s32 0, %v8536_v56  ;;  %v660_v3 = vsel %vm656_vm9, %v644_v17, %v659_v44  ;;  %v664_v11 = vsel %vm656_vm9, %v647_v23, %v663_v48 }
 0x1f8   :  { %v665_v39 = vsel %vm655_vm0, %v662_v32, %v664_v11  ;;  %v666_v15 = vsel %vm654_vm11, %v644_v17, %v647_v23  ;;  %v667_v62 = vsel %vm657_vm14, %v653_v35, 1326507024  ;;  %v8546_v20 = vmul.f32 %v8262_v33, %v83_v26 }
 0x1f9   :  { %v6274_v13 = vmin.u32 %v792_v53, %v8536_v56  ;;  %v661_v5 = vsel %vm655_vm0, %v658_v0, %v660_v3  ;;  %v668_v41 = vsel %vm656_vm9, %v650_v9, %v667_v62  ;;  %v10656_v8 = vand.u32 2147483647, %v8475_v38  ;;  %v98_v3 = vpop.permute.xlu1 %97 }
 0x1fa   :  { %v669_v25 = vsel %vm655_vm0, %v666_v15, %v668_v41  ;;  %v8555_v58 = vmul.u32.u64.low %v8510_v14, %v665_v39  ;;  %v8556_v24 = vmul.u32.u64.high %v8510_v14, %v665_v39, %v8555_v58  ;;  %v938_v17 = vshrl.u32 %v937_v27, 23 }
 0x1fb   :  { %v941_v2 = vand.u32 8388607, %v10656_v8  ;;  %v498_v23 = vxor.u32 2147483648, %v497_v42  ;;  %v794_v31 = vclz %v6274_v13  ;;  %7066 = vsinq.f32 %v8442_v51 }
 0x1fc   :  { %v8560_v26 = vmul.u32.u64.low %v8510_v14, %v669_v25  ;;  %v8561_v35 = vmul.u32.u64.high %v8510_v14, %v669_v25, %v8560_v26  ;;  %v6281_v9 = vadd.s32 4294967169, %v938_v17  ;;  %7068 = vcosq.f32 %v8504_v7 }
 0x1fd   :  { %vm10387_vm11 = vcmp.lt.s32.totalorder %v8265_v16, 0  ;;  %v6275_v57 = vadd.s32 4294967294, %v794_v31  ;;  %v833_v0 = vand.u32 2139095040, %v8546_v20  ;;  %v782_v44 = vadd.s32 %v8485_v55, %v8492_v10 }
 0x1fe   :  { %v677_v27 = vmul.u32 %v8510_v14, %v661_v5  ;;  %v680_v32 = vadd.s32 1, %v8556_v24  ;;  %v944_v48 = vadd.s32 1, %v6281_v9  ;;  %v499_v53 = vsel %vm10387_vm11, %v498_v23, %v497_v42 }
 0x1ff   :  { %vm6276_vm0 = vcmp.lt.s32.totalorder %v6275_v57, 0  ;;  %vm679_vm9 = vc.u32 %v8561_v35, %v8555_v58  ;;  %v942_v51 = vor.u32 8388608, %v941_v2  ;;  %v834_v15 = vshrl.u32 %v833_v0, 23 }
 0x200   :  { %v797_v11 = vsel %vm6276_vm0, 0, %v6275_v57  ;;  %v681_v39 = vsel %vm679_vm9, %v680_v32, %v8556_v24  ;;  %vm945_vm14 = vcmp.gt.s32.totalorder %v944_v48, 0  ;;  %v10388_v62 = vand.u32 2147483647, %v8546_v20 }
 0x201   :  { %v798_v55 = vsub.s32 32, %v797_v11  ;;  %v802_v10 = vsub.s32 4294967266, %v797_v11  ;;  %v682_v14 = vadd.s32 %v681_v39, %v677_v27  ;;  %7070 = vsinq.f32 %v8504_v7 }
 0x202   :  { %v10657_v42 = vand.u32 2147483647, %v8265_v16  ;;  %v10658_v13 = vmov 0  ;;  %v946_v5 = vsel %vm945_vm14, %v944_v48, 0  ;;  %v8585_v41 = vmul.f32 %v8262_v33, %v98_v3 }
 0x203   :  { %v799_v8 = vshll.u32 %v8536_v56, %v797_v11  ;;  %v800_v2 = vshrl.u32 %v782_v44, %v798_v55  ;;  %v803_v25 = vadd.s32 127, %v802_v10  ;;  %v683_v24 = vadd.s32 536870912, %v682_v14 }
 0x204   :  { %vm8580_vm11 = vcmp.le.f32.partialorder %v10657_v42, 0.7853982  ;;  %10661 = vst [vmem:[#allocation75_spill] sm:$0xff] %v8585_v41  ;;  %v948_v7 = vand.u32 31, %v946_v5  ;;  %v8593_v23 = vshll.u32 %v942_v51, 8  ;;  %v6277_v31 = vadd.s32 4294967169, %v834_v15 }
 0x205   :  { %v10659_v13 = vsel %vm8580_vm11, 4294967295, %v10658_v13  ;;  %v8591_v17 = vsel %vm8580_vm11, %v8265_v16, %v499_v53  ;;  %v801_v26 = vor.u32 %v800_v2, %v799_v8  ;;  %v804_v9 = vshll.u32 %v803_v25, 23  ;;  %v8601_v56 = vpop.eup %7066 }
 0x206   :  { %10660 = vst [vmem:[#allocation74_spill] sm:$0xff] %v10659_v13  ;;  %v8595_v57 = vshrl.u32 %v683_v24, 30  ;;  %v8599_v33 = vand.u32 8388607, %v10388_v62  ;;  %v947_v0 = vshrl.u32 %v946_v5, 5  ;;  %v949_v44 = vsub.s32 32, %v948_v7  ;;  %v8605_v48 = vpop.eup %7068 }
 0x207   :  { %v951_v27 = vshll.u32 %v10570_v45, %v948_v7  ;;  %v954_v32 = vshll.u32 %v10579_v34, %v948_v7  ;;  %10663 = vst [vmem:[#allocation77_spill] sm:$0xff] %v8605_v48  ;;  %v805_v53 = vor.u32 4788187, %v804_v9  ;;  %v808_v51 = vcvt.s32.f32 %v801_v26 }
 0x208   :  { %10662 = vst [vmem:[#allocation76_spill] sm:$0xff] %v8595_v57  ;;  %v685_v3 = vshll.u32 %v8595_v57, 30  ;;  %v957_v11 = vshll.u32 %v10566_v43, %v948_v7  ;;  %v952_v39 = vshrl.u32 %v10579_v34, %v949_v44  ;;  %v955_v15 = vshrl.u32 %v10566_v43, %v949_v44 }
 0x209   :  { %v958_v55 = vshrl.u32 %v10567_v37, %v949_v44  ;;  %v960_v10 = vshll.u32 %v10567_v37, %v948_v7  ;;  %v806_v42 = vand.u32 2147483647, %v805_v53  ;;  %v961_v8 = vshrl.u32 %v10589_v22, %v949_v44 }
 0x20a   :  { %v8613_v5 = vsub.s32 %v682_v14, %v685_v3  ;;  %v963_v2 = vshll.u32 %v10589_v22, %v948_v7  ;;  %v953_v25 = vor.u32 %v952_v39, %v951_v27  ;;  %v956_v24 = vor.u32 %v955_v15, %v954_v32 }
 0x20b   :  { %v959_v26 = vor.u32 %v958_v55, %v957_v11  ;;  %v964_v9 = vshrl.u32 %v10571_v50, %v949_v44  ;;  %v962_v4 = vor.u32 %v961_v8, %v960_v10  ;;  %vm966_vm9 = vcmp.lt.s32.totalorder %v947_v0, 1  ;;  %v8620_v48 = vpop.eup %7070 }
 0x20c   :  { %v688_v62 = vsub.s32 0, %v8613_v5  ;;  %v840_v57 = vadd.s32 1, %v6277_v31  ;;  %10664 = vst [vmem:[#allocation78_spill] sm:$0xff] %v8620_v48  ;;  %v809_v14 = vmul.f32 %v808_v51, %v806_v42  ;;  %v950_v53 = vshrl.u32 %v10570_v45, %v949_v44 }
 0x20d   :  { %v965_v3 = vor.u32 %v964_v9, %v963_v2  ;;  %vm969_vm14 = vcmp.lt.s32.totalorder %v947_v0, 4  ;;  %vm967_vm5 = vcmp.lt.s32.totalorder %v947_v0, 2  ;;  %v974_v32 = vsel %vm966_vm9, %v953_v25, %v956_v24 }
 0x20e   :  { %v6270_v7 = vmin.u32 %v688_v62, %v8613_v5  ;;  %v971_v27 = vsel %vm969_vm14, %v959_v26, 2102212464  ;;  %vm968_vm15 = vcmp.lt.s32.totalorder %v947_v0, 3  ;;  %v975_v11 = vsel %vm969_vm14, %v962_v4, 920167782 }
 0x20f   :  { %v978_v39 = vsel %vm966_vm9, %v956_v24, %v959_v26  ;;  %v979_v15 = vsel %vm969_vm14, %v965_v3, 1326507024  ;;  %v970_v31 = vsel %vm966_vm9, %v950_v53, %v953_v25  ;;  %v972_v10 = vsel %vm968_vm15, %v956_v24, %v971_v27 }
 0x210   :  { %v690_v55 = vclz %v6270_v7  ;;  %v976_v51 = vsel %vm968_vm15, %v959_v26, %v975_v11  ;;  %v810_v42 = vxor.u32 2147483648, %v809_v14  ;;  %v678_v44 = vadd.s32 %v8555_v58, %v8561_v35 }
 0x211   :  { %v977_v62 = vsel %vm967_vm5, %v974_v32, %v976_v51  ;;  %v980_v8 = vsel %vm968_vm15, %v962_v4, %v979_v15  ;;  %v838_v48 = vor.u32 8388608, %v8599_v33  ;;  %vm841_vm0 = vcmp.gt.s32.totalorder %v840_v57, 0 }
 0x212   :  { %v6271_v2 = vadd.s32 4294967294, %v690_v55  ;;  %v981_v9 = vsel %vm967_vm5, %v978_v39, %v980_v8  ;;  %v973_v3 = vsel %vm967_vm5, %v970_v31, %v972_v10  ;;  %v842_v24 = vsel %vm841_vm0, %v840_v57, 0 }
 0x213   :  { %v8634_v7 = vmul.u32.u64.low %v8593_v23, %v981_v9  ;;  %v8635_v25 = vmul.u32.u64.high %v8593_v23, %v981_v9, %v8634_v7  ;;  %v8638_v26 = vmul.u32.u64.low %v8593_v23, %v977_v62  ;;  %v8639_v58 = vmul.u32.u64.high %v8593_v23, %v977_v62, %v8638_v26 }
 0x214   :  { %vm6272_vm9 = vcmp.lt.s32.totalorder %v6271_v2, 0  ;;  %v8642_v4 = vshrl.u32 %v842_v24, 5  ;;  %vm10665_vm15 = vcmp.lt.s32.totalorder %v8289_v61, 0  ;;  %v844_v53 = vand.u32 31, %v842_v24 }
 0x215   :  { %v811_v35 = vsel %vm10665_vm15, %v810_v42, %v809_v14  ;;  %v693_v33 = vsel %vm6272_vm9, 0, %v6271_v2  ;;  %v989_v11 = vmul.u32 %v8593_v23, %v973_v3  ;;  %v8648_v57 = vshll.u32 %v838_v48, 8 }
 0x216   :  { %v694_v27 = vsub.s32 32, %v693_v33  ;;  %v698_v32 = vsub.s32 4294967266, %v693_v33  ;;  %v695_v39 = vshll.u32 %v8613_v5, %v693_v33  ;;  %vm991_vm5 = vc.u32 %v8635_v25, %v8638_v26 }
 0x217   :  { %v845_v15 = vsub.s32 32, %v844_v53  ;;  %vm862_vm0 = vcmp.lt.s32.totalorder %v8642_v4, 1  ;;  %v992_v31 = vadd.s32 1, %v8639_v58  ;;  %v847_v10 = vshll.u32 %v10570_v45, %v844_v53 }
 0x218   :  { %v696_v55 = vshrl.u32 %v678_v44, %v694_v27  ;;  %v699_v14 = vadd.s32 127, %v698_v32  ;;  %v10666_v51 = vand.u32 2147483647, %v8289_v61  ;;  %v10667_v23 = vmov 0 }
 0x219   :  { %v848_v48 = vshrl.u32 %v10579_v34, %v845_v15  ;;  %v850_v5 = vshll.u32 %v10579_v34, %v844_v53  ;;  %v851_v42 = vshrl.u32 %v10566_v43, %v845_v15  ;;  %v853_v62 = vshll.u32 %v10566_v43, %v844_v53 }
 0x21a   :  { %vm8658_vm14 = vcmp.le.f32.partialorder %v10666_v51, 0.7853982  ;;  %v697_v44 = vor.u32 %v696_v55, %v695_v39  ;;  %v700_v8 = vshll.u32 %v699_v14, 23  ;;  %v993_v2 = vsel %vm991_vm5, %v992_v31, %v8639_v58 }
 0x21b   :  { %v10668_v23 = vsel %vm8658_vm14, 4294967295, %v10667_v23  ;;  %v854_v9 = vshrl.u32 %v10567_v37, %v845_v15  ;;  %v994_v3 = vadd.s32 %v993_v2, %v989_v11  ;;  %v846_v7 = vshrl.u32 %v10570_v45, %v845_v15 }
 0x21c   :  { %10669 = vst [vmem:[#allocation79_spill] sm:$0xff] %v10668_v23  ;;  %v849_v24 = vor.u32 %v848_v48, %v847_v10  ;;  %v852_v33 = vor.u32 %v851_v42, %v850_v5  ;;  %v701_v27 = vor.u32 4788187, %v700_v8  ;;  %v856_v51 = vshll.u32 %v10567_v37, %v844_v53 }
 0x21d   :  { %v855_v32 = vor.u32 %v854_v9, %v853_v62  ;;  %v857_v0 = vshrl.u32 %v10589_v22, %v845_v15  ;;  %v704_v13 = vcvt.s32.f32 %v697_v44  ;;  %v995_v39 = vadd.s32 536870912, %v994_v3 }
 0x21e   :  { %v859_v55 = vshll.u32 %v10589_v22, %v844_v53  ;;  %v860_v58 = vshrl.u32 %v10571_v50, %v845_v15  ;;  %v702_v14 = vand.u32 2147483647, %v701_v27  ;;  %vm863_vm15 = vcmp.lt.s32.totalorder %v8642_v4, 2 }
 0x21f   :  { %v858_v31 = vor.u32 %v857_v0, %v856_v51  ;;  %vm865_vm5 = vcmp.lt.s32.totalorder %v8642_v4, 4  ;;  %v8676_v11 = vshrl.u32 %v995_v39, 30  ;;  %vm864_vm9 = vcmp.lt.s32.totalorder %v8642_v4, 3 }
 0x220   :  { %v861_v10 = vor.u32 %v860_v58, %v859_v55  ;;  %v867_v48 = vsel %vm865_vm5, %v855_v32, 2102212464  ;;  %v705_v5 = vmul.f32 %v704_v13, %v702_v14  ;;  %v866_v53 = vsel %vm862_vm0, %v846_v7, %v849_v24 }
 0x221   :  { %10670 = vst [vmem:[#allocation80_spill] sm:$0xff] %v8676_v11  ;;  %v870_v15 = vsel %vm862_vm0, %v849_v24, %v852_v33  ;;  %v871_v0 = vsel %vm865_vm5, %v858_v31, 920167782  ;;  %v997_v42 = vshll.u32 %v8676_v11, 30  ;;  %v868_v62 = vsel %vm864_vm9, %v852_v33, %v867_v48 }
 0x222   :  { %v872_v44 = vsel %vm864_vm9, %v855_v32, %v871_v0  ;;  %v874_v8 = vsel %vm862_vm0, %v852_v33, %v855_v32  ;;  %v814_v13 = vsel %vm8658_vm14, %v8289_v61, %v811_v35  ;;  %v706_v2 = vxor.u32 2147483648, %v705_v5  ;;  %v93_v33 = vpop.permute.xlu0 %92 }
 0x223   :  { %v873_v9 = vsel %vm863_vm15, %v870_v15, %v872_v44  ;;  %v875_v7 = vsel %vm865_vm5, %v861_v10, 1326507024  ;;  %v8697_v24 = vsub.s32 %v994_v3, %v997_v42  ;;  %vm10671_vm0 = vcmp.lt.s32.totalorder %v8372_v21, 0 }
 0x224   :  { %v876_v27 = vsel %vm864_vm9, %v858_v31, %v875_v7  ;;  %v8700_v51 = vmul.u32.u64.low %v8648_v57, %v873_v9  ;;  %v8701_v39 = vmul.u32.u64.high %v8648_v57, %v873_v9, %v8700_v51  ;;  %v707_v32 = vsel %vm10671_vm0, %v706_v2, %v705_v5 }
 0x225   :  { %v869_v35 = vsel %vm863_vm15, %v866_v53, %v868_v62  ;;  %v877_v55 = vsel %vm863_vm15, %v874_v8, %v876_v27  ;;  %v1145_v58 = vand.u32 2139095040, %v8585_v41  ;;  %v1000_v3 = vsub.s32 0, %v8697_v24  ;;  %v8722_v53 = vld [vmem:[%s10262_s1] ss:$0 sm:$0xff]  ;;  %v108_v27 = vpop.permute.xlu1 %107 }
 0x226   :  { %v8713_v14 = vmul.u32.u64.low %v8648_v57, %v877_v55  ;;  %v8714_v31 = vmul.u32.u64.high %v8648_v57, %v877_v55, %v8713_v14  ;;  %v10672_v10 = vand.u32 2147483647, %v8585_v41  ;;  %7072 = vcosq.f32 %v8591_v17 }
 0x227   :  { %v1146_v5 = vshrl.u32 %v1145_v58, 23  ;;  %v8725_v4 = vmul.f32 %v8722_v53, %v93_v33  ;;  %7074 = vsinq.f32 %v8591_v17  ;;  %v10673_v15 = vand.u32 2147483647, %v8372_v21 }
 0x228   :  { %v1149_v48 = vand.u32 8388607, %v10672_v10  ;;  %v10674_v0 = vmov 0  ;;  %v6282_v42 = vmin.u32 %v1000_v3, %v8697_v24  ;;  %v888_v62 = vadd.s32 1, %v8701_v39 }
 0x229   :  { %vm8730_vm9 = vcmp.le.f32.partialorder %v10673_v15, 0.7853982  ;;  %7076 = vcosq.f32 %v814_v13  ;;  %v885_v8 = vmul.u32 %v8648_v57, %v869_v35  ;;  %v6289_v2 = vadd.s32 4294967169, %v1146_v5 }
 0x22a   :  { %v10675_v0 = vsel %vm8730_vm9, 4294967295, %v10674_v0  ;;  %v710_v44 = vsel %vm8730_vm9, %v8372_v21, %v707_v32  ;;  %v1002_v9 = vclz %v6282_v42  ;;  %vm887_vm15 = vc.u32 %v8714_v31, %v8700_v51 }
 0x22b   :  { %10676 = vst [vmem:[#allocation81_spill] sm:$0xff] %v10675_v0  ;;  %v1150_v17 = vor.u32 8388608, %v1149_v48  ;;  %v1041_v7 = vand.u32 2139095040, %v8725_v4  ;;  %7078 = vsinq.f32 %v814_v13  ;;  %v889_v33 = vsel %vm887_vm15, %v888_v62, %v8701_v39 }
 0x22c   :  { %v1152_v55 = vadd.s32 1, %v6289_v2  ;;  %7080 = vcosq.f32 %v710_v44  ;;  %v6283_v58 = vadd.s32 4294967294, %v1002_v9  ;;  %v890_v3 = vadd.s32 %v889_v33, %v885_v8 }
 0x22d   :  { %v1042_v14 = vshrl.u32 %v1041_v7, 23  ;;  %7082 = vsinq.f32 %v710_v44  ;;  %v990_v57 = vadd.s32 %v8638_v26, %v8635_v25  ;;  %v8747_v32 = vmul.f32 %v8722_v53, %v108_v27 }
 0x22e   :  { %vm1153_vm5 = vcmp.gt.s32.totalorder %v1152_v55, 0  ;;  %vm6284_vm0 = vcmp.lt.s32.totalorder %v6283_v58, 0  ;;  %v891_v35 = vadd.s32 536870912, %v890_v3  ;;  %v8749_v48 = vshll.u32 %v1150_v17, 8 }
 0x22f   :  { %v1154_v10 = vsel %vm1153_vm5, %v1152_v55, 0  ;;  %v1005_v13 = vsel %vm6284_vm0, 0, %v6283_v58  ;;  %v8752_v15 = vadd.s32 4294967169, %v1042_v14  ;;  %v10720_v6 = vmov 0.0  }
 0x230   :  { %v1156_v39 = vand.u32 31, %v1154_v10  ;;  %v1006_v42 = vsub.s32 32, %v1005_v13  ;;  %v1010_v62 = vsub.s32 4294967266, %v1005_v13  ;;  %v8754_v44 = vshrl.u32 %v891_v35, 30  ;;  %v8758_v26 = vpop.eup %7072 }
 0x231   :  { %v8756_v25 = vshrl.u32 %v1154_v10, 5  ;;  %10678 = vst [vmem:[#allocation83_spill] sm:$0xff] %v8758_v26  ;;  %v1007_v8 = vshll.u32 %v8697_v24, %v1005_v13  ;;  %v8763_v7 = vpop.eup %7074 }
 0x232   :  { %10677 = vst [vmem:[#allocation82_spill] sm:$0xff] %v8754_v44  ;;  %v1157_v2 = vsub.s32 32, %v1156_v39  ;;  %v1159_v9 = vshll.u32 %v10570_v45, %v1156_v39  ;;  %v1162_v17 = vshll.u32 %v10579_v34, %v1156_v39  ;;  %10679 = vst [vmem:[#allocation84_spill] sm:$0xff] %v8763_v7  ;;  %v1008_v27 = vshrl.u32 %v990_v57, %v1006_v42 }
 0x233   :  { %v1011_v33 = vadd.s32 127, %v1010_v62  ;;  %v893_v55 = vshll.u32 %v8754_v44, 30  ;;  %v1165_v58 = vshll.u32 %v10566_v43, %v1156_v39  ;;  %v8767_v14 = vpop.eup %7076  ;;  %v1168_v13 = vshll.u32 %v10567_v37, %v1156_v39 }
 0x234   :  { %10680 = vst [vmem:[#allocation85_spill] sm:$0xff] %v8767_v14  ;;  %v1160_v35 = vshrl.u32 %v10579_v34, %v1157_v2  ;;  %v1163_v10 = vshrl.u32 %v10566_v43, %v1157_v2  ;;  %v1166_v24 = vshrl.u32 %v10567_v37, %v1157_v2  ;;  %v1009_v5 = vor.u32 %v1008_v27, %v1007_v8 }
 0x235   :  { %v1012_v11 = vshll.u32 %v1011_v33, 23  ;;  %v8773_v23 = vsub.s32 %v890_v3, %v893_v55  ;;  %v1169_v57 = vshrl.u32 %v10589_v22, %v1157_v2  ;;  %v8776_v42 = vpop.eup %7078  ;;  %v1158_v62 = vshrl.u32 %v10570_v45, %v1157_v2 }
 0x236   :  { %10681 = vst [vmem:[#allocation86_spill] sm:$0xff] %v8776_v42  ;;  %v1161_v44 = vor.u32 %v1160_v35, %v1159_v9  ;;  %v1164_v14 = vor.u32 %v1163_v10, %v1162_v17  ;;  %v1167_v61 = vor.u32 %v1166_v24, %v1165_v58  ;;  %v8779_v0 = vpop.eup %7080  ;;  %v1171_v8 = vshll.u32 %v10589_v22, %v1156_v39 }
 0x237   :  { %10682 = vst [vmem:[#allocation87_spill] sm:$0xff] %v8779_v0  ;;  %v1013_v21 = vor.u32 4788187, %v1012_v11  ;;  %v896_v26 = vsub.s32 0, %v8773_v23  ;;  %v1170_v7 = vor.u32 %v1169_v57, %v1168_v13  ;;  %v8783_v27 = vpop.eup %7082  ;;  %v1016_v3 = vcvt.s32.f32 %v1009_v5 }
 0x238   :  { %10683 = vst [vmem:[#allocation88_spill] sm:$0xff] %v8783_v27  ;;  %v1172_v33 = vshrl.u32 %v10571_v50, %v1157_v2  ;;  %vm1174_vm5 = vcmp.lt.s32.totalorder %v8756_v25, 1  ;;  %vm1175_vm0 = vcmp.lt.s32.totalorder %v8756_v25, 2  ;;  %vm1176_vm14 = vcmp.lt.s32.totalorder %v8756_v25, 3 }
 0x239   :  { %v1014_v9 = vand.u32 2147483647, %v1013_v21  ;;  %v6278_v17 = vmin.u32 %v896_v26, %v8773_v23  ;;  %vm1177_vm9 = vcmp.lt.s32.totalorder %v8756_v25, 4  ;;  %v1182_v55 = vsel %vm1174_vm5, %v1161_v44, %v1164_v14 }
 0x23a   :  { %v1173_v11 = vor.u32 %v1172_v33, %v1171_v8  ;;  %v1179_v39 = vsel %vm1177_vm9, %v1167_v61, 2102212464  ;;  %v1183_v58 = vsel %vm1177_vm9, %v1170_v7, 920167782  ;;  %v10684_v5 = vand.u32 2147483647, %v8475_v38 }
 0x23b   :  { %v10685_v2 = vmov 0  ;;  %v1017_v35 = vmul.f32 %v1016_v3, %v1014_v9  ;;  %v898_v21 = vclz %v6278_v17  ;;  %v1178_v26 = vsel %vm1174_vm5, %v1158_v62, %v1161_v44 }
 0x23c   :  { %vm8796_vm15 = vcmp.le.f32.partialorder %v10684_v5, 0.7853982  ;;  %v1184_v10 = vsel %vm1176_vm14, %v1167_v61, %v1183_v58  ;;  %v1180_v24 = vsel %vm1176_vm14, %v1164_v14, %v1179_v39  ;;  %v1186_v57 = vsel %vm1174_vm5, %v1164_v14, %v1167_v61 }
 0x23d   :  { %v10686_v2 = vsel %vm8796_vm15, 4294967295, %v10685_v2  ;;  %v1185_v13 = vsel %vm1175_vm0, %v1182_v55, %v1184_v10  ;;  %v1187_v8 = vsel %vm1177_vm9, %v1173_v11, 1326507024  ;;  %v1018_v33 = vxor.u32 2147483648, %v1017_v35 }
 0x23e   :  { %10687 = vst [vmem:[#allocation89_spill] sm:$0xff] %v10686_v2  ;;  %v6279_v5 = vadd.s32 4294967294, %v898_v21  ;;  %v1188_v3 = vsel %vm1176_vm14, %v1170_v7, %v1187_v8  ;;  %v1353_v44 = vand.u32 2139095040, %v8747_v32  ;;  %v1048_v39 = vadd.s32 1, %v8752_v15 }
 0x23f   :  { %v1189_v62 = vsel %vm1175_vm0, %v1186_v57, %v1188_v3  ;;  %v8816_v9 = vmul.u32.u64.low %v8749_v48, %v1185_v13  ;;  %v8817_v17 = vmul.u32.u64.high %v8749_v48, %v1185_v13, %v8816_v9  ;;  %v1181_v61 = vsel %vm1175_vm0, %v1178_v26, %v1180_v24 }
 0x240   :  { %vm6280_vm11 = vcmp.lt.s32.totalorder %v6279_v5, 0  ;;  %v8824_v14 = vmul.u32.u64.low %v8749_v48, %v1189_v62  ;;  %v8825_v11 = vmul.u32.u64.high %v8749_v48, %v1189_v62, %v8824_v14  ;;  %v886_v7 = vadd.s32 %v8700_v51, %v8714_v31 }
 0x241   :  { %v901_v55 = vsel %vm6280_vm11, 0, %v6279_v5  ;;  %v10688_v58 = vand.u32 2147483647, %v8725_v4  ;;  %vm1049_vm14 = vcmp.gt.s32.totalorder %v1048_v39, 0  ;;  %vm10689_vm9 = vcmp.lt.s32.totalorder %v8475_v38, 0 }
 0x242   :  { %v1019_v15 = vsel %vm10689_vm9, %v1018_v33, %v1017_v35  ;;  %v902_v10 = vsub.s32 32, %v901_v55  ;;  %v906_v13 = vsub.s32 4294967266, %v901_v55  ;;  %v1197_v26 = vmul.u32 %v8749_v48, %v1181_v61 }
 0x243   :  { %v8831_v21 = vand.u32 8388607, %v10688_v58  ;;  %v1200_v24 = vadd.s32 1, %v8817_v17  ;;  %v1050_v57 = vsel %vm1049_vm14, %v1048_v39, 0  ;;  %v1354_v8 = vshrl.u32 %v1353_v44, 23 }
 0x244   :  { %v903_v51 = vshll.u32 %v8773_v23, %v901_v55  ;;  %v904_v31 = vshrl.u32 %v886_v7, %v902_v10  ;;  %v907_v5 = vadd.s32 127, %v906_v13  ;;  %vm1199_vm11 = vc.u32 %v8825_v11, %v8816_v9 }
 0x245   :  { %v8844_v35 = vsel %vm8796_vm15, %v8475_v38, %v1019_v15  ;;  %v1201_v33 = vsel %vm1199_vm11, %v1200_v24, %v8817_v17  ;;  %v1046_v48 = vor.u32 8388608, %v8831_v21  ;;  %v1052_v3 = vand.u32 31, %v1050_v57 }
 0x246   :  { %v905_v62 = vor.u32 %v904_v31, %v903_v51  ;;  %v908_v39 = vshll.u32 %v907_v5, 23  ;;  %v1202_v44 = vadd.s32 %v1201_v33, %v1197_v26  ;;  %v1051_v61 = vshrl.u32 %v1050_v57, 5 }
 0x247   :  { %v1053_v23 = vsub.s32 32, %v1052_v3  ;;  %v1055_v14 = vshll.u32 %v10570_v45, %v1052_v3  ;;  %v1058_v7 = vshll.u32 %v10579_v34, %v1052_v3  ;;  %v6297_v55 = vadd.s32 4294967169, %v1354_v8 }
 0x248   :  { %v909_v58 = vor.u32 4788187, %v908_v39  ;;  %v912_v10 = vcvt.s32.f32 %v905_v62  ;;  %v1203_v13 = vadd.s32 536870912, %v1202_v44  ;;  %v1061_v15 = vshll.u32 %v10566_v43, %v1052_v3 }
 0x249   :  { %vm10427_vm5 = vcmp.lt.s32.totalorder %v8546_v20, 0  ;;  %v1056_v17 = vshrl.u32 %v10579_v34, %v1053_v23  ;;  %v1059_v21 = vshrl.u32 %v10566_v43, %v1053_v23  ;;  %v1062_v26 = vshrl.u32 %v10567_v37, %v1053_v23 }
 0x24a   :  { %v1064_v24 = vshll.u32 %v10567_v37, %v1052_v3  ;;  %v910_v57 = vand.u32 2147483647, %v909_v58  ;;  %v8856_v51 = vshrl.u32 %v1203_v13, 30  ;;  %v1065_v8 = vshrl.u32 %v10589_v22, %v1053_v23 }
 0x24b   :  { %v1067_v31 = vshll.u32 %v10589_v22, %v1052_v3  ;;  %v1057_v5 = vor.u32 %v1056_v17, %v1055_v14  ;;  %v1060_v33 = vor.u32 %v1059_v21, %v1058_v7  ;;  %v1063_v62 = vor.u32 %v1062_v26, %v1061_v15  ;;  %v103_v17 = vpop.permute.xlu0 %102 }
 0x24c   :  { %10690 = vst [vmem:[#allocation90_spill] sm:$0xff] %v8856_v51  ;;  %v1068_v39 = vshrl.u32 %v10571_v50, %v1053_v23  ;;  %v913_v25 = vmul.f32 %v912_v10, %v910_v57  ;;  %v1205_v2 = vshll.u32 %v8856_v51, 30  ;;  %v1066_v38 = vor.u32 %v1065_v8, %v1064_v24 }
 0x24d   :  { %v10691_v42 = vand.u32 2147483647, %v8747_v32  ;;  %v1054_v58 = vshrl.u32 %v10570_v45, %v1053_v23  ;;  %vm1070_vm0 = vcmp.lt.s32.totalorder %v1051_v61, 1  ;;  %vm1073_vm14 = vcmp.lt.s32.totalorder %v1051_v61, 4 }
 0x24e   :  { %v1069_v13 = vor.u32 %v1068_v39, %v1067_v31  ;;  %v914_v27 = vxor.u32 2147483648, %v913_v25  ;;  %v8865_v16 = vsub.s32 %v1202_v44, %v1205_v2  ;;  %vm1072_vm9 = vcmp.lt.s32.totalorder %v1051_v61, 3 }
 0x24f   :  { %v1357_v0 = vand.u32 8388607, %v10691_v42  ;;  %v1075_v3 = vsel %vm1073_vm14, %v1063_v62, 2102212464  ;;  %v1074_v14 = vsel %vm1070_vm0, %v1054_v58, %v1057_v5  ;;  %v1078_v10 = vsel %vm1070_vm0, %v1057_v5, %v1060_v33 }
 0x250   :  { %v1076_v7 = vsel %vm1072_vm9, %v1060_v33, %v1075_v3  ;;  %v1079_v15 = vsel %vm1073_vm14, %v1066_v38, 920167782  ;;  %v1208_v42 = vsub.s32 0, %v8865_v16  ;;  %vm1071_vm11 = vcmp.lt.s32.totalorder %v1051_v61, 2 }
 0x251   :  { %v1080_v23 = vsel %vm1072_vm9, %v1063_v62, %v1079_v15  ;;  %v1082_v21 = vsel %vm1070_vm0, %v1060_v33, %v1063_v62  ;;  %7084 = vcosq.f32 %v8844_v35  ;;  %v1083_v44 = vsel %vm1073_vm14, %v1069_v13, 1326507024  ;;  %v5383_v62 = vld [vmem:[%s10263_s2 + $0x10] sm:$0xff] }
 0x252   :  { %v1081_v2 = vsel %vm1071_vm11, %v1078_v10, %v1080_v23  ;;  %v1086_v26 = vshll.u32 %v1046_v48, 8  ;;  %v915_v24 = vsel %vm10427_vm5, %v914_v27, %v913_v25  ;;  %v6290_v57 = vmin.u32 %v1208_v42, %v8865_v16  ;;  %v5384_v48 = vld [vmem:[%s10263_s2 + $0x18] sm:$0xff] }
 0x253   :  { %v1077_v8 = vsel %vm1071_vm11, %v1074_v14, %v1076_v7  ;;  %v1084_v31 = vsel %vm1072_vm9, %v1066_v38, %v1083_v44  ;;  %v1358_v33 = vor.u32 8388608, %v1357_v0  ;;  %v1360_v61 = vadd.s32 1, %v6297_v55  ;;  %v113_v14 = vpop.permute.xlu0 %112 }
 0x254   :  { %v1085_v5 = vsel %vm1071_vm11, %v1082_v21, %v1084_v31  ;;  %v8878_v39 = vmul.u32.u64.low %v1086_v26, %v1081_v2  ;;  %v8879_v58 = vmul.u32.u64.high %v1086_v26, %v1081_v2, %v8878_v39  ;;  %v1210_v27 = vclz %v6290_v57 }
 0x255   :  { %v8888_v25 = vmul.u32.u64.low %v1086_v26, %v1085_v5  ;;  %v8889_v13 = vmul.u32.u64.high %v1086_v26, %v1085_v5, %v8888_v25  ;;  %7086 = vsinq.f32 %v8844_v35  ;;  %v10692_v38 = vand.u32 2147483647, %v8546_v20 }
 0x256   :  { %v10693_v3 = vmov 0  ;;  %v1198_v0 = vadd.s32 %v8816_v9, %v8825_v11  ;;  %v6291_v10 = vadd.s32 4294967294, %v1210_v27  ;;  %vm1361_vm14 = vcmp.gt.s32.totalorder %v1360_v61, 0 }
 0x257   :  { %vm8894_vm0 = vcmp.le.f32.partialorder %v10692_v38, 0.7853982  ;;  %v10422_v55 = vmov 0.0|0.0   ;;  %v6866_v35 = vpack.c.bf16 %v5384_v48, %v5383_v62  ;;  %v1093_v15 = vmul.u32 %v1086_v26, %v1077_v8 }
 0x258   :  { %v10694_v3 = vsel %vm8894_vm0, 4294967295, %v10693_v3  ;;  %v8903_v7 = vsel %vm8894_vm0, %v8546_v20, %v915_v24  ;;  %6895 = vmatprep.subr.bf16.mxu1 %v10422_v55  ;;  %6865 = vmatprep.subr.bf16.mxu0 %v10422_v55  ;;  %v1096_v42 = vadd.s32 1, %v8879_v58  ;;  %v1362_v23 = vsel %vm1361_vm14, %v1360_v61, 0 }
 0x259   :  { %v8908_v21 = vshll.u32 %v1358_v33, 8  ;;  %vm6292_vm9 = vcmp.lt.s32.totalorder %v6291_v10, 0  ;;  %vm1095_vm11 = vc.u32 %v8889_v13, %v8878_v39  ;;  %v8913_v9 = vmul.f32 %v8722_v53, %v103_v17  ;;  %6896 = vmatpush3.bf16.msra.mxu1 %v6866_v35  ;;  %6867 = vmatpush3.bf16.msra.mxu0 %v6866_v35 }
 0x25a   :  { %v8916_v11 = vmul.f32 %v8722_v53, %v113_v14  ;;  %v1213_v2 = vsel %vm6292_vm9, 0, %v6291_v10  ;;  %v1097_v44 = vsel %vm1095_vm11, %v1096_v42, %v8879_v58  ;;  %v1363_v26 = vshrl.u32 %v1362_v23, 5  ;;  %6868 = vmatprep.subr.bf16.mxu1 %v10422_v55  ;;  %6871 = vmatprep.subr.bf16.mxu0 %v10422_v55 }
 0x25b   :  { %v1364_v24 = vand.u32 31, %v1362_v23  ;;  %v1214_v57 = vsub.s32 32, %v1213_v2  ;;  %v1215_v8 = vshll.u32 %v8865_v16, %v1213_v2  ;;  %v1218_v31 = vsub.s32 4294967266, %v1213_v2  ;;  %v8922_v5 = vpop.eup %7084 }
 0x25c   :  { %v1098_v17 = vadd.s32 %v1097_v44, %v1093_v15  ;;  %10695 = vst [vmem:[#allocation91_spill] sm:$0xff] %v8922_v5  ;;  %v10698_v55 = vand.u32 2147483647, %v8585_v41  ;;  %v10699_v51 = vmov 0  ;;  %vm1382_vm11 = vcmp.lt.s32.totalorder %v1363_v26, 1 }
 0x25d   :  { %v1365_v53 = vsub.s32 32, %v1364_v24  ;;  %v1367_v33 = vshll.u32 %v10570_v45, %v1364_v24  ;;  %v1370_v62 = vshll.u32 %v10579_v34, %v1364_v24  ;;  %v1373_v58 = vshll.u32 %v10566_v43, %v1364_v24 }
 0x25e   :  { %v1216_v48 = vshrl.u32 %v1198_v0, %v1214_v57  ;;  %v1219_v27 = vadd.s32 127, %v1218_v31  ;;  %v1099_v25 = vadd.s32 536870912, %v1098_v17  ;;  %v1376_v61 = vshll.u32 %v10567_v37, %v1364_v24 }
 0x25f   :  { %v1366_v38 = vshrl.u32 %v10570_v45, %v1365_v53  ;;  %v1368_v16 = vshrl.u32 %v10579_v34, %v1365_v53  ;;  %v1371_v14 = vshrl.u32 %v10566_v43, %v1365_v53  ;;  %v1374_v10 = vshrl.u32 %v10567_v37, %v1365_v53  ;;  %v8935_v2 = vpop.eup %7086 }
 0x260   :  { %v1217_v35 = vor.u32 %v1216_v48, %v1215_v8  ;;  %v1220_v15 = vshll.u32 %v1219_v27, 23  ;;  %v8932_v42 = vshrl.u32 %v1099_v25, 30  ;;  %v1377_v23 = vshrl.u32 %v10589_v22, %v1365_v53  ;;  %10697 = vst [vmem:[#allocation93_spill] sm:$0xff] %v8935_v2 }
 0x261   :  { %v1369_v0 = vor.u32 %v1368_v16, %v1367_v33  ;;  %v1372_v44 = vor.u32 %v1371_v14, %v1370_v62  ;;  %v1375_v57 = vor.u32 %v1374_v10, %v1373_v58  ;;  %v1379_v31 = vshll.u32 %v10589_v22, %v1364_v24 }
 0x262   :  { %10696 = vst [vmem:[#allocation92_spill] sm:$0xff] %v8932_v42  ;;  %vm8941_vm9 = vcmp.le.f32.partialorder %v10698_v55, 0.7853982  ;;  %v1221_v8 = vor.u32 4788187, %v1220_v15  ;;  %v1224_v48 = vcvt.s32.f32 %v1217_v35  ;;  %v1101_v27 = vshll.u32 %v8932_v42, 30 }
 0x263   :  { %v10700_v51 = vsel %vm8941_vm9, 4294967295, %v10699_v51  ;;  %v1378_v25 = vor.u32 %v1377_v23, %v1376_v61  ;;  %v1380_v5 = vshrl.u32 %v10571_v50, %v1365_v53  ;;  %vm1383_vm5 = vcmp.lt.s32.totalorder %v1363_v26, 2 }
 0x264   :  { %10701 = vst [vmem:[#allocation94_spill] sm:$0xff] %v10700_v51  ;;  %vm1384_vm14 = vcmp.lt.s32.totalorder %v1363_v26, 3  ;;  %v1222_v33 = vand.u32 2147483647, %v1221_v8  ;;  %v8947_v62 = vsub.s32 %v1098_v17, %v1101_v27  ;;  %vm1385_vm15 = vcmp.lt.s32.totalorder %v1363_v26, 4 }
 0x265   :  { %v1386_v24 = vsel %vm1382_vm11, %v1366_v38, %v1369_v0  ;;  %v1381_v55 = vor.u32 %v1380_v5, %v1379_v31  ;;  %v1387_v58 = vsel %vm1385_vm15, %v1375_v57, 2102212464  ;;  %v1390_v16 = vsel %vm1382_vm11, %v1369_v0, %v1372_v44 }
 0x266   :  { %v1391_v14 = vsel %vm1385_vm15, %v1378_v25, 920167782  ;;  %v1225_v10 = vmul.f32 %v1224_v48, %v1222_v33  ;;  %v1104_v35 = vsub.s32 0, %v8947_v62  ;;  %v1388_v61 = vsel %vm1384_vm14, %v1372_v44, %v1387_v58 }
 0x267   :  { %v1392_v53 = vsel %vm1384_vm14, %v1375_v57, %v1391_v14  ;;  %v1394_v17 = vsel %vm1382_vm11, %v1372_v44, %v1375_v57  ;;  %v1395_v23 = vsel %vm1385_vm15, %v1381_v55, 1326507024  ;;  %v10430_v8 = vand.u32 2147483647, %v8913_v9 }
 0x268   :  { %v1393_v15 = vsel %vm1383_vm5, %v1390_v16, %v1392_v53  ;;  %v1226_v38 = vxor.u32 2147483648, %v1225_v10  ;;  %v6286_v5 = vmin.u32 %v1104_v35, %v8947_v62  ;;  %v1389_v0 = vsel %vm1383_vm5, %v1386_v24, %v1388_v61 }
 0x269   :  { %v1396_v31 = vsel %vm1384_vm14, %v1378_v25, %v1395_v23  ;;  %v8962_v27 = vmul.u32.u64.low %v8908_v21, %v1393_v15  ;;  %v8963_v33 = vmul.u32.u64.high %v8908_v21, %v1393_v15, %v8962_v27  ;;  %v1249_v58 = vand.u32 2139095040, %v8913_v9 }
 0x26a   :  { %v1397_v48 = vsel %vm1383_vm5, %v1394_v17, %v1396_v31  ;;  %vm10702_vm11 = vcmp.lt.s32.totalorder %v8585_v41, 0  ;;  %v1106_v57 = vclz %v6286_v5  ;;  %7088 = vcosq.f32 %v8903_v7 }
 0x26b   :  { %v1227_v44 = vsel %vm10702_vm11, %v1226_v38, %v1225_v10  ;;  %v8969_v55 = vmul.u32.u64.low %v8908_v21, %v1397_v48  ;;  %v8970_v16 = vmul.u32.u64.high %v8908_v21, %v1397_v48, %v8969_v55  ;;  %v1250_v25 = vshrl.u32 %v1249_v58, 23 }
 0x26c   :  { %v1230_v26 = vsel %vm8941_vm9, %v8585_v41, %v1227_v44  ;;  %v1253_v24 = vand.u32 8388607, %v10430_v8  ;;  %7090 = vsinq.f32 %v8903_v7  ;;  %v1094_v14 = vadd.s32 %v8878_v39, %v8889_v13 }
 0x26d   :  { %v6287_v10 = vadd.s32 4294967294, %v1106_v57  ;;  %v1405_v35 = vmul.u32 %v8908_v21, %v1389_v0  ;;  %v1408_v61 = vadd.s32 1, %v8963_v33  ;;  %v6293_v53 = vadd.s32 4294967169, %v1250_v25 }
 0x26e   :  { %v1457_v15 = vand.u32 2139095040, %v8916_v11  ;;  %7092 = vcosq.f32 %v1230_v26  ;;  %vm1407_vm5 = vc.u32 %v8970_v16, %v8962_v27  ;;  %v10429_v17 = vand.u32 2147483647, %v8916_v11 }
 0x26f   :  { %vm6288_vm15 = vcmp.lt.s32.totalorder %v6287_v10, 0  ;;  %v1409_v7 = vsel %vm1407_vm5, %v1408_v61, %v8963_v33  ;;  %v1254_v38 = vor.u32 8388608, %v1253_v24  ;;  %v1256_v5 = vadd.s32 1, %v6293_v53 }
 0x270   :  { %v1109_v23 = vsel %vm6288_vm15, 0, %v6287_v10  ;;  %7094 = vsinq.f32 %v1230_v26  ;;  %v1410_v21 = vadd.s32 %v1409_v7, %v1405_v35  ;;  %v1458_v31 = vshrl.u32 %v1457_v15, 23 }
 0x271   :  { %v1110_v39 = vsub.s32 32, %v1109_v23  ;;  %v1114_v13 = vsub.s32 4294967266, %v1109_v23  ;;  %v1111_v0 = vshll.u32 %v8947_v62, %v1109_v23  ;;  %vm1257_vm14 = vcmp.gt.s32.totalorder %v1256_v5, 0 }
 0x272   :  { %v1411_v44 = vadd.s32 536870912, %v1410_v21  ;;  %v1258_v57 = vsel %vm1257_vm14, %v1256_v5, 0  ;;  %vm10443_vm11 = vmmov 0   ;;  %v10431_v55 = vmov 0.0  }
 0x273   :  { %v1112_v48 = vshrl.u32 %v1094_v14, %v1110_v39  ;;  %v1115_v58 = vadd.s32 127, %v1114_v13  ;;  %6643 = vmatprep.mubr.msk.f32.mxu1 %vm10443_vm11, %v10431_v55  ;;  %6604 = vmatprep.mubr.msk.f32.mxu0 %vm10443_vm11, %v10431_v55  ;;  %v8993_v33 = vadd.s32 %v8962_v27, %v8970_v16  ;;  %v1260_v26 = vand.u32 31, %v1258_v57 }
 0x274   :  { %v8995_v25 = vshll.u32 %v1254_v38, 8  ;;  %v8999_v62 = vand.u32 8388607, %v10429_v17  ;;  %v9001_v10 = vshrl.u32 %v1411_v44, 30  ;;  %v1259_v35 = vshrl.u32 %v1258_v57, 5  ;;  %v9003_v61 = vpop.eup %7088 }
 0x275   :  { %v1113_v24 = vor.u32 %v1112_v48, %v1111_v0  ;;  %v1116_v14 = vshll.u32 %v1115_v58, 23  ;;  %10704 = vst [vmem:[#allocation96_spill] sm:$0xff] %v9003_v61  ;;  %v1261_v53 = vsub.s32 32, %v1260_v26  ;;  %v1263_v27 = vshll.u32 %v10570_v45, %v1260_v26 }
 0x276   :  { %10703 = vst [vmem:[#allocation95_spill] sm:$0xff] %v9001_v10  ;;  %v1266_v16 = vshll.u32 %v10579_v34, %v1260_v26  ;;  %v6301_v15 = vadd.s32 4294967169, %v1458_v31  ;;  %v9008_v23 = vpop.eup %7090  ;;  %v1413_v5 = vshll.u32 %v9001_v10, 30  ;;  %v1269_v39 = vshll.u32 %v10566_v43, %v1260_v26 }
 0x277   :  { %v1117_v7 = vor.u32 4788187, %v1116_v14  ;;  %v1120_v38 = vcvt.s32.f32 %v1113_v24  ;;  %v10705_v13 = vand.u32 2147483647, %v8725_v4  ;;  %v10706_v0 = vmov 0 }
 0x278   :  { %v1264_v48 = vshrl.u32 %v10579_v34, %v1261_v53  ;;  %v1267_v58 = vshrl.u32 %v10566_v43, %v1261_v53  ;;  %v1270_v31 = vshrl.u32 %v10567_v37, %v1261_v53  ;;  %v1272_v44 = vshll.u32 %v10567_v37, %v1260_v26  ;;  %v9022_v57 = vpop.eup %7092 }
 0x279   :  { %vm9014_vm5 = vcmp.le.f32.partialorder %v10705_v13, 0.7853982  ;;  %10708 = vst [vmem:[#allocation97_spill] sm:$0xff] %v9022_v57  ;;  %v1118_v24 = vand.u32 2147483647, %v1117_v7  ;;  %v9024_v14 = vsub.s32 %v1410_v21, %v1413_v5  ;;  %v1273_v17 = vshrl.u32 %v10589_v22, %v1261_v53 }
 0x27a   :  { %v10707_v0 = vsel %vm9014_vm5, 4294967295, %v10706_v0  ;;  %v1275_v13 = vshll.u32 %v10589_v22, %v1260_v26  ;;  %v1265_v8 = vor.u32 %v1264_v48, %v1263_v27  ;;  %v1268_v55 = vor.u32 %v1267_v58, %v1266_v16  ;;  %v9029_v41 = vpop.eup %7094 }
 0x27b   :  { %v1271_v10 = vor.u32 %v1270_v31, %v1269_v39  ;;  %v1276_v51 = vshrl.u32 %v10571_v50, %v1261_v53  ;;  %v1121_v42 = vmul.f32 %v1120_v38, %v1118_v24  ;;  %v1416_v2 = vsub.s32 0, %v9024_v14 }
 0x27c   :  { %v1262_v61 = vshrl.u32 %v10570_v45, %v1261_v53  ;;  %v1274_v57 = vor.u32 %v1273_v17, %v1272_v44  ;;  %vm1278_vm14 = vcmp.lt.s32.totalorder %v1259_v35, 1  ;;  %vm1280_vm11 = vcmp.lt.s32.totalorder %v1259_v35, 3 }
 0x27d   :  { %v1277_v7 = vor.u32 %v1276_v51, %v1275_v13  ;;  %vm1281_vm15 = vcmp.lt.s32.totalorder %v1259_v35, 4  ;;  %v1122_v21 = vxor.u32 2147483648, %v1121_v42  ;;  %v6298_v26 = vmin.u32 %v1416_v2, %v9024_v14 }
 0x27e   :  { %v1282_v27 = vsel %vm1278_vm14, %v1262_v61, %v1265_v8  ;;  %v1283_v16 = vsel %vm1281_vm15, %v1271_v10, 2102212464  ;;  %vm1279_vm9 = vcmp.lt.s32.totalorder %v1259_v35, 2  ;;  %v1286_v39 = vsel %vm1278_vm14, %v1265_v8, %v1268_v55 }
 0x27f   :  { %v1284_v5 = vsel %vm1280_vm11, %v1268_v55, %v1283_v16  ;;  %v1287_v48 = vsel %vm1281_vm15, %v1274_v57, 920167782  ;;  %vm10709_vm0 = vcmp.lt.s32.totalorder %v8725_v4, 0  ;;  %v1418_v58 = vclz %v6298_v26 }
 0x280   :  { %v1123_v38 = vsel %vm10709_vm0, %v1122_v21, %v1121_v42  ;;  %v1288_v17 = vsel %vm1280_vm11, %v1271_v10, %v1287_v48  ;;  %v1290_v51 = vsel %vm1278_vm14, %v1268_v55, %v1271_v10  ;;  %v1285_v53 = vsel %vm1279_vm9, %v1282_v27, %v1284_v5 }
 0x281   :  { %v1289_v31 = vsel %vm1279_vm9, %v1286_v39, %v1288_v17  ;;  %v1291_v44 = vsel %vm1281_vm15, %v1277_v7, 1326507024  ;;  %v1462_v2 = vor.u32 8388608, %v8999_v62  ;;  %v1126_v61 = vsel %vm9014_vm5, %v8725_v4, %v1123_v38 }
 0x282   :  { %v6299_v8 = vadd.s32 4294967294, %v1418_v58  ;;  %v1292_v24 = vsel %vm1280_vm11, %v1274_v57, %v1291_v44  ;;  %v1464_v13 = vadd.s32 1, %v6301_v15  ;;  %v1644_v10 = vsub.s32 4, %v7403_v18 }
 0x283   :  { %v1293_v42 = vsel %vm1279_vm9, %v1290_v51, %v1292_v24  ;;  %v9047_v21 = vmul.u32.u64.low %v8995_v25, %v1289_v31  ;;  %v9048_v55 = vmul.u32.u64.high %v8995_v25, %v1289_v31, %v9047_v21  ;;  %7096 = vcosq.f32 %v1126_v61 }
 0x284   :  { %vm6300_vm0 = vcmp.lt.s32.totalorder %v6299_v8, 0  ;;  %v9053_v62 = vmul.u32.u64.low %v8995_v25, %v1293_v42  ;;  %v9054_v7 = vmul.u32.u64.high %v8995_v25, %v1293_v42, %v9053_v62  ;;  %vm1465_vm15 = vcmp.gt.s32.totalorder %v1464_v13, 0 }
 0x285   :  { %v1421_v26 = vsel %vm6300_vm0, 0, %v6299_v8  ;;  %v1301_v57 = vmul.u32 %v8995_v25, %v1285_v53  ;;  %v1466_v15 = vsel %vm1465_vm15, %v1464_v13, 0  ;;  %7098 = vsinq.f32 %v1126_v61 }
 0x286   :  { %v1422_v35 = vsub.s32 32, %v1421_v26  ;;  %v1426_v27 = vsub.s32 4294967266, %v1421_v26  ;;  %v9057_v16 = vshll.u32 %v1462_v2, 8  ;;  %v1423_v5 = vshll.u32 %v9024_v14, %v1421_v26 }
 0x287   :  { %v1304_v39 = vadd.s32 1, %v9048_v55  ;;  %v1468_v48 = vand.u32 31, %v1466_v15  ;;  %vm10710_vm9 = vcmp.lt.s32.totalorder %v7271_v30, 0  ;;  %vm1303_vm11 = vc.u32 %v9054_v7, %v9047_v21 }
 0x288   :  { %v1645_v38 = vsel %vm10710_vm9, %v1644_v10, %v7403_v18  ;;  %v1424_v58 = vshrl.u32 %v8993_v33, %v1422_v35  ;;  %v1427_v17 = vadd.s32 127, %v1426_v27  ;;  %v1467_v25 = vshrl.u32 %v1466_v15, 5 }
 0x289   :  { %v1305_v51 = vsel %vm1303_vm11, %v1304_v39, %v9048_v55  ;;  %v1469_v53 = vsub.s32 32, %v1468_v48  ;;  %v1471_v31 = vshll.u32 %v10570_v45, %v1468_v48  ;;  %v1474_v14 = vshll.u32 %v10579_v34, %v1468_v48 }
 0x28a   :  { %v1425_v44 = vor.u32 %v1424_v58, %v1423_v5  ;;  %v1428_v2 = vshll.u32 %v1427_v17, 23  ;;  %v1306_v61 = vadd.s32 %v1305_v51, %v1301_v57  ;;  %v1477_v8 = vshll.u32 %v10566_v43, %v1468_v48 }
 0x28b   :  { %v1470_v18 = vshrl.u32 %v10570_v45, %v1469_v53  ;;  %v1472_v33 = vshrl.u32 %v10579_v34, %v1469_v53  ;;  %v1475_v24 = vshrl.u32 %v10566_v43, %v1469_v53  ;;  %v1478_v13 = vshrl.u32 %v10567_v37, %v1469_v53 }
 0x28c   :  { %v10711_v42 = vand.u32 2147483647, %v8747_v32  ;;  %v1429_v10 = vor.u32 4788187, %v1428_v2  ;;  %v1432_v62 = vcvt.s32.f32 %v1425_v44  ;;  %v1307_v26 = vadd.s32 536870912, %v1306_v61 }
 0x28d   :  { %v1480_v57 = vshll.u32 %v10567_v37, %v1468_v48  ;;  %v1473_v15 = vor.u32 %v1472_v33, %v1471_v31  ;;  %v1476_v35 = vor.u32 %v1475_v24, %v1474_v14  ;;  %v1479_v45 = vor.u32 %v1478_v13, %v1477_v8  ;;  %v9088_v58 = vpop.eup %7096 }
 0x28e   :  { %vm9078_vm0 = vcmp.le.f32.partialorder %v10711_v42, 0.7853982  ;;  %v1481_v34 = vshrl.u32 %v10589_v22, %v1469_v53  ;;  %v1430_v27 = vand.u32 2147483647, %v1429_v10  ;;  %v9084_v43 = vshrl.u32 %v1307_v26, 30 }
 0x28f   :  { %v1483_v5 = vshll.u32 %v10589_v22, %v1468_v48  ;;  %v1484_v39 = vshrl.u32 %v10571_v50, %v1469_v53  ;;  %vm1486_vm15 = vcmp.lt.s32.totalorder %v1467_v25, 1  ;;  %vm1487_vm9 = vcmp.lt.s32.totalorder %v1467_v25, 2  ;;  %v9090_v51 = vpop.eup %7098 }
 0x290   :  { %v1482_v17 = vor.u32 %v1481_v34, %v1480_v57  ;;  %vm1488_vm11 = vcmp.lt.s32.totalorder %v1467_v25, 3  ;;  %v1433_v37 = vmul.f32 %v1432_v62, %v1430_v27  ;;  %v1309_v31 = vshll.u32 %v9084_v43, 30  ;;  %v2806_v27 = vld [vmem:[%s10263_s2] sm:$0xff] }
 0x291   :  { %v1485_v14 = vor.u32 %v1484_v39, %v1483_v5  ;;  %vm1489_vm14 = vcmp.lt.s32.totalorder %v1467_v25, 4  ;;  %v1490_v44 = vsel %vm1486_vm15, %v1470_v18, %v1473_v15  ;;  %v1494_v22 = vsel %vm1486_vm15, %v1473_v15, %v1476_v35  ;;  %v2807_v25 = vld [vmem:[%s10263_s2 + $0x8] sm:$0xff] }
 0x292   :  { %v1491_v2 = vsel %vm1489_vm14, %v1479_v45, 2102212464  ;;  %v1495_v48 = vsel %vm1489_vm14, %v1482_v17, 920167782  ;;  %v1434_v50 = vxor.u32 2147483648, %v1433_v37  ;;  %v9095_v53 = vsub.s32 %v1306_v61, %v1309_v31 }
 0x293   :  { %v1492_v8 = vsel %vm1488_vm11, %v1476_v35, %v1491_v2  ;;  %v1496_v33 = vsel %vm1488_vm11, %v1479_v45, %v1495_v48  ;;  %v1498_v13 = vsel %vm1486_vm15, %v1476_v35, %v1479_v45  ;;  %v1499_v42 = vsel %vm1489_vm14, %v1485_v14, 1326507024 }
 0x294   :  { %v1497_v24 = vsel %vm1487_vm9, %v1494_v22, %v1496_v33  ;;  %v9103_v10 = vsel %vm7592_vm7, 0, %v1645_v38  ;;  %vm10715_vm5 = vcmp.lt.s32.totalorder %v8747_v32, 0  ;;  %v1312_v62 = vsub.s32 0, %v9095_v53 }
 0x295   :  { %10714 = vst [vmem:[#allocation98_spill] sm:$0xff] %v9103_v10  ;;  %v1435_v18 = vsel %vm10715_vm5, %v1434_v50, %v1433_v37  ;;  %v1493_v61 = vsel %vm1487_vm9, %v1490_v44, %v1492_v8  ;;  %v1500_v26 = vsel %vm1488_vm11, %v1482_v17, %v1499_v42  ;;  %v1302_v5 = vadd.s32 %v9047_v21, %v9054_v7 }
 0x296   :  { %v1438_v57 = vsel %vm9078_vm0, %v8747_v32, %v1435_v18  ;;  %v1501_v15 = vsel %vm1487_vm9, %v1498_v13, %v1500_v26  ;;  %v9115_v35 = vmul.u32.u64.low %v9057_v16, %v1497_v24  ;;  %v9116_v47 = vmul.u32.u64.high %v9057_v16, %v1497_v24, %v9115_v35 }
 0x297   :  { %v6294_v38 = vmin.u32 %v1312_v62, %v9095_v53  ;;  %v9121_v45 = vmul.u32.u64.low %v9057_v16, %v1501_v15  ;;  %v9122_v34 = vmul.u32.u64.high %v9057_v16, %v1501_v15, %v9121_v45  ;;  %v10461_v39 = vxor.u32 2147483648, %v7735_v19 }
 0x298   :  { %v10455_v17 = vxor.u32 2147483648, %v7729_v59  ;;  %v4240_v37 = vand.u32 3, %v9103_v10  ;;  %7100 = vcosq.f32 %v1438_v57  ;;  %v1509_v14 = vmul.u32 %v9057_v16, %v1493_v61 }
 0x299   :  { %v1314_v31 = vclz %v6294_v38  ;;  %v1748_v44 = vsub.s32 4, %v7501_v28  ;;  %v1512_v2 = vadd.s32 1, %v9116_v47  ;;  %v6869_v22 = vpack.c.bf16 %v2807_v25, %v2806_v27 }
 0x29a   :  { %vm4242_vm5 = vcmp.eq.s32.totalorder %v4240_v37, 0  ;;  %vm1511_vm15 = vc.u32 %v9122_v34, %v9115_v35  ;;  %vm4245_vm9 = vcmp.eq.s32.totalorder %v4240_v37, 2  ;;  %vm4241_vm11 = vcmp.lt.s32.totalorder %v4240_v37, 2 }
 0x29b   :  { %v6295_v48 = vadd.s32 4294967294, %v1314_v31  ;;  %v4244_v21 = vsel %vm4242_vm5, %v7729_v59, %v10461_v39  ;;  %v1513_v7 = vsel %vm1511_vm15, %v1512_v2, %v9116_v47  ;;  %v4247_v16 = vsel %vm4245_vm9, %v10455_v17, %v7735_v19  ;;  %v10857_v19 = vld [vmem:[#allocation61_spill] sm:$0xff] }
 0x29c   :  { %vm10716_vm14 = vcmp.lt.s32.totalorder %v7291_v52, 0  ;;  %v1514_v8 = vadd.s32 %v1513_v7, %v1509_v14  ;;  %v4248_v33 = vsel %vm4241_vm11, %v4244_v21, %v4247_v16  ;;  %7102 = vsinq.f32 %v1438_v57 }
 0x29d   :  { %v1749_v50 = vsel %vm10716_vm14, %v1748_v44, %v7501_v28  ;;  %vm6296_vm7 = vcmp.lt.s32.totalorder %v6295_v48, 0  ;;  %vm10718_vm5 = vweird.f32 %v7271_v30  ;;  %vm10448_vm15 = vweird.f32 %v7291_v52 }
 0x29e   :  { %v9153_v24 = vsel %vm7745_vm1, 0, %v1749_v50  ;;  %v1317_v13 = vsel %vm6296_vm7, 0, %v6295_v48  ;;  %v4249_v42 = vsel %vm10718_vm5, nan, %v4248_v33  ;;  %v1515_v61 = vadd.s32 536870912, %v1514_v8 }
 0x29f   :  { %10717 = vst [vmem:[#allocation99_spill] sm:$0xff] %v9153_v24  ;;  %v1318_v18 = vsub.s32 32, %v1317_v13  ;;  %v1322_v62 = vsub.s32 4294967266, %v1317_v13  ;;  %vm10719_vm9 = vcmask 130048   ;;  %v10454_v28 = vxor.u32 2147483648, %v7925_v12 }
 0x2a0   :  { %6644 = vmatmul.mubr.msk.f32.vlgmr.msra.gmra.mrb[0].mxu1 %vm10719_vm9, %v4249_v42  ;;  %v1319_v26 = vshll.u32 %v9095_v53, %v1317_v13  ;;  %vm10721_vm1 = vmmov 0   ;;  %v10453_v57 = vxor.u32 2147483648, %v7921_v60  ;;  %v4343_v15 = vand.u32 3, %v9153_v24  ;;  %v10724_v42 = vld [vmem:[#allocation7_spill] sm:$0xff]  ;;  %v10858_v24 = vld [vmem:[#allocation82_spill] sm:$0xff] }
 0x2a1   :  { %6870 = vmatpush3.bf16.msra.mxu1 %v6869_v22  ;;  %6646 = vmatprep.mubr.msk.f32.mxu1 %vm10721_vm1, %v10720_v6  ;;  %v1852_v47 = vsub.s32 4, %v7371_v40  ;;  %v1320_v38 = vshrl.u32 %v1302_v5, %v1318_v18  ;;  %v1323_v45 = vadd.s32 127, %v1322_v62  ;;  %v9166_v27 = vshrl.u32 %v1515_v61, 30  ;;  %v10726_v62 = vld [vmem:[#allocation26_spill] sm:$0xff] }
 0x2a2   :  { %v10452_v25 = vxor.u32 2147483648, %v7608_v46  ;;  %vm4345_vm7 = vcmp.eq.s32.totalorder %v4343_v15, 0  ;;  %vm4348_vm14 = vcmp.eq.s32.totalorder %v4343_v15, 2  ;;  %vm10722_vm11 = vcmp.lt.s32.totalorder %v7268_v29, 0  ;;  %v9173_v31 = vpop.eup %7100 }
 0x2a3   :  { %v1853_v53 = vsel %vm10722_vm11, %v1852_v47, %v7371_v40  ;;  %v10451_v37 = vxor.u32 2147483648, %v7600_v54  ;;  %v1321_v14 = vor.u32 %v1320_v38, %v1319_v26  ;;  %v1324_v44 = vshll.u32 %v1323_v45, 23  ;;  %v10733_v45 = vld [vmem:[#allocation22_spill] sm:$0xff]  ;;  %v10900_v26 = vld [vmem:[#allocation95_spill] sm:$0xff] }
 0x2a4   :  { %v1517_v2 = vshll.u32 %v9166_v27, 30  ;;  %v4347_v5 = vsel %vm4345_vm7, %v7921_v60, %v10454_v28  ;;  %vm10469_vm5 = vcmp.lt.s32.totalorder %v8913_v9, 0  ;;  %vm4344_vm9 = vcmp.lt.s32.totalorder %v4343_v15, 2  ;;  %v10750_v28 = vld [vmem:[#allocation60_spill] sm:$0xff] }
 0x2a5   :  { %v4350_v22 = vsel %vm4348_vm14, %v10453_v57, %v7925_v12  ;;  %v9185_v40 = vsel %vm7514_vm13, 0, %v1853_v53  ;;  %v1956_v48 = vsub.s32 4, %v7436_v49  ;;  %v1325_v21 = vor.u32 4788187, %v1324_v44  ;;  %v10848_v60 = vld [vmem:[#allocation64_spill] sm:$0xff] }
 0x2a6   :  { %10723 = vst [vmem:[#allocation100_spill] sm:$0xff] %v9185_v40  ;;  %v1328_v7 = vcvt.s32.f32 %v1321_v14  ;;  %v9188_v16 = vsub.s32 %v1514_v8, %v1517_v2  ;;  %v4351_v50 = vsel %vm4344_vm9, %v4347_v5, %v4350_v22  ;;  %v4446_v13 = vand.u32 3, %v9185_v40 }
 0x2a7   :  { %v4352_v33 = vsel %vm10448_vm15, nan, %v4351_v50  ;;  %vm10725_vm7 = vcmp.lt.s32.totalorder %v10724_v42, 0  ;;  %v10450_v1 = vxor.u32 2147483648, %v10726_v62  ;;  %v10727_v61 = vand.u32 2147483647, %v8913_v9 }
 0x2a8   :  { %v1957_v18 = vsel %vm10725_vm7, %v1956_v48, %v7436_v49  ;;  %v1326_v8 = vand.u32 2147483647, %v1325_v21  ;;  %v1520_v15 = vsub.s32 0, %v9188_v16  ;;  %vm10730_vm14 = vcmask 130048   ;;  %v9210_v49 = vpop.eup %7102 }
 0x2a9   :  { %vm9199_vm13 = vcmp.le.f32.partialorder %v10727_v61, 0.7853982  ;;  %6647 = vmatmul.mubr.msk.f32.gmra.mrb[2].mxu1 %vm10730_vm14, %v4352_v33  ;;  %v9207_v38 = vsel %vm7604_vm8, 0, %v1957_v18  ;;  %v10449_v53 = vxor.u32 2147483648, %v10733_v45  ;;  %vm4447_vm11 = vcmp.lt.s32.totalorder %v4446_v13, 2  ;;  %v10735_v61 = vld [vmem:[#allocation17_spill] sm:$0xff] }
 0x2aa   :  { %10732 = vst [vmem:[#allocation15_spill] sm:$0xff] %v9207_v38  ;;  %6649 = vmatprep.mubr.msk.f32.mxu1 %vm10721_vm1, %v10720_v6  ;;  %vm4448_vm9 = vcmp.eq.s32.totalorder %v4446_v13, 0  ;;  %vm4451_vm7 = vcmp.eq.s32.totalorder %v4446_v13, 2  ;;  %v4549_v14 = vand.u32 3, %v9207_v38  ;;  %v1329_v44 = vmul.f32 %v1328_v7, %v1326_v8  ;;  %v10842_v38 = vld [vmem:[#allocation59_spill] sm:$0xff] }
 0x2ab   :  { %v6302_v2 = vmin.u32 %v1520_v15, %v9188_v16  ;;  %v4450_v5 = vsel %vm4448_vm9, %v7600_v54, %v10452_v25  ;;  %v4453_v22 = vsel %vm4451_vm7, %v10451_v37, %v7608_v46  ;;  %vm10457_vm8 = vweird.f32 %v7268_v29  ;;  %v10841_v46 = vld [vmem:[#allocation73_spill] sm:$0xff] }
 0x2ac   :  { %v4454_v48 = vsel %vm4447_vm11, %v4450_v5, %v4453_v22  ;;  %vm4551_vm14 = vcmp.eq.s32.totalorder %v4549_v14, 0  ;;  %vm4554_vm15 = vcmp.eq.s32.totalorder %v4549_v14, 2  ;;  %v1330_v21 = vxor.u32 2147483648, %v1329_v44  ;;  %v10739_v22 = vld [vmem:[#allocation13_spill] sm:$0xff] }
 0x2ad   :  { %v1522_v50 = vclz %v6302_v2  ;;  %v4455_v7 = vsel %vm10457_vm8, nan, %v4454_v48  ;;  %v4553_v33 = vsel %vm4551_vm14, %v10733_v45, %v10450_v1  ;;  %v1510_v13 = vadd.s32 %v9115_v35, %v9122_v34  ;;  %v10736_v35 = vld [vmem:[#allocation10_spill] sm:$0xff] }
 0x2ae   :  { %vm10734_vm9 = vcmask 130048   ;;  %vm4550_vm7 = vcmp.lt.s32.totalorder %v4549_v14, 2  ;;  %v4556_v18 = vsel %vm4554_vm15, %v10449_v53, %v10726_v62  ;;  %v2060_v8 = vsub.s32 4, %v10735_v61  ;;  %v10738_v14 = vld [vmem:[#allocation42_spill] sm:$0xff]  ;;  %v10744_v53 = vld [vmem:[#allocation9_spill] sm:$0xff] }
 0x2af   :  { %6650 = vmatmul.mubr.msk.f32.gmra.mrb[4].mxu1 %vm10734_vm9, %v4455_v7  ;;  %v1331_v15 = vsel %vm10469_vm5, %v1330_v21, %v1329_v44  ;;  %v6303_v47 = vadd.s32 4294967294, %v1522_v50  ;;  %vm10456_vm11 = vweird.f32 %v10724_v42  ;;  %v4557_v2 = vsel %vm4550_vm7, %v4553_v33, %v4556_v18  ;;  %v10742_v7 = vld [vmem:[#allocation36_spill] sm:$0xff] }
 0x2b0   :  { %6652 = vmatprep.mubr.msk.f32.mxu1 %vm10721_vm1, %v10720_v6  ;;  %vm10737_vm14 = vcmp.lt.s32.totalorder %v10736_v35, 0  ;;  %vm10458_vm9 = vweird.f32 %v10736_v35  ;;  %v10460_v5 = vxor.u32 2147483648, %v10738_v14  ;;  %v2164_v48 = vsub.s32 4, %v10739_v22 }
 0x2b1   :  { %v2061_v34 = vsel %vm10737_vm14, %v2060_v8, %v10735_v61  ;;  %vm6304_vm15 = vcmp.lt.s32.totalorder %v6303_v47, 0  ;;  %v4558_v44 = vsel %vm10456_vm11, nan, %v4557_v2  ;;  %v10459_v33 = vxor.u32 2147483648, %v10742_v7 }
 0x2b2   :  { %v9250_v50 = vsel %vm7858_vm4, 0, %v2061_v34  ;;  %v9256_v18 = vsel %vm9199_vm13, %v8913_v9, %v1331_v15  ;;  %v1525_v61 = vsel %vm6304_vm15, 0, %v6303_v47  ;;  %vm10743_vm7 = vcmask 130048   ;;  %v10748_v47 = vld [vmem:[#allocation34_spill] sm:$0xff] }
 0x2b3   :  { %10741 = vst [vmem:[#allocation17_spill] sm:$0xff] %v9250_v50  ;;  %6653 = vmatmul.mubr.msk.f32.gmra.mrb[6].mxu1 %vm10743_vm7, %v4558_v44  ;;  %v4652_v8 = vand.u32 3, %v9250_v50  ;;  %vm10745_vm14 = vcmp.lt.s32.totalorder %v10744_v53, 0  ;;  %v1526_v1 = vsub.s32 32, %v1525_v61  ;;  %v1527_v34 = vshll.u32 %v9188_v16, %v1525_v61  ;;  %v10826_v50 = vld [vmem:[#allocation88_spill] sm:$0xff] }
 0x2b4   :  { %v2165_v2 = vsel %vm10745_vm14, %v2164_v48, %v10739_v22  ;;  %v1530_v21 = vsub.s32 4294967266, %v1525_v61  ;;  %6655 = vmatprep.mubr.msk.f32.mxu1 %vm10721_vm1, %v10720_v6  ;;  %v10462_v44 = vxor.u32 2147483648, %v10748_v47  ;;  %v10749_v61 = vld [vmem:[#allocation32_spill] sm:$0xff]  ;;  %v292_v17 = vsub.s32 4, %v10750_v28 }
 0x2b5   :  { %v9268_v15 = vsel %vm7754_vm3, 0, %v2165_v2  ;;  %vm4653_vm4 = vcmp.lt.s32.totalorder %v4652_v8, 2  ;;  %vm4654_vm15 = vcmp.eq.s32.totalorder %v4652_v8, 0  ;;  %vm4657_vm7 = vcmp.eq.s32.totalorder %v4652_v8, 2 }
 0x2b6   :  { %10747 = vst [vmem:[#allocation13_spill] sm:$0xff] %v9268_v15  ;;  %v1528_v25 = vshrl.u32 %v1510_v13, %v1526_v1  ;;  %v1531_v57 = vadd.s32 127, %v1530_v21  ;;  %v4656_v22 = vsel %vm4654_vm15, %v10742_v7, %v10460_v5  ;;  %v4659_v16 = vsel %vm4657_vm7, %v10459_v33, %v10738_v14  ;;  %v10752_v21 = vld [vmem:[#allocation49_spill] sm:$0xff]  ;;  %v10787_v14 = vld [vmem:[#allocation83_spill] sm:$0xff] }
 0x2b7   :  { %v4660_v48 = vsel %vm4653_vm4, %v4656_v22, %v4659_v16  ;;  %v10463_v37 = vxor.u32 2147483648, %v10749_v61  ;;  %v4755_v2 = vand.u32 3, %v9268_v15  ;;  %7104 = vcosq.f32 %v9256_v18  ;;  %v10814_v15 = vld [vmem:[#allocation47_spill] sm:$0xff] }
 0x2b8   :  { %v1529_v8 = vor.u32 %v1528_v25, %v1527_v34  ;;  %v1532_v1 = vshll.u32 %v1531_v57, 23  ;;  %v4661_v13 = vsel %vm10458_vm9, nan, %v4660_v48  ;;  %vm10514_vm3 = vcmp.lt.s32.totalorder %v8916_v11, 0 }
 0x2b9   :  { %vm10751_vm14 = vcmask 130048   ;;  %vm10468_vm15 = vweird.f32 %v10744_v53  ;;  %vm4757_vm4 = vcmp.eq.s32.totalorder %v4755_v2, 0  ;;  %vm4760_vm7 = vcmp.eq.s32.totalorder %v4755_v2, 2 }
 0x2ba   :  { %6656 = vmatmul.mubr.msk.f32.gmra.mrb[8].mxu1 %vm10751_vm14, %v4661_v13  ;;  %vm10753_vm11 = vcmp.lt.s32.totalorder %v10752_v21, 0  ;;  %v10754_v16 = vand.u32 2147483647, %v8916_v11  ;;  %v1533_v57 = vor.u32 4788187, %v1532_v1  ;;  %vm4756_vm9 = vcmp.lt.s32.totalorder %v4755_v2, 2 }
 0x2bb   :  { %v293_v22 = vsel %vm10753_vm11, %v292_v17, %v10750_v28  ;;  %6658 = vmatprep.mubr.msk.f32.mxu1 %vm10721_vm1, %v10720_v6  ;;  %v4759_v34 = vsel %vm4757_vm4, %v10749_v61, %v10462_v44  ;;  %v4762_v48 = vsel %vm4760_vm7, %v10463_v37, %v10748_v47  ;;  %vm298_vm11 = vweird.f32 %v10752_v21  ;;  %v10758_v37 = vld [vmem:[#allocation25_spill] sm:$0xff]  ;;  %v10759_v61 = vld [vmem:[#allocation46_spill] sm:$0xff] }
 0x2bc   :  { %vm9291_vm8 = vcmp.le.f32.partialorder %v10754_v16, 0.7853982  ;;  %v1536_v17 = vcvt.s32.f32 %v1529_v8  ;;  %v4763_v28 = vsel %vm4756_vm9, %v4759_v34, %v4762_v48  ;;  %v295_v16 = vsel %vm8417_vm10, 0, %v293_v22  ;;  %v10760_v34 = vld [vmem:[#allocation45_spill] sm:$0xff] }
 0x2bd   :  { %v303_v1 = vxor.u32 2147483648, %v8601_v56  ;;  %v1534_v33 = vand.u32 2147483647, %v1533_v57  ;;  %v4764_v2 = vsel %vm10468_vm15, nan, %v4763_v28  ;;  %v299_v5 = vadd.s32 3, %v295_v16  ;;  %v10761_v28 = vld [vmem:[#allocation12_spill] sm:$0xff] }
 0x2be   :  { %v2901_v39 = vand.u32 3, %v295_v16  ;;  %6659 = vmatmul.mubr.msk.f32.gmra.mrb[10].mxu1 %vm10751_vm14, %v4764_v2  ;;  %v306_v44 = vxor.u32 2147483648, %v8531_v63  ;;  %v2268_v35 = vsub.s32 4, %v10758_v37  ;;  %vm10762_vm7 = vcmp.lt.s32.totalorder %v10761_v28, 0  ;;  %v10763_v2 = vld [vmem:[#allocation56_spill] sm:$0xff] }
 0x2bf   :  { %v1537_v13 = vmul.f32 %v1536_v17, %v1534_v33  ;;  %6661 = vmatprep.mubr.msk.f32.mxu1 %vm10721_vm1, %v10720_v6  ;;  %v300_v22 = vand.u32 3, %v299_v5  ;;  %v396_v53 = vsub.s32 4, %v10763_v2  ;;  %7106 = vsinq.f32 %v9256_v18 }
 0x2c0   :  { %vm2902_vm10 = vcmp.lt.s32.totalorder %v2901_v39, 2  ;;  %vm2903_vm9 = vcmp.eq.s32.totalorder %v2901_v39, 0  ;;  %vm2906_vm4 = vcmp.eq.s32.totalorder %v2901_v39, 2  ;;  %v2269_v16 = vsel %vm10762_vm7, %v2268_v35, %v10758_v37 }
 0x2c1   :  { %v2905_v57 = vsel %vm2903_vm9, %v8531_v63, %v303_v1  ;;  %v1538_v47 = vxor.u32 2147483648, %v1537_v13  ;;  %vm301_vm14 = vcmp.lt.s32.totalorder %v300_v22, 2  ;;  %vm302_vm15 = vcmp.eq.s32.totalorder %v300_v22, 0  ;;  %v9328_v42 = vpop.eup %7104 }
 0x2c2   :  { %vm305_vm5 = vcmp.eq.s32.totalorder %v300_v22, 2  ;;  %v304_v33 = vsel %vm302_vm15, %v8531_v63, %v303_v1  ;;  %v2908_v5 = vsel %vm2906_vm4, %v306_v44, %v8601_v56  ;;  %v9326_v8 = vsel %vm8007_vm6, 0, %v2269_v16  ;;  %v10772_v16 = vld [vmem:[#allocation69_spill] sm:$0xff] }
 0x2c3   :  { %v307_v17 = vsel %vm305_vm5, %v306_v44, %v8601_v56  ;;  %10765 = vst [vmem:[#allocation27_spill] sm:$0xff] %v9326_v8  ;;  %v1539_v35 = vsel %vm10514_vm3, %v1538_v47, %v1537_v13  ;;  %v2909_v7 = vsel %vm2902_vm10, %v2905_v57, %v2908_v5  ;;  %v4858_v22 = vand.u32 3, %v9326_v8  ;;  %v10766_v44 = vld [vmem:[#allocation39_spill] sm:$0xff]  ;;  %v10773_v5 = vld [vmem:[#allocation20_spill] sm:$0xff]  ;;  %v10788_v8 = vld [vmem:[#allocation38_spill] sm:$0xff] }
 0x2c4   :  { %v308_v37 = vsel %vm301_vm14, %v304_v33, %v307_v17  ;;  %v9338_v63 = vsel %vm9291_vm8, %v8916_v11, %v1539_v35  ;;  %v2910_v56 = vsel %vm298_vm11, nan, %v2909_v7  ;;  %vm10767_vm6 = vcmp.lt.s32.totalorder %v10766_v44, 0 }
 0x2c5   :  { %v397_v1 = vsel %vm10767_vm6, %v396_v53, %v10763_v2  ;;  %v9347_v39 = vsel %vm298_vm11, nan, %v308_v37  ;;  %vm10768_vm5 = vcmask 130048   ;;  %vm10499_vm15 = vweird.f32 %v10761_v28  ;;  %v10775_v37 = vld [vmem:[#allocation11_spill] sm:$0xff] }
 0x2c6   :  { %6605 = vmatmul.mubr.msk.f32.vlgmr.msra.gmra.mrb[0].mxu0 %vm10768_vm5, %v2910_v56  ;;  %vm4860_vm10 = vcmp.eq.s32.totalorder %v4858_v22, 0  ;;  %vm4863_vm9 = vcmp.eq.s32.totalorder %v4858_v22, 2  ;;  %vm4859_vm4 = vcmp.lt.s32.totalorder %v4858_v22, 2  ;;  %v10769_v18 = vxor.u32 2147483648, %v10759_v61  ;;  %vm10774_vm7 = vmmov %vm10768_vm5  ;;  %v10776_v22 = vld [vmem:[#allocation44_spill] sm:$0xff]  ;;  %v10782_v56 = vld [vmem:[#allocation57_spill] sm:$0xff] }
 0x2c7   :  { %v10770_v7 = vxor.u32 2147483648, %v10760_v34  ;;  %6607 = vmatprep.mubr.msk.f32.mxu0 %vm10721_vm1, %v10720_v6  ;;  %v9361_v21 = vsel %vm8344_vm2, 0, %v397_v1  ;;  %7108 = vcosq.f32 %v9338_v63  ;;  %v10474_v57 = vxor.u32 2147483648, %v8526_v36  ;;  %v10777_v1 = vld [vmem:[#allocation43_spill] sm:$0xff] }
 0x2c8   :  { %v4862_v47 = vsel %vm4860_vm10, %v10760_v34, %v10769_v18  ;;  %v10476_v2 = vxor.u32 2147483648, %v10772_v16  ;;  %vm402_vm11 = vweird.f32 %v10766_v44  ;;  %v3004_v17 = vand.u32 3, %v9361_v21  ;;  %v10886_v44 = vld [vmem:[#allocation75_spill] sm:$0xff] }
 0x2c9   :  { %v4865_v48 = vsel %vm4863_vm9, %v10770_v7, %v10759_v61  ;;  %v2372_v35 = vsub.s32 4, %v10773_v5  ;;  %vm10493_vm2 = vweird.f32 %v10775_v37  ;;  %vm10779_vm10 = vcmp.lt.s32.totalorder %v10775_v37, 0  ;;  %v9405_v45 = vpop.eup %7106 }
 0x2ca   :  { %v4866_v13 = vsel %vm4859_vm4, %v4862_v47, %v4865_v48  ;;  %v10778_v47 = vld [vmem:[#allocation70_spill] sm:$0xff]  ;;  %vm3005_vm14 = vcmp.lt.s32.totalorder %v3004_v17, 2  ;;  %vm3006_vm6 = vcmp.eq.s32.totalorder %v3004_v17, 0  ;;  %vm3009_vm5 = vcmp.eq.s32.totalorder %v3004_v17, 2 }
 0x2cb   :  { %v4867_v33 = vsel %vm10499_vm15, nan, %v4866_v13  ;;  %v500_v7 = vsub.s32 4, %v10778_v47  ;;  %v2373_v48 = vsel %vm10779_vm10, %v2372_v35, %v10773_v5  ;;  %v3008_v53 = vsel %vm3006_vm6, %v10772_v16, %v10474_v57  ;;  %v10784_v5 = vld [vmem:[#allocation74_spill] sm:$0xff]  ;;  %v10786_v57 = vld [vmem:[#allocation84_spill] sm:$0xff] }
 0x2cc   :  { %6662 = vmatmul.mubr.msk.f32.gmra.mrb[12].mxu1 %vm10774_vm7, %v4867_v33  ;;  %v3011_v13 = vsel %vm3009_vm5, %v10476_v2, %v8526_v36  ;;  %v9389_v18 = vsel %vm7942_vm12, 0, %v2373_v48  ;;  %vm10783_vm9 = vcmp.lt.s32.totalorder %v10782_v56, 0  ;;  %vm10785_vm4 = vnez %v10784_v5  ;;  %vm10789_vm12 = vmmov %vm10774_vm7 }
 0x2cd   :  { %6664 = vmatprep.mubr.msk.f32.mxu1 %vm10721_vm1, %v10720_v6  ;;  %10781 = vst [vmem:[#allocation23_spill] sm:$0xff] %v9389_v18  ;;  %v501_v17 = vsel %vm10783_vm9, %v500_v7, %v10778_v47  ;;  %v3012_v28 = vsel %vm3005_vm14, %v3008_v53, %v3011_v13  ;;  %v4961_v34 = vand.u32 3, %v9389_v18  ;;  %v10482_v61 = vxor.u32 2147483648, %v10786_v57  ;;  %v10800_v18 = vld [vmem:[#allocation65_spill] sm:$0xff] }
 0x2ce   :  { %v9397_v35 = vsel %vm10785_vm4, 0, %v501_v17  ;;  %v3013_v2 = vsel %vm402_vm11, nan, %v3012_v28  ;;  %v10486_v33 = vxor.u32 2147483648, %v10787_v14  ;;  %v2476_v29 = vsub.s32 4, %v10788_v8 }
 0x2cf   :  { %v3107_v48 = vand.u32 3, %v9397_v35  ;;  %6608 = vmatmul.mubr.msk.f32.gmra.mrb[2].mxu0 %vm10789_vm12, %v3013_v2  ;;  %vm4962_vm7 = vcmp.lt.s32.totalorder %v4961_v34, 2  ;;  %vm4963_vm14 = vcmp.eq.s32.totalorder %v4961_v34, 0  ;;  %vm4966_vm6 = vcmp.eq.s32.totalorder %v4961_v34, 2  ;;  %v10792_v2 = vld [vmem:[#allocation24_spill] sm:$0xff] }
 0x2d0   :  { %vm506_vm5 = vweird.f32 %v10782_v56  ;;  %v10790_v47 = vxor.u32 2147483648, %v10776_v22  ;;  %v10791_v28 = vxor.u32 2147483648, %v10777_v1  ;;  %6610 = vmatprep.mubr.msk.f32.mxu0 %vm10721_vm1, %v10720_v6  ;;  %vm10793_vm12 = vcmp.lt.s32.totalorder %v10792_v2, 0 }
 0x2d1   :  { %vm3108_vm10 = vcmp.lt.s32.totalorder %v3107_v48, 2  ;;  %vm3109_vm9 = vcmp.eq.s32.totalorder %v3107_v48, 0  ;;  %vm3112_vm4 = vcmp.eq.s32.totalorder %v3107_v48, 2  ;;  %v2477_v17 = vsel %vm10793_vm12, %v2476_v29, %v10788_v8  ;;  %v9423_v5 = vpop.eup %7108 }
 0x2d2   :  { %v4965_v7 = vsel %vm4963_vm14, %v10777_v1, %v10790_v47  ;;  %v4968_v53 = vsel %vm4966_vm6, %v10791_v28, %v10776_v22  ;;  %v3111_v34 = vsel %vm3109_vm9, %v10787_v14, %v10482_v61  ;;  %v3114_v28 = vsel %vm3112_vm4, %v10486_v33, %v10786_v57  ;;  %v10794_v1 = vld [vmem:[#allocation48_spill] sm:$0xff]  ;;  %v10799_v22 = vld [vmem:[#allocation53_spill] sm:$0xff] }
 0x2d3   :  { %v4969_v13 = vsel %vm4962_vm7, %v4965_v7, %v4968_v53  ;;  %vm10795_vm7 = vnez %v10794_v1  ;;  %v10797_v53 = vld [vmem:[#allocation55_spill] sm:$0xff]  ;;  %vm10798_vm14 = vcmask 130048   ;;  %v3115_v48 = vsel %vm3108_vm10, %v3111_v34, %v3114_v28  ;;  %v10801_v1 = vld [vmem:[#allocation78_spill] sm:$0xff]  ;;  %v10802_v33 = vld [vmem:[#allocation77_spill] sm:$0xff] }
 0x2d4   :  { %v4970_v47 = vsel %vm10493_vm2, nan, %v4969_v13  ;;  %v9432_v7 = vsel %vm10795_vm7, 0, %v2477_v17  ;;  %v604_v37 = vsub.s32 4, %v10800_v18  ;;  %v3116_v13 = vsel %vm506_vm5, nan, %v3115_v48  ;;  %vm10803_vm9 = vmmov %vm10798_vm14  ;;  %v10804_v34 = vld [vmem:[#allocation50_spill] sm:$0xff]  ;;  %v10808_v61 = vld [vmem:[#allocation72_spill] sm:$0xff] }
 0x2d5   :  { %10796 = vst [vmem:[#allocation60_spill] sm:$0xff] %v9432_v7  ;;  %6665 = vmatmul.mubr.msk.f32.gmra.mrb[14].mxu1 %vm10798_vm14, %v4970_v47  ;;  %v5064_v8 = vand.u32 3, %v9432_v7  ;;  %vm10498_vm6 = vweird.f32 %v10792_v2  ;;  %6611 = vmatmul.mubr.msk.f32.gmra.mrb[4].mxu0 %vm10803_vm9, %v3116_v13  ;;  %vm10805_vm7 = vcmp.lt.s32.totalorder %v10804_v34, 0  ;;  %v10806_v28 = vxor.u32 2147483648, %v10797_v53 }
 0x2d6   :  { %6667 = vmatprep.mubr.msk.f32.mxu1 %vm10721_vm1, %v10720_v6  ;;  %v605_v47 = vsel %vm10805_vm7, %v604_v37, %v10800_v18  ;;  %v10807_v48 = vxor.u32 2147483648, %v10799_v22  ;;  %6613 = vmatprep.mubr.msk.f32.mxu0 %vm10721_vm1, %v10720_v6  ;;  %vm10809_vm14 = vnez %v10808_v61  ;;  %vm10524_vm9 = vweird.f32 %v10804_v34  ;;  %v10811_v18 = vld [vmem:[#allocation51_spill] sm:$0xff] }
 0x2d7   :  { %vm5065_vm10 = vcmp.lt.s32.totalorder %v5064_v8, 2  ;;  %vm5066_vm4 = vcmp.eq.s32.totalorder %v5064_v8, 0  ;;  %vm5069_vm12 = vcmp.eq.s32.totalorder %v5064_v8, 2  ;;  %v9460_v13 = vsel %vm10809_vm14, 0, %v605_v47  ;;  %v10810_v8 = vld [vmem:[#allocation31_spill] sm:$0xff]  ;;  %v10815_v47 = vld [vmem:[#allocation76_spill] sm:$0xff] }
 0x2d8   :  { %v5068_v29 = vsel %vm5066_vm4, %v10799_v22, %v10806_v28  ;;  %v5071_v7 = vsel %vm5069_vm12, %v10807_v48, %v10797_v53  ;;  %v2580_v17 = vsub.s32 4, %v10810_v8  ;;  %v3210_v37 = vand.u32 3, %v9460_v13  ;;  %v10812_v48 = vld [vmem:[#allocation18_spill] sm:$0xff]  ;;  %v10822_v28 = vld [vmem:[#allocation63_spill] sm:$0xff] }
 0x2d9   :  { %v5072_v62 = vsel %vm5065_vm10, %v5068_v29, %v5071_v7  ;;  %vm10813_vm4 = vcmp.lt.s32.totalorder %v10812_v48, 0  ;;  %v708_v52 = vsub.s32 4, %v10815_v47  ;;  %vm10816_vm12 = vcmask 130048   ;;  %v10817_v7 = vld [vmem:[#allocation40_spill] sm:$0xff] }
 0x2da   :  { %v5073_v22 = vsel %vm10498_vm6, nan, %v5072_v62  ;;  %v2581_v53 = vsel %vm10813_vm4, %v2580_v17, %v10810_v8  ;;  %vm3211_vm10 = vcmp.lt.s32.totalorder %v3210_v37, 2  ;;  %vm3212_vm7 = vcmp.eq.s32.totalorder %v3210_v37, 0 }
 0x2db   :  { %6668 = vmatmul.mubr.msk.f32.gmra.mrb[16].mxu1 %vm10816_vm12, %v5073_v22  ;;  %vm3215_vm14 = vcmp.eq.s32.totalorder %v3210_v37, 2  ;;  %vm10818_vm2 = vnez %v10817_v7  ;;  %v10820_v62 = vxor.u32 2147483648, %v10801_v1  ;;  %v10821_v8 = vxor.u32 2147483648, %v10802_v33 }
 0x2dc   :  { %v9476_v29 = vsel %vm10818_vm2, 0, %v2581_v53  ;;  %6670 = vmatprep.mubr.msk.f32.mxu1 %vm10721_vm1, %v10720_v6  ;;  %vm10823_vm4 = vcmp.lt.s32.totalorder %v10822_v28, 0  ;;  %vm10503_vm2 = vweird.f32 %v10812_v48  ;;  %v10824_v53 = vld [vmem:[#allocation81_spill] sm:$0xff]  ;;  %vm10827_vm15 = vcmask 130048  }
 0x2dd   :  { %10819 = vst [vmem:[#allocation49_spill] sm:$0xff] %v9476_v29  ;;  %v3214_v17 = vsel %vm3212_vm7, %v10802_v33, %v10820_v62  ;;  %v3217_v61 = vsel %vm3215_vm14, %v10821_v8, %v10801_v1  ;;  %v5167_v22 = vand.u32 3, %v9476_v29  ;;  %v709_v37 = vsel %vm10823_vm4, %v708_v52, %v10815_v47 }
 0x2de   :  { %v3218_v7 = vsel %vm3211_vm10, %v3214_v17, %v3217_v61  ;;  %vm10825_vm12 = vnez %v10824_v53  ;;  %v10828_v8 = vxor.u32 2147483648, %v10811_v18  ;;  %v10829_v61 = vxor.u32 2147483648, %v10814_v15  ;;  %v10830_v17 = vld [vmem:[#allocation87_spill] sm:$0xff] }
 0x2df   :  { %v9493_v2 = vsel %vm10825_vm12, 0, %v709_v37  ;;  %v3219_v62 = vsel %vm10524_vm9, nan, %v3218_v7  ;;  %vm5168_vm7 = vcmp.lt.s32.totalorder %v5167_v22, 2  ;;  %vm5169_vm14 = vcmp.eq.s32.totalorder %v5167_v22, 0 }
 0x2e0   :  { %vm5172_vm6 = vcmp.eq.s32.totalorder %v5167_v22, 2  ;;  %6614 = vmatmul.mubr.msk.f32.gmra.mrb[6].mxu0 %vm10827_vm15, %v3219_v62  ;;  %v5171_v52 = vsel %vm5169_vm14, %v10814_v15, %v10828_v8  ;;  %v10508_v37 = vxor.u32 2147483648, %v10830_v17  ;;  %v3313_v53 = vand.u32 3, %v9493_v2  ;;  %v10831_v22 = vld [vmem:[#allocation52_spill] sm:$0xff]  ;;  %v10832_v62 = vld [vmem:[#allocation35_spill] sm:$0xff]  ;;  %v10837_v15 = vld [vmem:[#allocation58_spill] sm:$0xff] }
 0x2e1   :  { %v5174_v47 = vsel %vm5172_vm6, %v10829_v61, %v10811_v18  ;;  %6616 = vmatprep.mubr.msk.f32.mxu0 %vm10721_vm1, %v10720_v6  ;;  %vm10523_vm10 = vweird.f32 %v10822_v28  ;;  %v2684_v7 = vsub.s32 4, %v10831_v22  ;;  %vm10525_vm15 = vweird.f32 %v10832_v62  ;;  %v10833_v61 = vld [vmem:[#allocation67_spill] sm:$0xff] }
 0x2e2   :  { %v5175_v54 = vsel %vm5168_vm7, %v5171_v52, %v5174_v47  ;;  %vm3315_vm4 = vcmp.eq.s32.totalorder %v3313_v53, 0  ;;  %vm3318_vm12 = vcmp.eq.s32.totalorder %v3313_v53, 2  ;;  %vm10834_vm6 = vcmask 130048  }
 0x2e3   :  { %v5176_v8 = vsel %vm10503_vm2, nan, %v5175_v54  ;;  %vm3314_vm14 = vcmp.lt.s32.totalorder %v3313_v53, 2  ;;  %v10835_v52 = vxor.u32 2147483648, %v10826_v50  ;;  %v3320_v18 = vsel %vm3318_vm12, %v10508_v37, %v10826_v50  ;;  %v10840_v53 = vld [vmem:[#allocation66_spill] sm:$0xff]  ;;  %vm10844_vm12 = vmmov %vm10834_vm6 }
 0x2e4   :  { %6671 = vmatmul.mubr.msk.f32.gmra.mrb[18].mxu1 %vm10834_vm6, %v5176_v8  ;;  %vm10836_vm7 = vcmp.lt.s32.totalorder %v10832_v62, 0  ;;  %vm10838_vm2 = vnez %v10837_v15  ;;  %vm10845_vm6 = vcmp.lt.s32.totalorder %v10842_v38, 0  ;;  %v10526_v40 = vxor.u32 2147483648, %v10857_v19  ;;  %v10873_v62 = vld [vmem:[#allocation91_spill] sm:$0xff] }
 0x2e5   :  { %v3317_v47 = vsel %vm3315_vm4, %v10830_v17, %v10835_v52  ;;  %v2685_v48 = vsel %vm10836_vm7, %v2684_v7, %v10831_v22  ;;  %6673 = vmatprep.mubr.msk.f32.mxu1 %vm10721_vm1, %v10720_v6  ;;  %v812_v52 = vsub.s32 4, %v10841_v46  ;;  %vm818_vm4 = vweird.f32 %v10842_v38  ;;  %v10843_v22 = vld [vmem:[#allocation86_spill] sm:$0xff] }
 0x2e6   :  { %v3321_v54 = vsel %vm3314_vm14, %v3317_v47, %v3320_v18  ;;  %v9529_v8 = vsel %vm10838_vm2, 0, %v2685_v48  ;;  %v10846_v18 = vld [vmem:[#allocation85_spill] sm:$0xff]  ;;  %v10853_v48 = vxor.u32 2147483648, %v10840_v53  ;;  %v916_v10 = vsub.s32 4, %v10858_v24 }
 0x2e7   :  { %10839 = vst [vmem:[#allocation68_spill] sm:$0xff] %v9529_v8  ;;  %v3322_v30 = vsel %vm10523_vm10, nan, %v3321_v54  ;;  %v5270_v37 = vand.u32 3, %v9529_v8  ;;  %v813_v15 = vsel %vm10845_vm6, %v812_v52, %v10841_v46  ;;  %v10847_v47 = vld [vmem:[#allocation41_spill] sm:$0xff]  ;;  %v10849_v54 = vld [vmem:[#allocation79_spill] sm:$0xff]  ;;  %v10852_v46 = vxor.u32 2147483648, %v10833_v61 }
 0x2e8   :  { %6617 = vmatmul.mubr.msk.f32.gmra.mrb[8].mxu0 %vm10844_vm12, %v3322_v30  ;;  %v2788_v29 = vsub.s32 4, %v10847_v47  ;;  %vm10850_vm3 = vnez %v10849_v54  ;;  %v10851_v30 = vld [vmem:[#allocation28_spill] sm:$0xff]  ;;  %v10855_v54 = vld [vmem:[#allocation54_spill] sm:$0xff]  ;;  %vm10859_vm9 = vcmask 130048   ;;  %7110 = vsinq.f32 %v9338_v63 }
 0x2e9   :  { %vm5271_vm2 = vcmp.lt.s32.totalorder %v5270_v37, 2  ;;  %vm5272_vm14 = vcmp.eq.s32.totalorder %v5270_v37, 0  ;;  %vm5275_vm7 = vcmp.eq.s32.totalorder %v5270_v37, 2  ;;  %6619 = vmatprep.mubr.msk.f32.mxu0 %vm10721_vm1, %v10720_v6  ;;  %v9549_v7 = vsel %vm10850_vm3, 0, %v813_v15 }
 0x2ea   :  { %vm10533_vm12 = vweird.f32 %v10851_v30  ;;  %v5274_v52 = vsel %vm5272_vm14, %v10840_v53, %v10852_v46  ;;  %v5277_v12 = vsel %vm5275_vm7, %v10853_v48, %v10833_v61  ;;  %v3416_v8 = vand.u32 3, %v9549_v7 }
 0x2eb   :  { %vm10854_vm6 = vcmp.lt.s32.totalorder %v10851_v30, 0  ;;  %v5278_v59 = vsel %vm5271_vm2, %v5274_v52, %v5277_v12  ;;  %vm10856_vm3 = vnez %v10855_v54  ;;  %v10860_v48 = vxor.u32 2147483648, %v10843_v22 }
 0x2ec   :  { %v2789_v37 = vsel %vm10854_vm6, %v2788_v29, %v10847_v47  ;;  %v5279_v46 = vsel %vm10525_vm15, nan, %v5278_v59  ;;  %vm3417_vm14 = vcmp.lt.s32.totalorder %v3416_v8, 2  ;;  %vm3418_vm7 = vcmp.eq.s32.totalorder %v3416_v8, 0 }
 0x2ed   :  { %v9564_v15 = vsel %vm10856_vm3, 0, %v2789_v37  ;;  %vm3421_vm10 = vcmp.eq.s32.totalorder %v3416_v8, 2  ;;  %6674 = vmatmul.mubr.msk.f32.gmra.mrb[20].mxu1 %vm10859_vm9, %v5279_v46  ;;  %v3420_v12 = vsel %vm3418_vm7, %v10846_v18, %v10860_v48  ;;  %v10861_v29 = vxor.u32 2147483648, %v10846_v18  ;;  %v10866_v48 = vld [vmem:[#allocation96_spill] sm:$0xff] }
 0x2ee   :  { %v5373_v52 = vand.u32 3, %v9564_v15  ;;  %vm10862_vm2 = vcmp.lt.s32.totalorder %v8546_v20, 0  ;;  %6676 = vmatprep.mubr.msk.f32.mxu1 %vm10721_vm1, %v10720_v6  ;;  %vm10863_vm9 = vnez %v10694_v3  ;;  %vm10535_vm6 = vweird.f32 %v8546_v20 }
 0x2ef   :  { %v3423_v47 = vsel %vm3421_vm10, %v10861_v29, %v10843_v22  ;;  %v917_v37 = vsel %vm10862_vm2, %v916_v10, %v10858_v24  ;;  %vm10864_vm15 = vcmask 130048   ;;  %v10865_v10 = vxor.u32 2147483648, %v10848_v60 }
 0x2f0   :  { %v3424_v59 = vsel %vm3417_vm14, %v3420_v12, %v3423_v47  ;;  %v9585_v8 = vsel %vm10863_vm9, 0, %v917_v37  ;;  %vm5374_vm10 = vcmp.lt.s32.totalorder %v5373_v52, 2  ;;  %vm5375_vm3 = vcmp.eq.s32.totalorder %v5373_v52, 0  ;;  %v10867_v37 = vld [vmem:[#allocation80_spill] sm:$0xff] }
 0x2f1   :  { %v3425_v46 = vsel %vm818_vm4, nan, %v3424_v59  ;;  %vm5378_vm7 = vcmp.eq.s32.totalorder %v5373_v52, 2  ;;  %v5377_v24 = vsel %vm5375_vm3, %v10857_v19, %v10865_v10  ;;  %v10531_v12 = vxor.u32 2147483648, %v10866_v48  ;;  %v10868_v59 = vld [vmem:[#allocation71_spill] sm:$0xff]  ;;  %v10876_v19 = vld [vmem:[#allocation92_spill] sm:$0xff] }
 0x2f2   :  { %6620 = vmatmul.mubr.msk.f32.gmra.mrb[10].mxu0 %vm10864_vm15, %v3425_v46  ;;  %v5380_v3 = vsel %vm5378_vm7, %v10526_v40, %v10848_v60  ;;  %v3519_v29 = vand.u32 3, %v9585_v8  ;;  %v1020_v52 = vsub.s32 4, %v10867_v37  ;;  %vm1026_vm15 = vweird.f32 %v10868_v59  ;;  %v10869_v46 = vld [vmem:[#allocation93_spill] sm:$0xff] }
 0x2f3   :  { %v5381_v47 = vsel %vm5374_vm10, %v5377_v24, %v5380_v3  ;;  %6622 = vmatprep.mubr.msk.f32.mxu0 %vm10721_vm1, %v10720_v6  ;;  %vm10870_vm3 = vcmask 130048   ;;  %v10871_v40 = vxor.u32 2147483648, %v9008_v23  ;;  %vm10872_vm10 = vcmp.lt.s32.totalorder %v10868_v59, 0 }
 0x2f4   :  { %v5382_v10 = vsel %vm10533_vm12, nan, %v5381_v47  ;;  %vm3520_vm14 = vcmp.lt.s32.totalorder %v3519_v29, 2  ;;  %vm3521_vm2 = vcmp.eq.s32.totalorder %v3519_v29, 0  ;;  %vm3524_vm9 = vcmp.eq.s32.totalorder %v3519_v29, 2  ;;  %v10874_v47 = vld [vmem:[#allocation89_spill] sm:$0xff] }
 0x2f5   :  { %6677 = vmatmul.mubr.msk.f32.gmra.mrb[22].mxu1 %vm10870_vm3, %v5382_v10  ;;  %v3523_v24 = vsel %vm3521_vm2, %v10866_v48, %v10871_v40  ;;  %v3526_v3 = vsel %vm3524_vm9, %v10531_v12, %v9008_v23  ;;  %v1021_v54 = vsel %vm10872_vm10, %v1020_v52, %v10867_v37  ;;  %v10534_v30 = vxor.u32 2147483648, %v10873_v62  ;;  %vm10877_vm9 = vmmov %vm10870_vm3 }
 0x2f6   :  { %6683 = vmatprep.mubr.msk.f32.mxu1 %vm10721_vm1, %v10720_v6  ;;  %v3527_v29 = vsel %vm3520_vm14, %v3523_v24, %v3526_v3  ;;  %vm10875_vm7 = vnez %v10874_v47  ;;  %v403_v40 = vadd.s32 3, %v9361_v21  ;;  %v1124_v60 = vsub.s32 4, %v10876_v19 }
 0x2f7   :  { %v9622_v10 = vsel %vm10875_vm7, 0, %v1021_v54  ;;  %v3528_v12 = vsel %vm10535_vm6, nan, %v3527_v29  ;;  %vm1130_vm2 = vweird.f32 %v8725_v4  ;;  %v1135_v37 = vxor.u32 2147483648, %v9090_v51 }
 0x2f8   :  { %v3622_v53 = vand.u32 3, %v9622_v10  ;;  %6623 = vmatmul.mubr.msk.f32.gmra.mrb[12].mxu0 %vm10877_vm9, %v3528_v12  ;;  %v404_v52 = vand.u32 3, %v403_v40  ;;  %vm10878_vm14 = vcmp.lt.s32.totalorder %v8725_v4, 0  ;;  %v1138_v21 = vxor.u32 2147483648, %v9088_v58 }
 0x2f9   :  { %v1125_v54 = vsel %vm10878_vm14, %v1124_v60, %v10876_v19  ;;  %v507_v24 = vadd.s32 3, %v9397_v35  ;;  %6684 = vmatmul.mubr.msk.f32.vlgmr.msra.gmra.mrb[24].mxu1 %vm10870_vm3, %v9347_v39  ;;  %6625 = vmatprep.mubr.msk.f32.mxu0 %vm10721_vm1, %v10720_v6  ;;  %vm10879_vm9 = vnez %v10707_v0  ;;  %v10880_v19 = vxor.u32 2147483648, %v10869_v46 }
 0x2fa   :  { %vm3623_vm10 = vcmp.lt.s32.totalorder %v3622_v53, 2  ;;  %vm3624_vm7 = vcmp.eq.s32.totalorder %v3622_v53, 0  ;;  %vm3627_vm12 = vcmp.eq.s32.totalorder %v3622_v53, 2  ;;  %v9643_v12 = vsel %vm10879_vm9, 0, %v1125_v54  ;;  %6686 = vmatprep.mubr.msk.f32.mxu1 %vm10721_vm1, %v10720_v6 }
 0x2fb   :  { %v3626_v60 = vsel %vm3624_vm7, %v10873_v62, %v10880_v19  ;;  %v3629_v39 = vsel %vm3627_vm12, %v10534_v30, %v10869_v46  ;;  %vm405_vm14 = vcmp.lt.s32.totalorder %v404_v52, 2  ;;  %vm406_vm3 = vcmp.eq.s32.totalorder %v404_v52, 0  ;;  %v10883_v19 = vld [vmem:[#allocation90_spill] sm:$0xff] }
 0x2fc   :  { %v3630_v35 = vsel %vm3623_vm10, %v3626_v60, %v3629_v39  ;;  %v10881_v53 = vxor.u32 2147483648, %v8526_v36  ;;  %vm409_vm9 = vcmp.eq.s32.totalorder %v404_v52, 2  ;;  %v3725_v3 = vand.u32 3, %v9643_v12 }
 0x2fd   :  { %v3631_v29 = vsel %vm1026_vm15, nan, %v3630_v35  ;;  %v10882_v47 = vxor.u32 2147483648, %v10772_v16  ;;  %v508_v54 = vand.u32 3, %v507_v24  ;;  %v1228_v30 = vsub.s32 4, %v10883_v19 }
 0x2fe   :  { %v408_v0 = vsel %vm406_vm3, %v10772_v16, %v10881_v53  ;;  %vm10884_vm12 = vcmask 130048   ;;  %vm3726_vm10 = vcmp.lt.s32.totalorder %v3725_v3, 2  ;;  %vm3727_vm7 = vcmp.eq.s32.totalorder %v3725_v3, 0 }
 0x2ff   :  { %v411_v40 = vsel %vm409_vm9, %v10882_v47, %v8526_v36  ;;  %6626 = vmatmul.mubr.msk.f32.gmra.mrb[14].mxu0 %vm10884_vm12, %v3631_v29  ;;  %vm3730_vm6 = vcmp.eq.s32.totalorder %v3725_v3, 2  ;;  %v3729_v16 = vsel %vm3727_vm7, %v9088_v58, %v1135_v37  ;;  %vm509_vm3 = vcmp.lt.s32.totalorder %v508_v54, 2  ;;  %vm10885_vm9 = vmmov %vm10884_vm12  ;;  %v10890_v47 = vld [vmem:[#allocation94_spill] sm:$0xff] }
 0x300   :  { %v412_v60 = vsel %vm405_vm14, %v408_v0, %v411_v40  ;;  %6628 = vmatprep.mubr.msk.f32.mxu0 %vm10721_vm1, %v10720_v6  ;;  %v3732_v36 = vsel %vm3730_vm6, %v1138_v21, %v9090_v51  ;;  %vm510_vm14 = vcmp.eq.s32.totalorder %v508_v54, 0  ;;  %vm513_vm12 = vcmp.eq.s32.totalorder %v508_v54, 2  ;;  %vm10894_vm7 = vmmov %vm10885_vm9 }
 0x301   :  { %v413_v52 = vsel %vm402_vm11, nan, %v412_v60  ;;  %v3733_v24 = vsel %vm3726_vm10, %v3729_v16, %v3732_v36  ;;  %vm10887_vm11 = vcmp.lt.s32.totalorder %v10886_v44, 0  ;;  %v10888_v53 = vxor.u32 2147483648, %v10786_v57  ;;  %vm10892_vm10 = vmmov %vm10885_vm9 }
 0x302   :  { %6687 = vmatmul.mubr.msk.f32.gmra.mrb[26].mxu1 %vm10885_vm9, %v413_v52  ;;  %v1229_v39 = vsel %vm10887_vm11, %v1228_v30, %v10883_v19  ;;  %v3734_v35 = vsel %vm1130_vm2, nan, %v3733_v24  ;;  %v10889_v3 = vxor.u32 2147483648, %v10787_v14  ;;  %vm10891_vm6 = vnez %v10890_v47  ;;  %v10893_v19 = vld [vmem:[#allocation97_spill] sm:$0xff] }
 0x303   :  { %6689 = vmatprep.mubr.msk.f32.mxu1 %vm10721_vm1, %v10720_v6  ;;  %v512_v0 = vsel %vm510_vm14, %v10787_v14, %v10888_v53  ;;  %v9690_v40 = vsel %vm10891_vm6, 0, %v1229_v39  ;;  %6629 = vmatmul.mubr.msk.f32.gmra.mrb[16].mxu0 %vm10892_vm10, %v3734_v35  ;;  %v1239_v54 = vxor.u32 2147483648, %v9029_v41  ;;  %v1242_v60 = vxor.u32 2147483648, %v10893_v19 }
 0x304   :  { %v515_v29 = vsel %vm513_vm12, %v10889_v3, %v10786_v57  ;;  %6631 = vmatprep.mubr.msk.f32.mxu0 %vm10721_vm1, %v10720_v6  ;;  %v3828_v14 = vand.u32 3, %v9690_v40  ;;  %v611_v57 = vadd.s32 3, %v9460_v13  ;;  %v1332_v16 = vsub.s32 4, %v9084_v43 }
 0x305   :  { %v516_v30 = vsel %vm509_vm3, %v512_v0, %v515_v29  ;;  %vm1234_vm3 = vweird.f32 %v10886_v44  ;;  %v1343_v63 = vxor.u32 2147483648, %v9405_v45  ;;  %v1346_v36 = vxor.u32 2147483648, %v9328_v42 }
 0x306   :  { %v517_v52 = vsel %vm506_vm5, nan, %v516_v30  ;;  %v715_v56 = vadd.s32 3, %v9493_v2  ;;  %vm3829_vm5 = vcmp.lt.s32.totalorder %v3828_v14, 2  ;;  %vm3830_vm9 = vcmp.eq.s32.totalorder %v3828_v14, 0 }
 0x307   :  { %6690 = vmatmul.mubr.msk.f32.gmra.mrb[28].mxu1 %vm10894_vm7, %v517_v52  ;;  %vm3833_vm14 = vcmp.eq.s32.totalorder %v3828_v14, 2  ;;  %v612_v24 = vand.u32 3, %v611_v57  ;;  %v3832_v13 = vsel %vm3830_vm9, %v10893_v19, %v1239_v54  ;;  %vm10895_vm12 = vcmp.lt.s32.totalorder %v8913_v9, 0 }
 0x308   :  { %6692 = vmatprep.mubr.msk.f32.mxu1 %vm10721_vm1, %v10720_v6  ;;  %v3835_v39 = vsel %vm3833_vm14, %v1242_v60, %v9029_v41  ;;  %v1333_v35 = vsel %vm10895_vm12, %v1332_v16, %v9084_v43  ;;  %v716_v2 = vand.u32 3, %v715_v56  ;;  %v10896_v3 = vxor.u32 2147483648, %v10801_v1 }
 0x309   :  { %v3836_v53 = vsel %vm3829_vm5, %v3832_v13, %v3835_v39  ;;  %vm613_vm11 = vcmp.lt.s32.totalorder %v612_v24, 2  ;;  %vm614_vm6 = vcmp.eq.s32.totalorder %v612_v24, 0  ;;  %vm617_vm10 = vcmp.eq.s32.totalorder %v612_v24, 2  ;;  %v9745_v24 = vpop.eup %7110 }
 0x30a   :  { %v3837_v0 = vsel %vm1234_vm3, nan, %v3836_v53  ;;  %v616_v29 = vsel %vm614_vm6, %v10802_v33, %v10896_v3  ;;  %v10897_v47 = vxor.u32 2147483648, %v10802_v33  ;;  %v9729_v52 = vsel %vm9199_vm13, 0, %v1333_v35  ;;  %vm10901_vm13 = vmmov %vm10894_vm7 }
 0x30b   :  { %6632 = vmatmul.mubr.msk.f32.gmra.mrb[18].mxu0 %vm10894_vm7, %v3837_v0  ;;  %v3931_v14 = vand.u32 3, %v9729_v52  ;;  %vm717_vm5 = vcmp.lt.s32.totalorder %v716_v2, 2  ;;  %vm718_vm9 = vcmp.eq.s32.totalorder %v716_v2, 0  ;;  %vm10898_vm14 = vweird.f32 %v10804_v34 }
 0x30c   :  { %v619_v30 = vsel %vm617_vm10, %v10897_v47, %v10801_v1  ;;  %6634 = vmatprep.mubr.msk.f32.mxu0 %vm10721_vm1, %v10720_v6  ;;  %v10899_v33 = vxor.u32 2147483648, %v10826_v50  ;;  %vm721_vm12 = vcmp.eq.s32.totalorder %v716_v2, 2  ;;  %v1436_v16 = vsub.s32 4, %v10900_v26 }
 0x30d   :  { %v620_v43 = vsel %vm613_vm11, %v616_v29, %v619_v30  ;;  %vm3932_vm11 = vcmp.lt.s32.totalorder %v3931_v14, 2  ;;  %vm3933_vm6 = vcmp.eq.s32.totalorder %v3931_v14, 0  ;;  %vm3936_vm10 = vcmp.eq.s32.totalorder %v3931_v14, 2 }
 0x30e   :  { %v621_v57 = vsel %vm10898_vm14, nan, %v620_v43  ;;  %v720_v1 = vsel %vm718_vm9, %v10830_v17, %v10899_v33  ;;  %v10902_v56 = vxor.u32 2147483648, %v10830_v17  ;;  %v3935_v13 = vsel %vm3933_vm6, %v9328_v42, %v1343_v63 }
 0x30f   :  { %6693 = vmatmul.mubr.msk.f32.gmra.mrb[30].mxu1 %vm10901_vm13, %v621_v57  ;;  %v3938_v39 = vsel %vm3936_vm10, %v1346_v36, %v9405_v45  ;;  %vm10903_vm7 = vcmp.lt.s32.totalorder %v8747_v32, 0  ;;  %vm1338_vm9 = vweird.f32 %v8913_v9  ;;  %vm10904_vm14 = vweird.f32 %v10822_v28 }
 0x310   :  { %v723_v34 = vsel %vm721_vm12, %v10902_v56, %v10826_v50  ;;  %6695 = vmatprep.mubr.msk.f32.mxu1 %vm10721_vm1, %v10720_v6  ;;  %v1437_v17 = vsel %vm10903_vm7, %v1436_v16, %v10900_v26  ;;  %v3939_v50 = vsel %vm3932_vm11, %v3935_v13, %v3938_v39  ;;  %v1447_v2 = vxor.u32 2147483648, %v9210_v49 }
 0x311   :  { %v724_v35 = vsel %vm717_vm5, %v720_v1, %v723_v34  ;;  %v9764_v0 = vsel %vm9078_vm0, 0, %v1437_v17  ;;  %v3940_v3 = vsel %vm1338_vm9, nan, %v3939_v50  ;;  %v1450_v29 = vxor.u32 2147483648, %v9173_v31  ;;  %vm10905_vm5 = vmmov %vm10901_vm13 }
 0x312   :  { %v725_v53 = vsel %vm10904_vm14, nan, %v724_v35  ;;  %v4034_v47 = vand.u32 3, %v9764_v0  ;;  %6635 = vmatmul.mubr.msk.f32.gmra.mrb[20].mxu0 %vm10905_vm5, %v3940_v3  ;;  %vm10906_vm12 = vmmov %vm10905_vm5  ;;  %vm1442_vm13 = vweird.f32 %v8747_v32  ;;  %v819_v28 = vadd.s32 3, %v9549_v7 }
 0x313   :  { %6696 = vmatmul.mubr.msk.f32.gmra.mrb[32].mxu1 %vm10906_vm12, %v725_v53  ;;  %v1540_v55 = vsub.s32 4, %v9166_v27  ;;  %v1551_v30 = vxor.u32 2147483648, %v9745_v24  ;;  %6637 = vmatprep.mubr.msk.f32.mxu0 %vm10721_vm1, %v10720_v6  ;;  %v1554_v43 = vxor.u32 2147483648, %v9423_v5  ;;  %vm10907_vm10 = vcmp.lt.s32.totalorder %v8916_v11, 0 }
 0x314   :  { %6698 = vmatprep.mubr.msk.f32.mxu1 %vm10721_vm1, %v10720_v6  ;;  %vm4035_vm0 = vcmp.lt.s32.totalorder %v4034_v47, 2  ;;  %vm4036_vm11 = vcmp.eq.s32.totalorder %v4034_v47, 0  ;;  %vm4039_vm6 = vcmp.eq.s32.totalorder %v4034_v47, 2  ;;  %v820_v57 = vand.u32 3, %v819_v28 }
 0x315   :  { %v4038_v14 = vsel %vm4036_vm11, %v9173_v31, %v1447_v2  ;;  %v4041_v7 = vsel %vm4039_vm6, %v1450_v29, %v9210_v49  ;;  %v1541_v33 = vsel %vm10907_vm10, %v1540_v55, %v9166_v27  ;;  %v923_v16 = vadd.s32 3, %v9585_v8  ;;  %vm10910_vm6 = vmmov %vm10906_vm12 }
 0x316   :  { %v4042_v1 = vsel %vm4035_vm0, %v4038_v14, %v4041_v7  ;;  %v9793_v26 = vsel %vm9291_vm8, 0, %v1541_v33  ;;  %v1027_v56 = vadd.s32 3, %v9622_v10  ;;  %vm821_vm7 = vcmp.lt.s32.totalorder %v820_v57, 2 }
 0x317   :  { %v4043_v34 = vsel %vm1442_vm13, nan, %v4042_v1  ;;  %vm822_vm14 = vcmp.eq.s32.totalorder %v820_v57, 0  ;;  %vm825_vm5 = vcmp.eq.s32.totalorder %v820_v57, 2  ;;  %v10908_v13 = vxor.u32 2147483648, %v10843_v22 }
 0x318   :  { %6638 = vmatmul.mubr.msk.f32.gmra.mrb[22].mxu0 %vm10906_vm12, %v4043_v34  ;;  %v10909_v25 = vxor.u32 2147483648, %v10846_v18  ;;  %v4137_v8 = vand.u32 3, %v9793_v26  ;;  %v924_v35 = vand.u32 3, %v923_v16  ;;  %vm1546_vm8 = vweird.f32 %v8916_v11  ;;  %v10935_v11 = vld [vmem:[#allocation6_spill] sm:$0xff] }
 0x319   :  { %v824_v27 = vsel %vm822_vm14, %v10846_v18, %v10908_v13  ;;  %6640 = vmatprep.mubr.msk.f32.mxu0 %vm10721_vm1, %v10720_v6  ;;  %v1028_v17 = vand.u32 3, %v1027_v56  ;;  %v1131_v50 = vadd.s32 3, %v9643_v12  ;;  %v1235_v18 = vadd.s32 3, %v9690_v40 }
 0x31a   :  { %v827_v39 = vsel %vm825_vm5, %v10909_v25, %v10843_v22  ;;  %vm4139_vm0 = vcmp.eq.s32.totalorder %v4137_v8, 0  ;;  %vm4142_vm11 = vcmp.eq.s32.totalorder %v4137_v8, 2  ;;  %vm4138_vm10 = vcmp.lt.s32.totalorder %v4137_v8, 2 }
 0x31b   :  { %v828_v10 = vsel %vm821_vm7, %v824_v27, %v827_v39  ;;  %v4141_v22 = vsel %vm4139_vm0, %v9423_v5, %v1551_v30  ;;  %v4144_v3 = vsel %vm4142_vm11, %v1554_v43, %v9745_v24  ;;  %vm926_vm7 = vcmp.eq.s32.totalorder %v924_v35, 0  ;;  %vm10913_vm0 = vmmov %vm10910_vm6 }
 0x31c   :  { %v829_v53 = vsel %vm818_vm4, nan, %v828_v10  ;;  %v4145_v38 = vsel %vm4138_vm10, %v4141_v22, %v4144_v3  ;;  %vm925_vm4 = vcmp.lt.s32.totalorder %v924_v35, 2  ;;  %v10911_v12 = vxor.u32 2147483648, %v9008_v23  ;;  %vm10917_vm10 = vmmov %vm10913_vm0  ;;  %v10930_v22 = vld [vmem:[#allocation30_spill] sm:$0xff] }
 0x31d   :  { %6699 = vmatmul.mubr.msk.f32.gmra.mrb[34].mxu1 %vm10910_vm6, %v829_v53  ;;  %vm929_vm14 = vcmp.eq.s32.totalorder %v924_v35, 2  ;;  %v4146_v47 = vsel %vm1546_vm8, nan, %v4145_v38  ;;  %v10912_v28 = vxor.u32 2147483648, %v10866_v48  ;;  %vm1030_vm5 = vcmp.eq.s32.totalorder %v1028_v17, 0  ;;  %v10932_v38 = vld [vmem:[#allocation29_spill] sm:$0xff] }
 0x31e   :  { %6701 = vmatprep.mubr.msk.f32.mxu1 %vm10721_vm1, %v10720_v6  ;;  %v928_v40 = vsel %vm926_vm7, %v10866_v48, %v10911_v12  ;;  %vm1033_vm12 = vcmp.eq.s32.totalorder %v1028_v17, 2  ;;  %6641 = vmatmul.mubr.msk.f32.gmra.mrb[24].mxu0 %vm10913_vm0, %v4146_v47  ;;  %v10914_v7 = vxor.u32 2147483648, %v10869_v46  ;;  %v10915_v33 = vxor.u32 2147483648, %v10873_v62 }
 0x31f   :  { %v931_v55 = vsel %vm929_vm14, %v10912_v28, %v9008_v23  ;;  %v1132_v16 = vand.u32 3, %v1131_v50  ;;  %vm10916_vm11 = vweird.f32 %v8546_v20  ;;  %vm1029_vm6 = vcmp.lt.s32.totalorder %v1028_v17, 2  ;;  %6790 = vmatprep.mubr.msk.f32.mxu0 %vm10721_vm1, %v10720_v6  ;;  %v10927_v50 = vld [vmem:[#allocation19_spill] sm:$0xff] }
 0x320   :  { %v932_v14 = vsel %vm925_vm4, %v928_v40, %v931_v55  ;;  %v1032_v57 = vsel %vm1030_vm5, %v10873_v62, %v10914_v7  ;;  %v1035_v1 = vsel %vm1033_vm12, %v10915_v33, %v10869_v46  ;;  %v1339_v23 = vadd.s32 3, %v9729_v52  ;;  %vm10918_vm5 = vmmov %vm10913_vm0  ;;  %v10934_v28 = vld [vmem:[#allocation15_spill] sm:$0xff] }
 0x321   :  { %v933_v56 = vsel %vm10916_vm11, nan, %v932_v14  ;;  %v1036_v48 = vsel %vm1029_vm6, %v1032_v57, %v1035_v1  ;;  %vm1134_vm7 = vcmp.eq.s32.totalorder %v1132_v16, 0  ;;  %vm1137_vm4 = vcmp.eq.s32.totalorder %v1132_v16, 2  ;;  %v10937_v57 = vld [vmem:[#allocation16_spill] sm:$0xff]  ;;  %v10939_v1 = vld [vmem:[#allocation14_spill] sm:$0xff] }
 0x322   :  { %6702 = vmatmul.mubr.msk.f32.gmra.mrb[36].mxu1 %vm10917_vm10, %v933_v56  ;;  %v1236_v34 = vand.u32 3, %v1235_v18  ;;  %v1136_v20 = vsel %vm1134_vm7, %v9088_v58, %v1135_v37  ;;  %v1139_v62 = vsel %vm1137_vm4, %v1138_v21, %v9090_v51  ;;  %v1037_v46 = vsel %vm1026_vm15, nan, %v1036_v48  ;;  %vm10919_vm10 = vmmov %vm10918_vm5 }
 0x323   :  { %6704 = vmatprep.mubr.msk.f32.mxu1 %vm10721_vm1, %v10720_v6  ;;  %vm1133_vm14 = vcmp.lt.s32.totalorder %v1132_v16, 2  ;;  %v1340_v52 = vand.u32 3, %v1339_v23  ;;  %v1443_v27 = vadd.s32 3, %v9764_v0  ;;  %v1547_v37 = vadd.s32 3, %v9793_v26  ;;  %vm10920_vm7 = vmmov %vm10918_vm5  ;;  %v10921_v26 = vld [vmem:[#allocation98_spill] sm:$0xff] }
 0x324   :  { %v1140_v13 = vsel %vm1133_vm14, %v1136_v20, %v1139_v62  ;;  %vm1238_vm12 = vcmp.eq.s32.totalorder %v1236_v34, 0  ;;  %vm1241_vm0 = vcmp.eq.s32.totalorder %v1236_v34, 2  ;;  %vm1237_vm15 = vcmp.lt.s32.totalorder %v1236_v34, 2  ;;  %v10941_v34 = vld [vmem:[#allocation17_spill] sm:$0xff]  ;;  %v5998_v62 = vld [vmem:[%s10265_s4] sm:$0xff] }
 0x325   :  { %v1240_v58 = vsel %vm1238_vm12, %v10893_v19, %v1239_v54  ;;  %v1243_v51 = vsel %vm1241_vm0, %v1242_v60, %v9029_v41  ;;  %v1141_v59 = vsel %vm1130_vm2, nan, %v1140_v13  ;;  %vm1342_vm11 = vcmp.eq.s32.totalorder %v1340_v52, 0 }
 0x326   :  { %6705 = vmatmul.mubr.msk.f32.gmra.mrb[38].mxu1 %vm10918_vm5, %v1037_v46  ;;  %vm1345_vm6 = vcmp.eq.s32.totalorder %v1340_v52, 2  ;;  %v1244_v21 = vsel %vm1237_vm15, %v1240_v58, %v1243_v51  ;;  %v1344_v0 = vsel %vm1342_vm11, %v9328_v42, %v1343_v63  ;;  %v1444_v41 = vand.u32 3, %v1443_v27  ;;  %vm10924_vm15 = vmmov %vm10918_vm5  ;;  %v5999_v46 = vld [vmem:[%s10265_s4 + $0x8] sm:$0xff] }
 0x327   :  { %6707 = vmatprep.mubr.msk.f32.mxu1 %vm10721_vm1, %v10720_v6  ;;  %v1347_v54 = vsel %vm1345_vm6, %v1346_v36, %v9405_v45  ;;  %vm1341_vm2 = vcmp.lt.s32.totalorder %v1340_v52, 2  ;;  %v1245_v4 = vsel %vm1234_vm3, nan, %v1244_v21  ;;  %v1548_v60 = vand.u32 3, %v1547_v37  ;;  %v10922_v36 = vld [vmem:[#allocation99_spill] sm:$0xff]  ;;  %v10942_v52 = vld [vmem:[#allocation8_spill] sm:$0xff]  ;;  %v10945_v51 = vld [vmem:[#allocation13_spill] sm:$0xff] }
 0x328   :  { %v1348_v19 = vsel %vm1341_vm2, %v1344_v0, %v1347_v54  ;;  %vm1446_vm4 = vcmp.eq.s32.totalorder %v1444_v41, 0  ;;  %vm1449_vm14 = vcmp.eq.s32.totalorder %v1444_v41, 2  ;;  %v1651_v63 = vadd.s32 3, %v10921_v26  ;;  %v6000_v37 = vld [vmem:[%s10265_s4 + $0x10] sm:$0xff]  ;;  %v6001_v21 = vld [vmem:[%s10265_s4 + $0x18] sm:$0xff] }
 0x329   :  { %v1448_v42 = vsel %vm1446_vm4, %v9173_v31, %v1447_v2  ;;  %v1451_v45 = vsel %vm1449_vm14, %v1450_v29, %v9210_v49  ;;  %v1349_v44 = vsel %vm1338_vm9, nan, %v1348_v19  ;;  %vm1445_vm3 = vcmp.lt.s32.totalorder %v1444_v41, 2  ;;  %v10923_v29 = vld [vmem:[#allocation100_spill] sm:$0xff]  ;;  %v10946_v0 = vld [vmem:[#allocation26_spill] sm:$0xff] }
 0x32a   :  { %6708 = vmatmul.mubr.msk.f32.gmra.mrb[40].mxu1 %vm10919_vm10, %v1141_v59  ;;  %v1755_v25 = vadd.s32 3, %v10922_v36  ;;  %v1452_v39 = vsel %vm1445_vm3, %v1448_v42, %v1451_v45  ;;  %vm1550_vm12 = vcmp.eq.s32.totalorder %v1548_v60, 0  ;;  %vm1553_vm0 = vcmp.eq.s32.totalorder %v1548_v60, 2  ;;  %v10948_v41 = vld [vmem:[#allocation22_spill] sm:$0xff]  ;;  %v10952_v45 = vld [vmem:[#allocation27_spill] sm:$0xff] }
 0x32b   :  { %6710 = vmatprep.mubr.msk.f32.mxu1 %vm10721_vm1, %v10720_v6  ;;  %v1652_v8 = vand.u32 3, %v1651_v63  ;;  %v1552_v31 = vsel %vm1550_vm12, %v9423_v5, %v1551_v30  ;;  %v1555_v9 = vsel %vm1553_vm0, %v1554_v43, %v9745_v24  ;;  %v1453_v49 = vsel %vm1442_vm13, nan, %v1452_v39  ;;  %v10925_v30 = vld [vmem:[#allocation21_spill] sm:$0xff] }
 0x32c   :  { %vm1549_vm9 = vcmp.lt.s32.totalorder %v1548_v60, 2  ;;  %v1756_v2 = vand.u32 3, %v1755_v25  ;;  %v1859_v35 = vadd.s32 3, %v10923_v29  ;;  %v10926_v17 = vxor.u32 2147483648, %v10925_v30  ;;  %v10950_v63 = vld [vmem:[#allocation5_spill] sm:$0xff]  ;;  %v10957_v29 = vld [vmem:[#allocation36_spill] sm:$0xff] }
 0x32d   :  { %v1556_v10 = vsel %vm1549_vm9, %v1552_v31, %v1555_v9  ;;  %vm1654_vm11 = vcmp.eq.s32.totalorder %v1652_v8, 0  ;;  %vm1657_vm6 = vcmp.eq.s32.totalorder %v1652_v8, 2  ;;  %v10928_v32 = vxor.u32 2147483648, %v10927_v50  ;;  %vm10944_vm9 = vmmov %vm10918_vm5  ;;  %v6002_v31 = vld [vmem:[%s10265_s4 + $0x20] sm:$0xff]  ;;  %v6003_v9 = vld [vmem:[%s10265_s4 + $0x28] sm:$0xff] }
 0x32e   :  { %6711 = vmatmul.mubr.msk.f32.gmra.mrb[42].mxu1 %vm10920_vm7, %v1245_v4  ;;  %v1656_v5 = vsel %vm1654_vm11, %v10927_v50, %v10926_v17  ;;  %vm1653_vm13 = vcmp.lt.s32.totalorder %v1652_v8, 2  ;;  %v1557_v43 = vsel %vm1546_vm8, nan, %v1556_v10  ;;  %vm1758_vm10 = vcmp.eq.s32.totalorder %v1756_v2, 0  ;;  %vm10929_vm7 = vmmov %vm10918_vm5  ;;  %v10959_v17 = vld [vmem:[#allocation7_spill] sm:$0xff] }
 0x32f   :  { %6713 = vmatprep.mubr.msk.f32.mxu1 %vm10721_vm1, %v10720_v6  ;;  %v1659_v24 = vsel %vm1657_vm6, %v10928_v32, %v10925_v30  ;;  %vm1761_vm2 = vcmp.eq.s32.totalorder %v1756_v2, 2  ;;  %v1860_v53 = vand.u32 3, %v1859_v35  ;;  %v10931_v3 = vxor.u32 2147483648, %v10930_v22 }
 0x330   :  { %v1660_v18 = vsel %vm1653_vm13, %v1656_v5, %v1659_v24  ;;  %v10933_v40 = vxor.u32 2147483648, %v10932_v38  ;;  %v1963_v55 = vadd.s32 3, %v10934_v28  ;;  %vm1757_vm8 = vcmp.lt.s32.totalorder %v1756_v2, 2 }
 0x331   :  { %v1760_v12 = vsel %vm1758_vm10, %v10932_v38, %v10931_v3  ;;  %vm10936_vm4 = vweird.f32 %v10935_v11  ;;  %vm1862_vm14 = vcmp.eq.s32.totalorder %v1860_v53, 0  ;;  %vm1865_vm3 = vcmp.eq.s32.totalorder %v1860_v53, 2  ;;  %vm10953_vm10 = vmmov %vm10918_vm5  ;;  %v10963_v3 = vld [vmem:[#allocation34_spill] sm:$0xff] }
 0x332   :  { %6714 = vmatmul.mubr.msk.f32.gmra.mrb[44].mxu1 %vm10918_vm5, %v1349_v44  ;;  %v1763_v47 = vsel %vm1761_vm2, %v10933_v40, %v10930_v22  ;;  %v1661_v14 = vsel %vm10936_vm4, nan, %v1660_v18  ;;  %v10938_v33 = vxor.u32 2147483648, %v10937_v57  ;;  %v10940_v56 = vxor.u32 2147483648, %v10939_v1  ;;  %v6004_v18 = vld [vmem:[%s10265_s4 + $0x30] sm:$0xff]  ;;  %v6005_v22 = vld [vmem:[%s10265_s4 + $0x38] sm:$0xff] }
 0x333   :  { %6716 = vmatprep.mubr.msk.f32.mxu1 %vm10721_vm1, %v10720_v6  ;;  %v1764_v7 = vsel %vm1757_vm8, %v1760_v12, %v1763_v47  ;;  %v1964_v48 = vand.u32 3, %v1963_v55  ;;  %v2067_v20 = vadd.s32 3, %v10941_v34  ;;  %vm1861_vm12 = vcmp.lt.s32.totalorder %v1860_v53, 2  ;;  %v10965_v12 = vld [vmem:[#allocation32_spill] sm:$0xff]  ;;  %v10967_v55 = vld [vmem:[#allocation10_spill] sm:$0xff]  ;;  %v10972_v34 = vld [vmem:[#allocation45_spill] sm:$0xff] }
 0x334   :  { %v1864_v16 = vsel %vm1862_vm14, %v10939_v1, %v10938_v33  ;;  %v1867_v23 = vsel %vm1865_vm3, %v10940_v56, %v10937_v57  ;;  %vm10943_vm0 = vweird.f32 %v10942_v52  ;;  %v2171_v59 = vadd.s32 3, %v10945_v51  ;;  %vm10961_vm14 = vmmov %vm10918_vm5  ;;  %v6007_v56 = vld [vmem:[%s10265_s4 + $0x48] sm:$0xff] }
 0x335   :  { %v1765_v13 = vsel %vm10943_vm0, nan, %v1764_v7  ;;  %v1868_v27 = vsel %vm1861_vm12, %v1864_v16, %v1867_v23  ;;  %vm1969_vm11 = vcmp.eq.s32.totalorder %v1964_v48, 2  ;;  %v2068_v58 = vand.u32 3, %v2067_v20  ;;  %v6006_v16 = vld [vmem:[%s10265_s4 + $0x40] sm:$0xff]  ;;  %v10970_v23 = vld [vmem:[#allocation46_spill] sm:$0xff]  ;;  %v10974_v52 = vld [vmem:[#allocation9_spill] sm:$0xff] }
 0x336   :  { %6717 = vmatmul.mubr.msk.f32.gmra.mrb[46].mxu1 %vm10924_vm15, %v1453_v49  ;;  %vm1966_vm15 = vcmp.eq.s32.totalorder %v1964_v48, 0  ;;  %v10947_v54 = vxor.u32 2147483648, %v10946_v0  ;;  %v10949_v19 = vxor.u32 2147483648, %v10948_v41  ;;  %v6872_v26 = vpack.c.bf16 %v5999_v46, %v5998_v62  ;;  %v10955_v49 = vld [vmem:[#allocation42_spill] sm:$0xff] }
 0x337   :  { %6719 = vmatprep.mubr.msk.f32.mxu1 %vm10721_vm1, %v10720_v6  ;;  %vm10951_vm6 = vweird.f32 %v10950_v63  ;;  %vm1965_vm13 = vcmp.lt.s32.totalorder %v1964_v48, 2  ;;  %v2275_v44 = vadd.s32 3, %v10952_v45  ;;  %v6875_v36 = vpack.c.bf16 %v6001_v21, %v6000_v37  ;;  %v6008_v21 = vld [vmem:[%s10265_s4 + $0x50] sm:$0xff]  ;;  %v10982_v63 = vld [vmem:[#allocation12_spill] sm:$0xff] }
 0x338   :  { %v1968_v4 = vsel %vm1966_vm15, %v10948_v41, %v10947_v54  ;;  %v1971_v60 = vsel %vm1969_vm11, %v10949_v19, %v10946_v0  ;;  %v1869_v42 = vsel %vm10951_vm6, nan, %v1868_v27  ;;  %6873 = vmatpush3.bf16.msra.mxu0 %v6872_v26  ;;  %vm2070_vm2 = vcmp.eq.s32.totalorder %v2068_v58, 0  ;;  %v6009_v0 = vld [vmem:[%s10265_s4 + $0x58] sm:$0xff]  ;;  %v10978_v54 = vld [vmem:[#allocation44_spill] sm:$0xff] }
 0x339   :  { %v1972_v25 = vsel %vm1965_vm13, %v1968_v4, %v1971_v60  ;;  %v2172_v39 = vand.u32 3, %v2171_v59  ;;  %v10954_v8 = vmov 0.0|0.0   ;;  %v10956_v2 = vxor.u32 2147483648, %v10955_v49  ;;  %v10977_v59 = vld [vmem:[#allocation49_spill] sm:$0xff]  ;;  %v10980_v4 = vld [vmem:[#allocation43_spill] sm:$0xff] }
 0x33a   :  { %6720 = vmatmul.mubr.msk.f32.gmra.mrb[48].mxu1 %vm10929_vm7, %v1557_v43  ;;  %vm2073_vm7 = vcmp.eq.s32.totalorder %v2068_v58, 2  ;;  %6874 = vmatprep.subr.bf16.mxu0 %v10954_v8  ;;  %v10958_v10 = vxor.u32 2147483648, %v10957_v29  ;;  %vm10960_vm8 = vweird.f32 %v10959_v17  ;;  %vm2069_vm4 = vcmp.lt.s32.totalorder %v2068_v58, 2  ;;  %v10962_v43 = vld [vmem:[#allocation23_spill] sm:$0xff] }
 0x33b   :  { %6722 = vmatprep.mubr.msk.f32.mxu1 %vm10721_vm1, %v10720_v6  ;;  %v2072_v35 = vsel %vm2070_vm2, %v10957_v29, %v10956_v2  ;;  %v1973_v50 = vsel %vm10960_vm8, nan, %v1972_v25  ;;  %v2276_v5 = vand.u32 3, %v2275_v44  ;;  %v6878_v32 = vpack.c.bf16 %v6003_v9, %v6002_v31  ;;  %v10985_v25 = vld [vmem:[#allocation68_spill] sm:$0xff]  ;;  %v6011_v9 = vld [vmem:[%s10265_s4 + $0x68] sm:$0xff]  ;;  %v10990_v17 = vld [vmem:[#allocation11_spill] sm:$0xff] }
 0x33c   :  { %v2075_v30 = vsel %vm2073_vm7, %v10958_v10, %v10955_v49  ;;  %6876 = vmatpush3.bf16.msra.mxu0 %v6875_v36  ;;  %vm2174_vm3 = vcmp.eq.s32.totalorder %v2172_v39, 0  ;;  %v2379_v53 = vadd.s32 3, %v10962_v43  ;;  %v10964_v38 = vxor.u32 2147483648, %v10963_v3  ;;  %v6010_v31 = vld [vmem:[%s10265_s4 + $0x60] sm:$0xff]  ;;  %v10986_v49 = vld [vmem:[#allocation55_spill] sm:$0xff]  ;;  %v10988_v29 = vld [vmem:[#allocation53_spill] sm:$0xff] }
 0x33d   :  { %v2076_v24 = vsel %vm2069_vm4, %v2072_v35, %v2075_v30  ;;  %6877 = vmatprep.subr.bf16.mxu0 %v10954_v8  ;;  %v10966_v47 = vxor.u32 2147483648, %v10965_v12  ;;  %vm10968_vm12 = vweird.f32 %v10967_v55  ;;  %vm2173_vm0 = vcmp.lt.s32.totalorder %v2172_v39, 2 }
 0x33e   :  { %6723 = vmatmul.mubr.msk.f32.gmra.mrb[50].mxu1 %vm10918_vm5, %v1661_v14  ;;  %vm2177_vm5 = vcmp.eq.s32.totalorder %v2172_v39, 2  ;;  %v2176_v40 = vsel %vm2174_vm3, %v10965_v12, %v10964_v38  ;;  %v2077_v11 = vsel %vm10968_vm12, nan, %v2076_v24  ;;  %v10969_v14 = vld [vmem:[#allocation60_spill] sm:$0xff]  ;;  %v6881_v57 = vpack.c.bf16 %v6005_v22, %v6004_v18  ;;  %vm10984_vm3 = vmmov %vm10944_vm9  ;;  %v6013_v18 = vld [vmem:[%s10265_s4 + $0x78] sm:$0xff] }
 0x33f   :  { %6725 = vmatprep.mubr.msk.f32.mxu1 %vm10721_vm1, %v10720_v6  ;;  %v2179_v28 = vsel %vm2177_vm5, %v10966_v47, %v10963_v3  ;;  %v2483_v7 = vadd.s32 3, %v10969_v14  ;;  %vm2278_vm15 = vcmp.eq.s32.totalorder %v2276_v5, 0  ;;  %vm2281_vm11 = vcmp.eq.s32.totalorder %v2276_v5, 2  ;;  %v10995_v3 = vld [vmem:[#allocation47_spill] sm:$0xff]  ;;  %v10997_v47 = vld [vmem:[#allocation24_spill] sm:$0xff] }
 0x340   :  { %6879 = vmatpush3.bf16.msra.mxu0 %v6878_v32  ;;  %v2180_v33 = vsel %vm2173_vm0, %v2176_v40, %v2179_v28  ;;  %v2380_v1 = vand.u32 3, %v2379_v53  ;;  %v10971_v48 = vxor.u32 2147483648, %v10970_v23  ;;  %v10973_v62 = vxor.u32 2147483648, %v10972_v34  ;;  %v6012_v53 = vld [vmem:[%s10265_s4 + $0x70] sm:$0xff] }
 0x341   :  { %6880 = vmatprep.subr.bf16.mxu0 %v10954_v8  ;;  %vm10975_vm6 = vweird.f32 %v10974_v52  ;;  %vm2277_vm13 = vcmp.lt.s32.totalorder %v2276_v5, 2  ;;  %v2484_v27 = vand.u32 3, %v2483_v7  ;;  %v6884_v58 = vpack.c.bf16 %v6007_v56, %v6006_v16  ;;  %v11003_v56 = vld [vmem:[#allocation18_spill] sm:$0xff]  ;;  %v11010_v52 = vld [vmem:[#allocation35_spill] sm:$0xff] }
 0x342   :  { %6726 = vmatmul.mubr.msk.f32.gmra.mrb[52].mxu1 %vm10944_vm9, %v1765_v13  ;;  %v2280_v20 = vsel %vm2278_vm15, %v10972_v34, %v10971_v48  ;;  %v2283_v46 = vsel %vm2281_vm11, %v10973_v62, %v10970_v23  ;;  %v2181_v13 = vsel %vm10975_vm6, nan, %v2180_v33  ;;  %vm2382_vm2 = vcmp.eq.s32.totalorder %v2380_v1, 0 }
 0x343   :  { %6728 = vmatprep.mubr.msk.f32.mxu1 %vm10721_vm1, %v10720_v6  ;;  %v2284_v51 = vsel %vm2277_vm13, %v2280_v20, %v2283_v46  ;;  %vm2385_vm7 = vcmp.eq.s32.totalorder %v2380_v1, 2  ;;  %v2587_v37 = vadd.s32 3, %v10977_v59  ;;  %v10979_v41 = vxor.u32 2147483648, %v10978_v54  ;;  %v11008_v20 = vld [vmem:[#allocation61_spill] sm:$0xff] }
 0x344   :  { %6882 = vmatpush3.bf16.msra.mxu0 %v6881_v57  ;;  %v10981_v60 = vxor.u32 2147483648, %v10980_v4  ;;  %vm10983_vm8 = vweird.f32 %v10982_v63  ;;  %vm2381_vm4 = vcmp.lt.s32.totalorder %v2380_v1, 2  ;;  %v6887_v45 = vpack.c.bf16 %v6009_v0, %v6008_v21  ;;  %v11001_v57 = vld [vmem:[#allocation66_spill] sm:$0xff] }
 0x345   :  { %6883 = vmatprep.subr.bf16.mxu0 %v10954_v8  ;;  %v2384_v19 = vsel %vm2382_vm2, %v10980_v4, %v10979_v41  ;;  %vm2489_vm5 = vcmp.eq.s32.totalorder %v2484_v27, 2  ;;  %v2588_v36 = vand.u32 3, %v2587_v37  ;;  %v2691_v39 = vadd.s32 3, %v10985_v25 }
 0x346   :  { %6729 = vmatmul.mubr.msk.f32.gmra.mrb[54].mxu1 %vm10953_vm10, %v1869_v42  ;;  %vm10976_vm10 = vmmov %vm10944_vm9  ;;  %v2387_v26 = vsel %vm2385_vm7, %v10981_v60, %v10978_v54  ;;  %v2285_v42 = vsel %vm10983_vm8, nan, %v2284_v51  ;;  %v10987_v2 = vxor.u32 2147483648, %v10986_v49  ;;  %v10989_v10 = vxor.u32 2147483648, %v10988_v29 }
 0x347   :  { %6731 = vmatprep.mubr.msk.f32.mxu1 %vm10721_vm1, %v10720_v6  ;;  %v2388_v44 = vsel %vm2381_vm4, %v2384_v19, %v2387_v26  ;;  %vm10991_vm12 = vweird.f32 %v10990_v17  ;;  %vm2485_vm0 = vcmp.lt.s32.totalorder %v2484_v27, 2  ;;  %v2795_v5 = vadd.s32 3, %v9564_v15  ;;  %v10993_v15 = vld [vmem:[#allocation51_spill] sm:$0xff] }
 0x348   :  { %6885 = vmatpush3.bf16.msra.mxu0 %v6884_v58  ;;  %v2491_v30 = vsel %vm2489_vm5, %v10989_v10, %v10986_v49  ;;  %v6890_v32 = vpack.c.bf16 %v6011_v9, %v6010_v31  ;;  %vm2590_vm15 = vcmp.eq.s32.totalorder %v2588_v36, 0  ;;  %vm2593_vm11 = vcmp.eq.s32.totalorder %v2588_v36, 2  ;;  %v11012_v58 = vld [vmem:[#allocation28_spill] sm:$0xff] }
 0x349   :  { %6886 = vmatprep.subr.bf16.mxu0 %v10954_v8  ;;  %v2692_v43 = vand.u32 3, %v2691_v39  ;;  %v10994_v22 = vxor.u32 2147483648, %v10993_v15  ;;  %v10996_v12 = vxor.u32 2147483648, %v10995_v3  ;;  %vm10998_vm6 = vweird.f32 %v10997_v47 }
 0x34a   :  { %6732 = vmatmul.mubr.msk.f32.gmra.mrb[56].mxu1 %vm10961_vm14, %v1973_v50  ;;  %vm2486_vm14 = vcmp.eq.s32.totalorder %v2484_v27, 0  ;;  %v2389_v50 = vsel %vm10991_vm12, nan, %v2388_v44  ;;  %vm2589_vm13 = vcmp.lt.s32.totalorder %v2588_v36, 2  ;;  %v6893_v55 = vpack.c.bf16 %v6013_v18, %v6012_v53 }
 0x34b   :  { %6734 = vmatprep.mubr.msk.f32.mxu1 %vm10721_vm1, %v10720_v6  ;;  %v2488_v35 = vsel %vm2486_vm14, %v10988_v29, %v10987_v2  ;;  %v2592_v38 = vsel %vm2590_vm15, %v10995_v3, %v10994_v22  ;;  %v2595_v40 = vsel %vm2593_vm11, %v10996_v12, %v10993_v15  ;;  %vm2694_vm2 = vcmp.eq.s32.totalorder %v2692_v43, 0  ;;  %vm11005_vm14 = vmmov %vm10984_vm3 }
 0x34c   :  { %6888 = vmatpush3.bf16.msra.mxu0 %v6887_v45  ;;  %v2492_v24 = vsel %vm2485_vm0, %v2488_v35, %v2491_v30  ;;  %vm2697_vm7 = vcmp.eq.s32.totalorder %v2692_v43, 2  ;;  %v2796_v14 = vand.u32 3, %v2795_v5  ;;  %v11000_v7 = vxor.u32 2147483648, %v10833_v61 }
 0x34d   :  { %6889 = vmatprep.subr.bf16.mxu0 %v10954_v8  ;;  %v2493_v28 = vsel %vm10998_vm6, nan, %v2492_v24  ;;  %v11002_v1 = vxor.u32 2147483648, %v11001_v57  ;;  %vm11004_vm8 = vweird.f32 %v11003_v56  ;;  %vm2693_vm4 = vcmp.lt.s32.totalorder %v2692_v43, 2 }
 0x34e   :  { %6735 = vmatmul.mubr.msk.f32.gmra.mrb[58].mxu1 %vm10944_vm9, %v2077_v11  ;;  %vm10992_vm9 = vmmov %vm10984_vm3  ;;  %v2596_v11 = vsel %vm2589_vm13, %v2592_v38, %v2595_v40  ;;  %v2696_v33 = vsel %vm2694_vm2, %v11001_v57, %v11000_v7  ;;  %vm2801_vm5 = vcmp.eq.s32.totalorder %v2796_v14, 2  ;;  %vm11011_vm12 = vweird.f32 %v11010_v52  ;;  %v10132_v40 = vld [vmem:[%s10264_s3] ss:$0 sm:$0xff] }
 0x34f   :  { %6737 = vmatprep.mubr.msk.f32.mxu1 %vm10721_vm1, %v10720_v6  ;;  %v2699_v16 = vsel %vm2697_vm7, %v11002_v1, %v10833_v61  ;;  %v2597_v23 = vsel %vm11004_vm8, nan, %v2596_v11  ;;  %v11009_v61 = vxor.u32 2147483648, %v11008_v20  ;;  %vm2797_vm0 = vcmp.lt.s32.totalorder %v2796_v14, 2  ;;  %vm11014_vm11 = vmmov %vm10992_vm9 }
 0x350   :  { %6891 = vmatpush3.bf16.msra.mxu0 %v6890_v32  ;;  %v2700_v48 = vsel %vm2693_vm4, %v2696_v33, %v2699_v16  ;;  %vm11013_vm15 = vweird.f32 %v11012_v58 }
 0x351   :  { %6892 = vmatprep.subr.bf16.mxu0 %v10954_v8  ;;  %v11006_v8 = vld [vmem:[#allocation64_spill] sm:$0xff] }
 0x352   :  { %6738 = vmatmul.mubr.msk.f32.gmra.mrb[60].mxu1 %vm10976_vm10, %v2181_v13  ;;  %vm10999_vm10 = vmmov %vm10984_vm3  ;;  %v11007_v34 = vxor.u32 2147483648, %v11006_v8  ;;  %v2803_v46 = vsel %vm2801_vm5, %v11009_v61, %v11006_v8  ;;  %v2701_v13 = vsel %vm11011_vm12, nan, %v2700_v48 }
 0x353   :  { %6740 = vmatprep.mubr.msk.f32.mxu1 %vm10721_vm1, %v10720_v6 }
 0x354   :  { %6894 = vmatpush3.bf16.msra.mxu0 %v6893_v55 }
 0x356   :  { %6741 = vmatmul.mubr.msk.f32.gmra.mrb[62].mxu1 %vm10984_vm3, %v2285_v42  ;;  %vm2798_vm3 = vcmp.eq.s32.totalorder %v2796_v14, 0 }
 0x357   :  { %6743 = vmatprep.mubr.msk.f32.mxu1 %vm10721_vm1, %v10720_v6  ;;  %v2800_v62 = vsel %vm2798_vm3, %v11008_v20, %v11007_v34 }
 0x358   :  { %v2804_v27 = vsel %vm2797_vm0, %v2800_v62, %v2803_v46 }
 0x359   :  { %v2805_v51 = vsel %vm11013_vm15, nan, %v2804_v27 }
 0x35a   :  { %6744 = vmatmul.mubr.msk.f32.gmra.mrb[64].mxu1 %vm10992_vm9, %v2389_v50 }
 0x35b   :  { %6746 = vmatprep.mubr.msk.f32.mxu1 %vm10721_vm1, %v10720_v6 }
 0x35e   :  { %6747 = vmatmul.mubr.msk.f32.gmra.mrb[66].mxu1 %vm10999_vm10, %v2493_v28 }
 0x35f   :  { %6749 = vmatprep.mubr.msk.f32.mxu1 %vm10721_vm1, %v10720_v6 }
 0x362   :  { %6750 = vmatmul.mubr.msk.f32.gmra.mrb[68].mxu1 %vm11005_vm14, %v2597_v23 }
 0x363   :  { %6752 = vmatprep.mubr.msk.f32.mxu1 %vm10721_vm1, %v10720_v6 }
 0x366   :  { %6753 = vmatmul.mubr.msk.f32.gmra.mrb[70].mxu1 %vm10992_vm9, %v2701_v13 }
 0x367   :  { %6755 = vmatprep.mubr.msk.f32.mxu1 %vm10721_vm1, %v10720_v6 }
 0x36a   :  { %6756 = vmatmul.mubr.msk.f32.gmra.mrb[72].mxu1 %vm11014_vm11, %v2805_v51 }
 0x373   :  { %v10105_v59 = vpop.f32.mrb[0].mxu1 }
 0x374   :  { %v6645_v37 = vpop.f32.mrb[1].mxu1 }
 0x37c   :  { %v10107_v21 = vpop.f32.mrb[2].mxu1 }
 0x37d   :  { %v6648_v0 = vpop.f32.mrb[3].mxu1 }
 0x382   :  { %v10109_v54 = vpop.f32.mrb[4].mxu1 }
 0x383   :  { %v6651_v41 = vpop.f32.mrb[5].mxu1 }
 0x386   :  { %v10111_v4 = vpop.f32.mrb[6].mxu1 }
 0x387   :  { %v6654_v19 = vpop.f32.mrb[7].mxu1 }
 0x38d   :  { %v10113_v60 = vpop.f32.mrb[8].mxu1 }
 0x38e   :  { %v6657_v26 = vpop.f32.mrb[9].mxu1 }
 0x391   :  { %v10115_v63 = vpop.f32.mrb[10].mxu1 }
 0x392   :  { %v6660_v42 = vpop.f32.mrb[11].mxu1 }
 0x399   :  { %v5527_v45 = vpop.f32.mrb[0].mxu0 }
 0x39a   :  { %v6606_v44 = vpop.f32.mrb[1].mxu0 }
 0x39f   :  { %v10117_v36 = vpop.f32.mrb[12].mxu1 }
 0x3a0   :  { %v6663_v25 = vpop.f32.mrb[13].mxu1 }
 0x3a2   :  { %v5532_v39 = vpop.f32.mrb[2].mxu0 }
 0x3a3   :  { %v6609_v31 = vpop.f32.mrb[3].mxu0 }
 0x3a8   :  { %v10119_v9 = vpop.f32.mrb[14].mxu1  ;;  %v5537_v2 = vpop.f32.mrb[4].mxu0 }
 0x3a9   :  { %v6666_v49 = vpop.f32.mrb[15].mxu1  ;;  %v6612_v29 = vpop.f32.mrb[5].mxu0 }
 0x3ae   :  { %v10121_v35 = vpop.f32.mrb[16].mxu1 }
 0x3af   :  { %v6669_v10 = vpop.f32.mrb[17].mxu1 }
 0x3b3   :  { %v5542_v30 = vpop.f32.mrb[6].mxu0 }
 0x3b4   :  { %v6615_v17 = vpop.f32.mrb[7].mxu0 }
 0x3b7   :  { %v10123_v50 = vpop.f32.mrb[18].mxu1 }
 0x3b8   :  { %v6672_v5 = vpop.f32.mrb[19].mxu1 }
 0x3bb   :  { %v5547_v32 = vpop.f32.mrb[8].mxu0 }
 0x3bc   :  { %v6618_v24 = vpop.f32.mrb[9].mxu0 }
 0x3c0   :  { %v10125_v43 = vpop.f32.mrb[20].mxu1 }
 0x3c1   :  { %v6675_v53 = vpop.f32.mrb[21].mxu1 }
 0x3c5   :  { %v5552_v18 = vpop.f32.mrb[10].mxu0 }
 0x3c6   :  { %v6621_v15 = vpop.f32.mrb[11].mxu0 }
 0x3c8   :  { %v10127_v22 = vpop.f32.mrb[22].mxu1 }
 0x3c9   :  { %v6678_v3 = vpop.f32.mrb[23].mxu1 }
 0x3cb   :  { %v5557_v38 = vpop.f32.mrb[12].mxu0 }
 0x3cc   :  { %v5792_v12 = vpop.f32.mrb[24].mxu1  ;;  %v6624_v47 = vpop.f32.mrb[13].mxu0 }
 0x3cd   :  { %v5793_v28 = vadd.f32 %v5792_v12, %v5527_v45  ;;  %v6685_v55 = vpop.f32.mrb[25].mxu1 }
 0x3cf   :  { %v5923_v11 = vadd.f32 %v10132_v40, %v5793_v28 }
 0x3d1   :  { %v5948_v7 = vmul.f32 0.2, %v5923_v11 }
 0x3d2   :  { %v5562_v14 = vpop.f32.mrb[14].mxu0 }
 0x3d3   :  { %v6627_v57 = vpop.f32.mrb[15].mxu0  ;;  %v5973_v1 = vmax.f32 %v5923_v11, %v5948_v7 }
 0x3d5   :  { %v5797_v33 = vpop.f32.mrb[26].mxu1  ;;  %6791 = vmatmul.mubr.f32.vlgmr.msra.gmra.mrb[26].mxu0 %v5973_v1 }
 0x3d6   :  { %v5798_v16 = vadd.f32 %v5797_v33, %v5532_v39  ;;  %v6688_v56 = vpop.f32.mrb[27].mxu1  ;;  %v5567_v23 = vpop.f32.mrb[16].mxu0  ;;  %6793 = vmatprep.mubr.msk.f32.mxu0 %vm10721_vm1, %v10720_v6 }
 0x3d7   :  { %v6630_v8 = vpop.f32.mrb[17].mxu0 }
 0x3d8   :  { %v5924_v48 = vadd.f32 %v10132_v40, %v5798_v16 }
 0x3da   :  { %v5802_v34 = vpop.f32.mrb[28].mxu1  ;;  %v5949_v20 = vmul.f32 0.2, %v5924_v48 }
 0x3db   :  { %v5803_v62 = vadd.f32 %v5802_v34, %v5537_v2  ;;  %v6691_v61 = vpop.f32.mrb[29].mxu1 }
 0x3dc   :  { %v5974_v52 = vmax.f32 %v5924_v48, %v5949_v20 }
 0x3dd   :  { %v5925_v46 = vadd.f32 %v10132_v40, %v5803_v62 }
 0x3de   :  { %v5572_v27 = vpop.f32.mrb[18].mxu0  ;;  %6794 = vmatmul.mubr.f32.gmra.mrb[28].mxu0 %v5974_v52 }
 0x3df   :  { %v5950_v13 = vmul.f32 0.2, %v5925_v46  ;;  %v6633_v58 = vpop.f32.mrb[19].mxu0  ;;  %6796 = vmatprep.mubr.msk.f32.mxu0 %vm10721_vm1, %v10720_v6 }
 0x3e1   :  { %v5975_v37 = vmax.f32 %v5925_v46, %v5950_v13 }
 0x3e2   :  { %v5807_v51 = vpop.f32.mrb[30].mxu1 }
 0x3e3   :  { %v5808_v0 = vadd.f32 %v5807_v51, %v5542_v30  ;;  %v6694_v41 = vpop.f32.mrb[31].mxu1  ;;  %6797 = vmatmul.mubr.f32.gmra.mrb[30].mxu0 %v5975_v37 }
 0x3e4   :  { %6799 = vmatprep.mubr.msk.f32.mxu0 %vm10721_vm1, %v10720_v6 }
 0x3e5   :  { %v5926_v19 = vadd.f32 %v10132_v40, %v5808_v0  ;;  %v5577_v26 = vpop.f32.mrb[20].mxu0 }
 0x3e6   :  { %v5812_v42 = vpop.f32.mrb[32].mxu1  ;;  %v6636_v25 = vpop.f32.mrb[21].mxu0 }
 0x3e7   :  { %v5951_v45 = vmul.f32 0.2, %v5926_v19  ;;  %v5813_v44 = vadd.f32 %v5812_v42, %v5547_v32  ;;  %v6697_v39 = vpop.f32.mrb[33].mxu1 }
 0x3e9   :  { %v5927_v31 = vadd.f32 %v10132_v40, %v5813_v44  ;;  %v5976_v49 = vmax.f32 %v5926_v19, %v5951_v45 }
 0x3eb   :  { %v5952_v2 = vmul.f32 0.2, %v5927_v31  ;;  %v5582_v29 = vpop.f32.mrb[22].mxu0  ;;  %6800 = vmatmul.mubr.f32.gmra.mrb[32].mxu0 %v5976_v49 }
 0x3ec   :  { %v6639_v10 = vpop.f32.mrb[23].mxu0  ;;  %6802 = vmatprep.mubr.msk.f32.mxu0 %vm10721_vm1, %v10720_v6 }
 0x3ed   :  { %v5977_v30 = vmax.f32 %v5927_v31, %v5952_v2 }
 0x3ef   :  { %6803 = vmatmul.mubr.f32.gmra.mrb[34].mxu0 %v5977_v30 }
 0x3f0   :  { %v5817_v17 = vpop.f32.mrb[34].mxu1  ;;  %6805 = vmatprep.mubr.msk.f32.mxu0 %vm10721_vm1, %v10720_v6 }
 0x3f1   :  { %v5818_v5 = vadd.f32 %v5817_v17, %v5552_v18  ;;  %v6700_v24 = vpop.f32.mrb[35].mxu1  ;;  %v5587_v53 = vpop.f32.mrb[24].mxu0 }
 0x3f2   :  { %v6642_v15 = vpop.f32.mrb[25].mxu0 }
 0x3f3   :  { %v5928_v32 = vadd.f32 %v10132_v40, %v5818_v5 }
 0x3f5   :  { %v5953_v3 = vmul.f32 0.2, %v5928_v32  ;;  %v5822_v12 = vpop.f32.mrb[36].mxu1 }
 0x3f6   :  { %v5823_v47 = vadd.f32 %v5822_v12, %v5557_v38  ;;  %v6703_v28 = vpop.f32.mrb[37].mxu1 }
 0x3f7   :  { %v5978_v55 = vmax.f32 %v5928_v32, %v5953_v3 }
 0x3f8   :  { %v5929_v11 = vadd.f32 %v10132_v40, %v5823_v47 }
 0x3f9   :  { %v5827_v7 = vpop.f32.mrb[38].mxu1  ;;  %6806 = vmatmul.mubr.f32.gmra.mrb[36].mxu0 %v5978_v55 }
 0x3fa   :  { %v5954_v57 = vmul.f32 0.2, %v5929_v11  ;;  %v5828_v18 = vadd.f32 %v5827_v7, %v5562_v14  ;;  %v6706_v33 = vpop.f32.mrb[39].mxu1  ;;  %6808 = vmatprep.mubr.msk.f32.mxu0 %vm10721_vm1, %v10720_v6 }
 0x3fc   :  { %v5930_v1 = vadd.f32 %v10132_v40, %v5828_v18  ;;  %v5979_v16 = vmax.f32 %v5929_v11, %v5954_v57 }
 0x3fd   :  { %v5832_v56 = vpop.f32.mrb[40].mxu1 }
 0x3fe   :  { %v5955_v48 = vmul.f32 0.2, %v5930_v1  ;;  %v5833_v8 = vadd.f32 %v5832_v56, %v5567_v23  ;;  %v6709_v34 = vpop.f32.mrb[41].mxu1  ;;  %6809 = vmatmul.mubr.f32.gmra.mrb[38].mxu0 %v5979_v16 }
 0x3ff   :  { %6811 = vmatprep.mubr.msk.f32.mxu0 %vm10721_vm1, %v10720_v6 }
 0x400   :  { %v5931_v38 = vadd.f32 %v10132_v40, %v5833_v8  ;;  %v5980_v20 = vmax.f32 %v5930_v1, %v5955_v48 }
 0x401   :  { %v5837_v62 = vpop.f32.mrb[42].mxu1 }
 0x402   :  { %v5956_v14 = vmul.f32 0.2, %v5931_v38  ;;  %v5838_v61 = vadd.f32 %v5837_v62, %v5572_v27  ;;  %v6712_v46 = vpop.f32.mrb[43].mxu1  ;;  %6812 = vmatmul.mubr.f32.gmra.mrb[40].mxu0 %v5980_v20 }
 0x403   :  { %6814 = vmatprep.mubr.msk.f32.mxu0 %vm10721_vm1, %v10720_v6 }
 0x404   :  { %v5932_v52 = vadd.f32 %v10132_v40, %v5838_v61  ;;  %v5981_v13 = vmax.f32 %v5931_v38, %v5956_v14 }
 0x405   :  { %v5842_v23 = vpop.f32.mrb[44].mxu1 }
 0x406   :  { %v5957_v58 = vmul.f32 0.2, %v5932_v52  ;;  %v5843_v51 = vadd.f32 %v5842_v23, %v5577_v26  ;;  %v6715_v37 = vpop.f32.mrb[45].mxu1  ;;  %6815 = vmatmul.mubr.f32.gmra.mrb[42].mxu0 %v5981_v13 }
 0x407   :  { %6817 = vmatprep.mubr.msk.f32.mxu0 %vm10721_vm1, %v10720_v6 }
 0x408   :  { %v5933_v0 = vadd.f32 %v10132_v40, %v5843_v51  ;;  %v5982_v41 = vmax.f32 %v5932_v52, %v5957_v58 }
 0x409   :  { %v5847_v27 = vpop.f32.mrb[46].mxu1 }
 0x40a   :  { %v5958_v19 = vmul.f32 0.2, %v5933_v0  ;;  %v5848_v42 = vadd.f32 %v5847_v27, %v5582_v29  ;;  %v6718_v45 = vpop.f32.mrb[47].mxu1  ;;  %6818 = vmatmul.mubr.f32.gmra.mrb[44].mxu0 %v5982_v41 }
 0x40b   :  { %6820 = vmatprep.mubr.msk.f32.mxu0 %vm10721_vm1, %v10720_v6 }
 0x40c   :  { %v5934_v44 = vadd.f32 %v10132_v40, %v5848_v42  ;;  %v5983_v25 = vmax.f32 %v5933_v0, %v5958_v19 }
 0x40d   :  { %v5852_v26 = vpop.f32.mrb[48].mxu1 }
 0x40e   :  { %v5959_v39 = vmul.f32 0.2, %v5934_v44  ;;  %v5853_v31 = vadd.f32 %v5852_v26, %v5587_v53  ;;  %v6721_v49 = vpop.f32.mrb[49].mxu1  ;;  %6821 = vmatmul.mubr.f32.gmra.mrb[46].mxu0 %v5983_v25 }
 0x40f   :  { %6823 = vmatprep.mubr.msk.f32.mxu0 %vm10721_vm1, %v10720_v6 }
 0x410   :  { %v5935_v2 = vadd.f32 %v10132_v40, %v5853_v31  ;;  %v5984_v10 = vmax.f32 %v5934_v44, %v5959_v39 }
 0x411   :  { %v5857_v29 = vpop.f32.mrb[50].mxu1 }
 0x412   :  { %v5960_v30 = vmul.f32 0.2, %v5935_v2  ;;  %v5858_v17 = vadd.f32 %v5857_v29, %v10105_v59  ;;  %v6724_v5 = vpop.f32.mrb[51].mxu1  ;;  %6824 = vmatmul.mubr.f32.gmra.mrb[48].mxu0 %v5984_v10 }
 0x413   :  { %6826 = vmatprep.mubr.msk.f32.mxu0 %vm10721_vm1, %v10720_v6 }
 0x414   :  { %v5936_v24 = vadd.f32 %v10132_v40, %v5858_v17  ;;  %v5985_v32 = vmax.f32 %v5935_v2, %v5960_v30 }
 0x415   :  { %v5862_v53 = vpop.f32.mrb[52].mxu1 }
 0x416   :  { %v5961_v15 = vmul.f32 0.2, %v5936_v24  ;;  %v5863_v3 = vadd.f32 %v5862_v53, %v10107_v21  ;;  %v6727_v12 = vpop.f32.mrb[53].mxu1  ;;  %6827 = vmatmul.mubr.f32.gmra.mrb[50].mxu0 %v5985_v32 }
 0x417   :  { %6829 = vmatprep.mubr.msk.f32.mxu0 %vm10721_vm1, %v10720_v6 }
 0x418   :  { %v5937_v47 = vadd.f32 %v10132_v40, %v5863_v3  ;;  %v5986_v59 = vmax.f32 %v5936_v24, %v5961_v15 }
 0x419   :  { %v5867_v28 = vpop.f32.mrb[54].mxu1 }
 0x41a   :  { %v5962_v55 = vmul.f32 0.2, %v5937_v47  ;;  %v5868_v11 = vadd.f32 %v5867_v28, %v10109_v54  ;;  %v6730_v7 = vpop.f32.mrb[55].mxu1  ;;  %6830 = vmatmul.mubr.f32.gmra.mrb[52].mxu0 %v5986_v59 }
 0x41b   :  { %6832 = vmatprep.mubr.msk.f32.mxu0 %vm10721_vm1, %v10720_v6 }
 0x41c   :  { %v5938_v57 = vadd.f32 %v10132_v40, %v5868_v11  ;;  %v5987_v21 = vmax.f32 %v5937_v47, %v5962_v55  ;;  %v10222_v55 = vld [vmem:[%s10266_s5] ss:$0 sm:$0xff]  ;;  %s7149_s5 = smov [#allocation2]  }
 0x41d   :  { %v5872_v18 = vpop.f32.mrb[56].mxu1  ;;  %s6241_s19 = sshll.u32 %s7149_s5, 4  ;;  %s6242_s19 = int_to_ptr.vmem [resolvable:$true] %s6241_s19 }
 0x41e   :  { %v5963_v33 = vmul.f32 0.2, %v5938_v57  ;;  %v5873_v1 = vadd.f32 %v5872_v18, %v10111_v4  ;;  %v6733_v16 = vpop.f32.mrb[57].mxu1  ;;  %6833 = vmatmul.mubr.f32.gmra.mrb[54].mxu0 %v5987_v21  ;;  %s7115_s20 = scalar_lea.vmem %s6242_s19, 3200  ;;  %p7120_p1 = scmp.lt.s32.totalorder %s6242_s19, %s6242_s19 }
 0x41f   :  { %6835 = vmatprep.mubr.msk.f32.mxu0 %vm10721_vm1, %v10720_v6  ;;  %p7116_p0 = scmp.ne.s32.totalorder %s6242_s19, %s7115_s20  ;;  %p7121_p2 = scmp.lt.s32.totalorder %s7115_s20, %s7115_s20 }
 0x420   :  { %v5939_v56 = vadd.f32 %v10132_v40, %v5873_v1  ;;  %v5988_v54 = vmax.f32 %v5938_v57, %v5963_v33 }
 0x421   :  { %v5877_v48 = vpop.f32.mrb[58].mxu1  ;;  %p7122_p3 = por %p7121_p2, %p7120_p1 }
 0x422   :  { %v5964_v8 = vmul.f32 0.2, %v5939_v56  ;;  %v5878_v34 = vadd.f32 %v5877_v48, %v10113_v60  ;;  %v6736_v38 = vpop.f32.mrb[59].mxu1  ;;  %6836 = vmatmul.mubr.f32.gmra.mrb[56].mxu0 %v5988_v54 }
 0x423   :  { %6838 = vmatprep.mubr.msk.f32.mxu0 %vm10721_vm1, %v10720_v6  ;;  %p7123_p4 = pnand %p7122_p3, %p7116_p0 }
 0x424   :  { %v5940_v20 = vadd.f32 %v10132_v40, %v5878_v34  ;;  %v5989_v4 = vmax.f32 %v5939_v56, %v5964_v8 }
 0x425   :  { %v5882_v62 = vpop.f32.mrb[60].mxu1 }
 0x426   :  { %v5965_v14 = vmul.f32 0.2, %v5940_v20  ;;  %v5883_v61 = vadd.f32 %v5882_v62, %v10115_v63  ;;  %v6739_v46 = vpop.f32.mrb[61].mxu1  ;;  %6839 = vmatmul.mubr.f32.gmra.mrb[58].mxu0 %v5989_v4 }
 0x427   :  { %6841 = vmatprep.mubr.msk.f32.mxu0 %vm10721_vm1, %v10720_v6 }
 0x428   :  { %v5941_v52 = vadd.f32 %v10132_v40, %v5883_v61  ;;  %v5990_v60 = vmax.f32 %v5940_v20, %v5965_v14 }
 0x429   :  { %v5887_v13 = vpop.f32.mrb[62].mxu1 }
 0x42a   :  { %v5966_v23 = vmul.f32 0.2, %v5941_v52  ;;  %v5888_v58 = vadd.f32 %v5887_v13, %v10117_v36  ;;  %v6742_v51 = vpop.f32.mrb[63].mxu1  ;;  %6842 = vmatmul.mubr.f32.gmra.mrb[60].mxu0 %v5990_v60 }
 0x42b   :  { %6844 = vmatprep.mubr.msk.f32.mxu0 %vm10721_vm1, %v10720_v6 }
 0x42c   :  { %v5942_v37 = vadd.f32 %v10132_v40, %v5888_v58  ;;  %v5991_v63 = vmax.f32 %v5941_v52, %v5966_v23 }
 0x42d   :  { %v5892_v0 = vpop.f32.mrb[64].mxu1 }
 0x42e   :  { %v5967_v41 = vmul.f32 0.2, %v5942_v37  ;;  %v5893_v27 = vadd.f32 %v5892_v0, %v10119_v9  ;;  %v6745_v19 = vpop.f32.mrb[65].mxu1  ;;  %6845 = vmatmul.mubr.f32.gmra.mrb[62].mxu0 %v5991_v63 }
 0x42f   :  { %6847 = vmatprep.mubr.msk.f32.mxu0 %vm10721_vm1, %v10720_v6 }
 0x430   :  { %v5943_v42 = vadd.f32 %v10132_v40, %v5893_v27  ;;  %v5992_v36 = vmax.f32 %v5942_v37, %v5967_v41 }
 0x431   :  { %v5897_v45 = vpop.f32.mrb[66].mxu1 }
 0x432   :  { %v5968_v44 = vmul.f32 0.2, %v5943_v42  ;;  %v5898_v25 = vadd.f32 %v5897_v45, %v10121_v35  ;;  %v6748_v26 = vpop.f32.mrb[67].mxu1  ;;  %6848 = vmatmul.mubr.f32.gmra.mrb[64].mxu0 %v5992_v36 }
 0x433   :  { %6850 = vmatprep.mubr.msk.f32.mxu0 %vm10721_vm1, %v10720_v6 }
 0x434   :  { %v5944_v39 = vadd.f32 %v10132_v40, %v5898_v25  ;;  %v5993_v9 = vmax.f32 %v5943_v42, %v5968_v44 }
 0x435   :  { %v5902_v31 = vpop.f32.mrb[68].mxu1 }
 0x436   :  { %v5969_v49 = vmul.f32 0.2, %v5944_v39  ;;  %v5903_v2 = vadd.f32 %v5902_v31, %v10123_v50  ;;  %v6751_v10 = vpop.f32.mrb[69].mxu1  ;;  %6851 = vmatmul.mubr.f32.gmra.mrb[66].mxu0 %v5993_v9 }
 0x437   :  { %6853 = vmatprep.mubr.msk.f32.mxu0 %vm10721_vm1, %v10720_v6 }
 0x438   :  { %v5945_v29 = vadd.f32 %v10132_v40, %v5903_v2  ;;  %v5994_v35 = vmax.f32 %v5944_v39, %v5969_v49 }
 0x439   :  { %v5907_v30 = vpop.f32.mrb[70].mxu1 }
 0x43a   :  { %v5970_v17 = vmul.f32 0.2, %v5945_v29  ;;  %v5908_v5 = vadd.f32 %v5907_v30, %v10125_v43  ;;  %v6754_v24 = vpop.f32.mrb[71].mxu1  ;;  %6854 = vmatmul.mubr.f32.gmra.mrb[68].mxu0 %v5994_v35 }
 0x43b   :  { %6856 = vmatprep.mubr.msk.f32.mxu0 %vm10721_vm1, %v10720_v6 }
 0x43c   :  { %v5946_v32 = vadd.f32 %v10132_v40, %v5908_v5  ;;  %v5995_v50 = vmax.f32 %v5945_v29, %v5970_v17 }
 0x43d   :  { %v5912_v53 = vpop.f32.mrb[72].mxu1 }
 0x43e   :  { %v5971_v15 = vmul.f32 0.2, %v5946_v32  ;;  %v5913_v3 = vadd.f32 %v5912_v53, %v10127_v22  ;;  %v6757_v12 = vpop.f32.mrb[73].mxu1  ;;  %6857 = vmatmul.mubr.f32.gmra.mrb[70].mxu0 %v5995_v50 }
 0x43f   :  { %6859 = vmatprep.mubr.msk.f32.mxu0 %vm10721_vm1, %v10720_v6 }
 0x440   :  { %v5947_v47 = vadd.f32 %v10132_v40, %v5913_v3  ;;  %v5996_v43 = vmax.f32 %v5946_v32, %v5971_v15 }
 0x442   :  { %v5972_v59 = vmul.f32 0.2, %v5947_v47  ;;  %6860 = vmatmul.mubr.f32.gmra.mrb[72].mxu0 %v5996_v43 }
 0x443   :  { %6862 = vmatprep.mubr.msk.f32.mxu0 %vm10721_vm1, %v10720_v6 }
 0x444   :  { %v5997_v28 = vmax.f32 %v5947_v47, %v5972_v59 }
 0x446   :  { %6863 = vmatmul.mubr.f32.gmra.mrb[74].mxu0 %v5997_v28 }
 0x4a8   :  { %v6087_v22 = vpop.f32.mrb[26].mxu0 }
 0x4a9   :  { %v6088_v11 = vadd.f32 %v10222_v55, %v6087_v22  ;;  %v6792_v7 = vpop.f32.mrb[27].mxu0 }
 0x4ab   :  { %6211 = vst [vmem:[#allocation2] sm:$0xff] %v6088_v11 }
 0x4b1   :  { %v6092_v57 = vpop.f32.mrb[28].mxu0 }
 0x4b2   :  { %v6093_v40 = vadd.f32 %v10222_v55, %v6092_v57  ;;  %v6795_v21 = vpop.f32.mrb[29].mxu0 }
 0x4b4   :  { %6212 = vst [vmem:[#allocation2 + $0x8] sm:$0xff] %v6093_v40 }
 0x4b6   :  { %v6097_v18 = vpop.f32.mrb[30].mxu0 }
 0x4b7   :  { %v6098_v6 = vadd.f32 %v10222_v55, %v6097_v18  ;;  %v6798_v33 = vpop.f32.mrb[31].mxu0 }
 0x4b9   :  { %6213 = vst [vmem:[#allocation2 + $0x10] sm:$0xff] %v6098_v6 }
 0x4be   :  { %v6102_v1 = vpop.f32.mrb[32].mxu0 }
 0x4bf   :  { %v6103_v16 = vadd.f32 %v10222_v55, %v6102_v1  ;;  %v6801_v56 = vpop.f32.mrb[33].mxu0 }
 0x4c1   :  { %6214 = vst [vmem:[#allocation2 + $0x18] sm:$0xff] %v6103_v16 }
 0x4c2   :  { %v6107_v54 = vpop.f32.mrb[34].mxu0 }
 0x4c3   :  { %v6108_v48 = vadd.f32 %v10222_v55, %v6107_v54  ;;  %v6804_v8 = vpop.f32.mrb[35].mxu0 }
 0x4c5   :  { %6215 = vst [vmem:[#allocation2 + $0x20] sm:$0xff] %v6108_v48 }
 0x4cc   :  { %v6112_v34 = vpop.f32.mrb[36].mxu0 }
 0x4cd   :  { %v6113_v38 = vadd.f32 %v10222_v55, %v6112_v34  ;;  %v6807_v20 = vpop.f32.mrb[37].mxu0 }
 0x4cf   :  { %6216 = vst [vmem:[#allocation2 + $0x28] sm:$0xff] %v6113_v38 }
 0x4d1   :  { %v6117_v4 = vpop.f32.mrb[38].mxu0 }
 0x4d2   :  { %v6118_v62 = vadd.f32 %v10222_v55, %v6117_v4  ;;  %v6810_v14 = vpop.f32.mrb[39].mxu0 }
 0x4d4   :  { %6217 = vst [vmem:[#allocation2 + $0x30] sm:$0xff] %v6118_v62 }
 0x4d5   :  { %v6122_v61 = vpop.f32.mrb[40].mxu0 }
 0x4d6   :  { %v6123_v46 = vadd.f32 %v10222_v55, %v6122_v61  ;;  %v6813_v52 = vpop.f32.mrb[41].mxu0 }
 0x4d8   :  { %6218 = vst [vmem:[#allocation2 + $0x38] sm:$0xff] %v6123_v46 }
 0x4d9   :  { %v6127_v60 = vpop.f32.mrb[42].mxu0 }
 0x4da   :  { %v6128_v13 = vadd.f32 %v10222_v55, %v6127_v60  ;;  %v6816_v23 = vpop.f32.mrb[43].mxu0 }
 0x4dc   :  { %6219 = vst [vmem:[#allocation2 + $0x40] sm:$0xff] %v6128_v13 }
 0x4dd   :  { %v6132_v58 = vpop.f32.mrb[44].mxu0 }
 0x4de   :  { %v6133_v51 = vadd.f32 %v10222_v55, %v6132_v58  ;;  %v6819_v37 = vpop.f32.mrb[45].mxu0 }
 0x4e0   :  { %6220 = vst [vmem:[#allocation2 + $0x48] sm:$0xff] %v6133_v51 }
 0x4e1   :  { %v6137_v63 = vpop.f32.mrb[46].mxu0 }
 0x4e2   :  { %v6138_v0 = vadd.f32 %v10222_v55, %v6137_v63  ;;  %v6822_v41 = vpop.f32.mrb[47].mxu0 }
 0x4e4   :  { %6221 = vst [vmem:[#allocation2 + $0x50] sm:$0xff] %v6138_v0 }
 0x4e5   :  { %v6142_v27 = vpop.f32.mrb[48].mxu0 }
 0x4e6   :  { %v6143_v19 = vadd.f32 %v10222_v55, %v6142_v27  ;;  %v6825_v42 = vpop.f32.mrb[49].mxu0 }
 0x4e8   :  { %6222 = vst [vmem:[#allocation2 + $0x58] sm:$0xff] %v6143_v19 }
 0x4e9   :  { %v6147_v36 = vpop.f32.mrb[50].mxu0 }
 0x4ea   :  { %v6148_v45 = vadd.f32 %v10222_v55, %v6147_v36  ;;  %v6828_v44 = vpop.f32.mrb[51].mxu0 }
 0x4ec   :  { %6223 = vst [vmem:[#allocation2 + $0x60] sm:$0xff] %v6148_v45 }
 0x4ed   :  { %v6152_v25 = vpop.f32.mrb[52].mxu0 }
 0x4ee   :  { %v6153_v26 = vadd.f32 %v10222_v55, %v6152_v25  ;;  %v6831_v39 = vpop.f32.mrb[53].mxu0 }
 0x4f0   :  { %6224 = vst [vmem:[#allocation2 + $0x68] sm:$0xff] %v6153_v26 }
 0x4f1   :  { %v6157_v9 = vpop.f32.mrb[54].mxu0 }
 0x4f2   :  { %v6158_v31 = vadd.f32 %v10222_v55, %v6157_v9  ;;  %v6834_v49 = vpop.f32.mrb[55].mxu0 }
 0x4f4   :  { %6225 = vst [vmem:[#allocation2 + $0x70] sm:$0xff] %v6158_v31 }
 0x4f5   :  { %v6162_v2 = vpop.f32.mrb[56].mxu0 }
 0x4f6   :  { %v6163_v10 = vadd.f32 %v10222_v55, %v6162_v2  ;;  %v6837_v29 = vpop.f32.mrb[57].mxu0 }
 0x4f8   :  { %6226 = vst [vmem:[#allocation2 + $0x78] sm:$0xff] %v6163_v10 }
 0x4f9   :  { %v6167_v35 = vpop.f32.mrb[58].mxu0 }
 0x4fa   :  { %v6168_v30 = vadd.f32 %v10222_v55, %v6167_v35  ;;  %v6840_v17 = vpop.f32.mrb[59].mxu0 }
 0x4fc   :  { %6227 = vst [vmem:[#allocation2 + $0x80] sm:$0xff] %v6168_v30 }
 0x4fd   :  { %v6172_v5 = vpop.f32.mrb[60].mxu0 }
 0x4fe   :  { %v6173_v24 = vadd.f32 %v10222_v55, %v6172_v5  ;;  %v6843_v32 = vpop.f32.mrb[61].mxu0 }
 0x500   :  { %6228 = vst [vmem:[#allocation2 + $0x88] sm:$0xff] %v6173_v24 }
 0x501   :  { %v6177_v50 = vpop.f32.mrb[62].mxu0 }
 0x502   :  { %v6178_v53 = vadd.f32 %v10222_v55, %v6177_v50  ;;  %v6846_v15 = vpop.f32.mrb[63].mxu0 }
 0x504   :  { %6229 = vst [vmem:[#allocation2 + $0x90] sm:$0xff] %v6178_v53 }
 0x505   :  { %v6182_v3 = vpop.f32.mrb[64].mxu0 }
 0x506   :  { %v6183_v12 = vadd.f32 %v10222_v55, %v6182_v3  ;;  %v6849_v47 = vpop.f32.mrb[65].mxu0 }
 0x508   :  { %6230 = vst [vmem:[#allocation2 + $0x98] sm:$0xff] %v6183_v12 }
 0x509   :  { %v6187_v43 = vpop.f32.mrb[66].mxu0 }
 0x50a   :  { %v6188_v59 = vadd.f32 %v10222_v55, %v6187_v43  ;;  %v6852_v28 = vpop.f32.mrb[67].mxu0 }
 0x50c   :  { %6231 = vst [vmem:[#allocation2 + $0xa0] sm:$0xff] %v6188_v59 }
 0x50d   :  { %v6192_v22 = vpop.f32.mrb[68].mxu0 }
 0x50e   :  { %v6193_v11 = vadd.f32 %v10222_v55, %v6192_v22  ;;  %v6855_v7 = vpop.f32.mrb[69].mxu0 }
 0x510   :  { %6232 = vst [vmem:[#allocation2 + $0xa8] sm:$0xff] %v6193_v11 }
 0x511   :  { %v6197_v57 = vpop.f32.mrb[70].mxu0 }
 0x512   :  { %v6198_v40 = vadd.f32 %v10222_v55, %v6197_v57  ;;  %v6858_v21 = vpop.f32.mrb[71].mxu0 }
 0x514   :  { %6233 = vst [vmem:[#allocation2 + $0xb0] sm:$0xff] %v6198_v40 }
 0x515   :  { %v6202_v18 = vpop.f32.mrb[72].mxu0 }
 0x516   :  { %v6203_v6 = vadd.f32 %v10222_v55, %v6202_v18  ;;  %v6861_v33 = vpop.f32.mrb[73].mxu0 }
 0x518   :  { %6234 = vst [vmem:[#allocation2 + $0xb8] sm:$0xff] %v6203_v6 }
 0x519   :  { %v6207_v1 = vpop.f32.mrb[74].mxu0 }
 0x51a   :  { %v6208_v16 = vadd.f32 %v10222_v55, %v6207_v1  ;;  %v6864_v56 = vpop.f32.mrb[75].mxu0 }
 0x51c   :  { %6235 = vst [vmem:[#allocation2 + $0xc0] sm:$0xff] %v6208_v16 }
 0x51d   :  { %7126 = shalt.err (!%p7123_p4)
}
 0x51e   :  { %s7127_s23 = scalar_lea.hbm %s10267_s6, 3200 }
 0x51f   :  { %p7128_p5 = scmp.ne.s32.totalorder %s10267_s6, %s7127_s23  ;;  %p7131_p6 = scmp.lt.u32.totalorder %s7127_s23, %s10267_s6 }
 0x521   :  { %p7133_p7 = pnand %p7131_p6, %p7128_p5 }
 0x523   :  { %7136 = shalt.err (!%p7133_p7)
}
 0x524   :  { %s7150_s27 = smov 128   ;;  %s7151_s28 = smov 8  }
 0x525   :  { %6247 = dma.vmem_to_hbm [thread:$0]  %s6242_s19, 3200, %s10267_s6, [#allocation3], %s7150_s27, %s7150_s27, %s7151_s28  }
 0x526   :  { %7137 = dma.done.wait [#allocation3], 3200  }
 0x527   :  { %7138 = vsyncadd [#allocation3], 4294964096 }
 0x528   :  { %6251 = vsyncpa [#allocation3], 1 }

</bundles_post_ra>
